<compile_context>
chip_gen: v7x
topology: tpu7x:2x2x1
jax: 0.10.0
libtpu: 0.0.40
codegen_flags: <defaults>
</compile_context>

<pallas_src>
import math

import jax
import jax.numpy as jnp
from jax.experimental import pallas as pl
from jax.experimental.pallas import tpu as pltpu

# ----- small config (mirrors NCSTConfig, scaled down) -----
DIM = 32
N_HEADS = 4
N_BLOCKS = 2
TOTAL_STEPS = 10
PATCH = 4
NOISE_DIM = (3, 16, 16)                      # (C, H, W)
SEQ = (NOISE_DIM[1] // PATCH) ** 2           # 16 tokens
HEAD_DIM = DIM // N_HEADS                    # 8
MLP_HIDDEN = int(4.0 * DIM)                  # 128
PATCH_K = PATCH * PATCH * NOISE_DIM[0]       # 48 = p*p*c
EPS = 1e-6

# packed per-block weight-slab column layout (all lane-tile aligned)
COL_QKV = 0                                  # width 3*DIM = 96
COL_PROJ = 128                               # width DIM   = 32
COL_W1 = 256                                 # width MLP_HIDDEN = 128
SLAB_W = COL_W1 + MLP_HIDDEN                 # 384
PAD_K = 128                                  # lane-dense padded output width
N_MOD_ROWS = 6 * N_BLOCKS + 2                # adaLN rows per block + CondLN gamma/beta


# ---------------------------------------------------------------------------
# shared math helper (used inside the kernel and in the pure-JAX reference)
# ---------------------------------------------------------------------------
def _layernorm(x, eps=EPS):
    # torch.nn.LayerNorm(elementwise_affine=False): biased variance, eps inside sqrt
    mu = jnp.mean(x, axis=-1, keepdims=True)
    xc = x - mu
    var = jnp.mean(xc * xc, axis=-1, keepdims=True)
    return xc * jax.lax.rsqrt(var + eps)


# ---------------------------------------------------------------------------
# fused Pallas kernel: whole forward, whole batch, one invocation
# ---------------------------------------------------------------------------
def _ncst_kernel(patches_ref, embed_ref, mod_ref, w_ref, w2_ref, proj_ref, out_ref):
    B = mod_ref.shape[0]
    BT = patches_ref.shape[0]                              # B * SEQ
    scale = 1.0 / math.sqrt(HEAD_DIM)

    # ---- patch embedding (Conv2d(k=p, s=p) == linear on patch vectors) ----
    patch_w = embed_ref[0:PATCH_K, :]                      # (PATCH_K, D)
    pos_b = embed_ref[PATCH_K:PATCH_K + SEQ, :]            # (T, D) = pos + conv bias
    x = jnp.dot(patches_ref[...], patch_w, preferred_element_type=jnp.float32)
    x = (x.reshape(B, SEQ, DIM) + pos_b).reshape(BT, DIM)  # (BT, D)

    mod = mod_ref[...]                                     # (B, 6*N_BLOCKS+2, D)

    def modulate(t, scale_row, shift_row):
        # per-batch-element (B,1,D) rows broadcast over each 16-token block
        t3 = t.reshape(B, SEQ, DIM)
        return (scale_row * t3 + shift_row).reshape(BT, DIM)

    def gated_residual(xc, gate_row, delta):
        d3 = gate_row * delta.reshape(B, SEQ, DIM)
        return xc + d3.reshape(BT, DIM)

    # ---- transformer blocks (unrolled; all weights resident in VMEM) ----
    for blk in range(N_BLOCKS):
        r = 6 * blk
        sa, sha, ga = mod[:, r:r + 1], mod[:, r + 1:r + 2], mod[:, r + 2:r + 3]
        sm, shm, gm = mod[:, r + 3:r + 4], mod[:, r + 4:r + 5], mod[:, r + 5:r + 6]

        # -- attention: single fused (BT, D) x (D, 3D) QKV matmul --
        h = modulate(_layernorm(x), sa, sha)
        wqkv = w_ref[blk, 0:DIM, COL_QKV:COL_QKV + 3 * DIM]
        bqkv = w_ref[blk, DIM:DIM + 1, COL_QKV:COL_QKV + 3 * DIM]
        qkv = jnp.dot(h, wqkv, preferred_element_type=jnp.float32) + bqkv
        qkv = qkv.reshape(B, SEQ, 3 * DIM)

        # per-head scores/context (inherently per-head at HEAD_DIM=8; the real
        # MXU matmuls are the fused QKV above and the fused projections below)
        ctx = []
        for head in range(N_HEADS):
            lo = head * HEAD_DIM
            q = qkv[:, :, 0 * DIM + lo:0 * DIM + lo + HEAD_DIM]   # (B, T, hd)
            k = qkv[:, :, 1 * DIM + lo:1 * DIM + lo + HEAD_DIM]
            v = qkv[:, :, 2 * DIM + lo:2 * DIM + lo + HEAD_DIM]
            s = jnp.einsum('bqd,bkd->bqk', q, k,
                           preferred_element_type=jnp.float32) * scale
            s = s - jnp.max(s, axis=-1, keepdims=True)
            e = jnp.exp(s)
            p = e * pl.reciprocal(jnp.sum(e, axis=-1, keepdims=True), approx=True)
            ctx.append(jnp.einsum('bqk,bkd->bqd', p, v,
                                  preferred_element_type=jnp.float32))
        # head-concat laid out lane-dense -> ONE (BT, D) x (D, D) output proj
        o = jnp.concatenate(ctx, axis=-1).reshape(BT, DIM)
        wproj = w_ref[blk, 0:DIM, COL_PROJ:COL_PROJ + DIM]
        bproj = w_ref[blk, DIM:DIM + 1, COL_PROJ:COL_PROJ + DIM]
        attn = jnp.dot(o, wproj, preferred_element_type=jnp.float32) + bproj
        x = gated_residual(x, ga, attn)

        # -- MLP branch --
        h2 = modulate(_layernorm(x), sm, shm)
        w1 = w_ref[blk, 0:DIM, COL_W1:COL_W1 + MLP_HIDDEN]
        b1 = w_ref[blk, DIM:DIM + 1, COL_W1:COL_W1 + MLP_HIDDEN]
        mid = jnp.dot(h2, w1, preferred_element_type=jnp.float32) + b1
        # tanh GELU rides the EUP slot (perf review); <1e-3 from torch's erf GELU
        mid = jax.nn.gelu(mid, approximate=True)
        w2 = w2_ref[blk, 0:MLP_HIDDEN, :]
        b2 = w2_ref[blk, MLP_HIDDEN:MLP_HIDDEN + 1, :]
        mlp = jnp.dot(mid, w2, preferred_element_type=jnp.float32) + b2
        x = gated_residual(x, gm, mlp)

    # ---- CondLayerNorm + lane-dense (128-wide zero-padded) projection ----
    gamma = mod[:, 6 * N_BLOCKS:6 * N_BLOCKS + 1]
    beta = mod[:, 6 * N_BLOCKS + 1:6 * N_BLOCKS + 2]
    hf = modulate(_layernorm(x), gamma, beta)
    projw = proj_ref[0:DIM, :]                             # (D, 128)
    projb = proj_ref[DIM:DIM + 1, :]                       # (1, 128)
    out_ref[...] = jnp.dot(hf, projw, preferred_element_type=jnp.float32) + projb


# ---------------------------------------------------------------------------
# pallas_call wrapper
# ---------------------------------------------------------------------------
def _ncst_call(patches2d, mod, kp):
    BT = patches2d.shape[0]
    vmem = pltpu.MemorySpace.VMEM
    return pl.pallas_call(
        _ncst_kernel,
        out_shape=jax.ShapeDtypeStruct((BT, PAD_K), jnp.float32),
        in_specs=[pl.BlockSpec(memory_space=vmem)] * 6,
        out_specs=pl.BlockSpec(memory_space=vmem),
    )(patches2d, kp["embed_slab"], mod, kp["w_slab"], kp["w2_slab"], kp["proj_slab"])


# ---------------------------------------------------------------------------
# parameters: torch-layout init + one-time packing into VMEM-friendly slabs
# ---------------------------------------------------------------------------
def init_params(key):
    keys = iter(jax.random.split(key, 64))

    def nrm(shape, scale):
        return jax.random.normal(next(keys), shape, jnp.float32) * scale

    params = {
        "patch_w": nrm((PATCH_K, DIM), 0.02),        # Conv2d(k=p, s=p) == linear on patches
        "patch_b": jnp.zeros((1, DIM), jnp.float32),
        "pos": nrm((SEQ, DIM), 1.0),
        # NOTE: torch zero-inits cond_embed / adaLN tables; we use non-zero so the
        # conditioning paths are actually exercised numerically.
        "cond_embed": nrm((TOTAL_STEPS, 2 * DIM), 1.0),
        "proj_w": nrm((DIM, PATCH_K), 0.02),
        "proj_b": jnp.zeros((1, PATCH_K), jnp.float32),
        "blocks": [],
    }
    for _ in range(N_BLOCKS):
        params["blocks"].append(dict(
            adaln=nrm((TOTAL_STEPS, 6 * DIM), 1.0),
            wqkv=nrm((DIM, 3 * DIM), 0.02), bqkv=nrm((1, 3 * DIM), 0.02),
            wproj=nrm((DIM, DIM), 0.02), bproj=nrm((1, DIM), 0.02),
            w1=nrm((DIM, MLP_HIDDEN), 0.02), b1=nrm((1, MLP_HIDDEN), 0.02),
            w2=nrm((MLP_HIDDEN, DIM), 0.02), b2=nrm((1, DIM), 0.02),
        ))
    return params


def prepare_params(params):
    """One-time glue: pack the 20 torch-layout tensors into 5 kernel slabs."""
    D = DIM
    f32 = jnp.float32

    # modulation table: per noise step, [blk0 adaLN(6 rows) | blk1 adaLN(6) | CondLN(2)]
    rows = [b["adaln"].reshape(TOTAL_STEPS, 6, D) for b in params["blocks"]]
    rows.append(params["cond_embed"].reshape(TOTAL_STEPS, 2, D))
    mod_table = jnp.concatenate(rows, axis=1)              # (TOTAL_STEPS, 14, D)

    # embed slab: rows [0:PATCH_K] = patch_w, rows [PATCH_K:PATCH_K+SEQ] = pos + patch_b
    embed_slab = jnp.concatenate(
        [params["patch_w"], params["pos"] + params["patch_b"]], axis=0)

    # per-block packed weight+bias slab (N_BLOCKS, D+1, SLAB_W); row D holds biases
    slabs = []
    for b in params["blocks"]:
        s = jnp.zeros((D + 1, SLAB_W), f32)
        s = s.at[0:D, COL_QKV:COL_QKV + 3 * D].set(b["wqkv"])
        s = s.at[D, COL_QKV:COL_QKV + 3 * D].set(b["bqkv"][0])
        s = s.at[0:D, COL_PROJ:COL_PROJ + D].set(b["wproj"])
        s = s.at[D, COL_PROJ:COL_PROJ + D].set(b["bproj"][0])
        s = s.at[0:D, COL_W1:COL_W1 + MLP_HIDDEN].set(b["w1"])
        s = s.at[D, COL_W1:COL_W1 + MLP_HIDDEN].set(b["b1"][0])
        slabs.append(s)
    w_slab = jnp.stack(slabs, axis=0)

    # second MLP matmul + its bias: (N_BLOCKS, MLP_HIDDEN+1, D)
    w2_slab = jnp.stack(
        [jnp.concatenate([b["w2"], b["b2"]], axis=0) for b in params["blocks"]], axis=0)

    # final projection, zero-padded to 128 output lanes; row D holds the bias
    proj_slab = jnp.zeros((D + 1, PAD_K), f32)
    proj_slab = proj_slab.at[0:D, 0:PATCH_K].set(params["proj_w"])
    proj_slab = proj_slab.at[D, 0:PATCH_K].set(params["proj_b"][0])

    return {"mod_table": mod_table, "embed_slab": embed_slab,
            "w_slab": w_slab, "w2_slab": w2_slab, "proj_slab": proj_slab}


# ---------------------------------------------------------------------------
# forward (patchify / unpatchify / row gathers are trivial glue around 1 kernel)
# ---------------------------------------------------------------------------
def ncst_forward(kparams, x, noise_level):
    B = x.shape[0]
    c, Hs, Ws = NOISE_DIM
    hg, wg = Hs // PATCH, Ws // PATCH

    # patchify: NCHW -> (B*T, c*p*p), ordered (c, ph, pw) to match Conv2d weights
    patches = x.reshape(B, c, hg, PATCH, wg, PATCH)
    patches = patches.transpose(0, 2, 4, 1, 3, 5).reshape(B * SEQ, PATCH_K)

    # clamp noise levels (no unchecked OOB table reads) + tiny row gather
    nl = jnp.clip(noise_level.astype(jnp.int32), 0, TOTAL_STEPS - 1)
    mod = kparams["mod_table"][nl]                           # (B, 14, D)

    out = _ncst_call(patches, mod, kparams)                  # (B*T, 128) lane-dense

    # drop the lane padding, then unpatchify (matches torch view/permute/reshape)
    out = out[:, :PATCH_K].reshape(B, hg, wg, PATCH, PATCH, c)
    out = out.transpose(0, 5, 1, 3, 2, 4).reshape(B, c, hg * PATCH, wg * PATCH)
    return out


# ---------------------------------------------------------------------------
# pure-JAX reference (torch-equivalent math, original weight layout, exact GELU)
# ---------------------------------------------------------------------------
def ncst_reference(params, x, noise_level):
    B = x.shape[0]
    c, Hs, Ws = NOISE_DIM
    hg, wg = Hs // PATCH, Ws // PATCH
    patches = x.reshape(B, c, hg, PATCH, wg, PATCH)
    patches = patches.transpose(0, 2, 4, 1, 3, 5).reshape(B, SEQ, PATCH_K)
    z = patches @ params["patch_w"] + params["patch_b"] + params["pos"]
    scale = 1.0 / math.sqrt(HEAD_DIM)
    for blk in params["blocks"]:
        m = blk["adaln"][noise_level][:, None, :]
        sa, sha, ga, sm, shm, gm = jnp.split(m, 6, axis=-1)
        h = sa * _layernorm(z) + sha
        qkv = h @ blk["wqkv"] + blk["bqkv"]
        q, k, v = jnp.split(qkv, 3, axis=-1)

        def heads(t):
            return t.reshape(B, SEQ, N_HEADS, HEAD_DIM).transpose(0, 2, 1, 3)

        q, k, v = heads(q), heads(k), heads(v)
        s = jnp.einsum('bhqd,bhkd->bhqk', q, k) * scale
        p = jax.nn.softmax(s, axis=-1)
        o = jnp.einsum('bhqk,bhkd->bhqd', p, v)
        o = o.transpose(0, 2, 1, 3).reshape(B, SEQ, DIM)
        attn = o @ blk["wproj"] + blk["bproj"]
        z = z + ga * attn
        h2 = sm * _layernorm(z) + shm
        mid = jax.nn.gelu(h2 @ blk["w1"] + blk["b1"], approximate=False)
        z = z + gm * (mid @ blk["w2"] + blk["b2"])
    gb = params["cond_embed"][noise_level][:, None, :]
    gamma, beta = jnp.split(gb, 2, axis=-1)
    out = (gamma * _layernorm(z) + beta) @ params["proj_w"] + params["proj_b"]
    out = out.reshape(B, hg, wg, PATCH, PATCH, c)
    out = out.transpose(0, 5, 1, 3, 2, 4).reshape(B, c, hg * PATCH, wg * PATCH)
    return out


if __name__ == "__main__":
    key = jax.random.PRNGKey(0)
    pkey, xkey = jax.random.split(key)
    params = init_params(pkey)
    kparams = prepare_params(params)          # one-time weight packing (glue)

    x = jax.random.normal(xkey, (2,) + NOISE_DIM, jnp.float32)      # (B, C, H, W)
    noise_level = jnp.array([1, 7], dtype=jnp.int32)                # (B,) step indices

    fwd = jax.jit(ncst_forward)
    out = fwd(kparams, x, noise_level)
    jax.block_until_ready(out)

    assert out.shape == (2,) + NOISE_DIM, out.shape
    assert bool(jnp.all(jnp.isfinite(out)))

    # structural correctness check against the pure-JAX (torch-semantics) reference
    ref = jax.jit(ncst_reference)(params, x, noise_level)
    jax.block_until_ready(ref)
    err = float(jnp.max(jnp.abs(out - ref)))
    tol = 2e-2 * float(jnp.max(jnp.abs(ref))) + 1e-4
    assert err < tol, (err, tol)

    print("KERNEL_OK")
</pallas_src>

<mosaic_0001>
module attributes {stable_mosaic.version = 11 : i64} {
  func.func @_ncst_kernel(%arg0: memref<32x48xf32, #tpu.memory_space<vmem>>, %arg1: memref<64x32xf32, #tpu.memory_space<vmem>>, %arg2: memref<2x14x32xf32, #tpu.memory_space<vmem>>, %arg3: memref<2x33x384xf32, #tpu.memory_space<vmem>>, %arg4: memref<2x129x32xf32, #tpu.memory_space<vmem>>, %arg5: memref<33x128xf32, #tpu.memory_space<vmem>>, %arg6: memref<32x128xf32, #tpu.memory_space<vmem>>) attributes {dimension_semantics = [], scalar_prefetch = 0 : i64, scratch_operands = 0 : i64, tpu.core_type = #tpu.core_type<tc>} {
    %c0 = arith.constant 0 : index
    %c0_0 = arith.constant 0 : index
    %0 = vector.load %arg1[%c0, %c0_0] : memref<64x32xf32, #tpu.memory_space<vmem>>, vector<48x32xf32>
    %c48 = arith.constant 48 : index
    %c0_1 = arith.constant 0 : index
    %1 = vector.load %arg1[%c48, %c0_1] : memref<64x32xf32, #tpu.memory_space<vmem>>, vector<16x32xf32>
    %c0_2 = arith.constant 0 : index
    %c0_3 = arith.constant 0 : index
    %2 = vector.load %arg0[%c0_2, %c0_3] : memref<32x48xf32, #tpu.memory_space<vmem>>, vector<32x48xf32>
    %cst = arith.constant dense<0.000000e+00> : vector<32x32xf32>
    %3 = tpu.matmul %2, %0, %cst {dimension_numbers = #tpu.dot_dimension_numbers<[1], [0], [0], [1], [0, 0, 1, 1], [], []>} : vector<32x48xf32>, vector<48x32xf32>, vector<32x32xf32> -> vector<32x32xf32>
    %4 = vector.shape_cast %3 : vector<32x32xf32> to vector<2x16x32xf32>
    %5 = vector.shape_cast %1 : vector<16x32xf32> to vector<1x16x32xf32>
    %6 = vector.broadcast %5 : vector<1x16x32xf32> to vector<2x16x32xf32>
    %7 = arith.addf %4, %6 : vector<2x16x32xf32>
    %8 = vector.shape_cast %7 : vector<2x16x32xf32> to vector<32x32xf32>
    %c0_4 = arith.constant 0 : index
    %c0_5 = arith.constant 0 : index
    %c0_6 = arith.constant 0 : index
    %9 = vector.load %arg2[%c0_4, %c0_5, %c0_6] : memref<2x14x32xf32, #tpu.memory_space<vmem>>, vector<2x14x32xf32>
    %10 = vector.extract_strided_slice %9 {offsets = [0, 0, 0], sizes = [2, 1, 32], strides = [1, 1, 1]} : vector<2x14x32xf32> to vector<2x1x32xf32>
    %11 = vector.extract_strided_slice %9 {offsets = [0, 1, 0], sizes = [2, 1, 32], strides = [1, 1, 1]} : vector<2x14x32xf32> to vector<2x1x32xf32>
    %12 = vector.extract_strided_slice %9 {offsets = [0, 2, 0], sizes = [2, 1, 32], strides = [1, 1, 1]} : vector<2x14x32xf32> to vector<2x1x32xf32>
    %13 = vector.extract_strided_slice %9 {offsets = [0, 3, 0], sizes = [2, 1, 32], strides = [1, 1, 1]} : vector<2x14x32xf32> to vector<2x1x32xf32>
    %14 = vector.extract_strided_slice %9 {offsets = [0, 4, 0], sizes = [2, 1, 32], strides = [1, 1, 1]} : vector<2x14x32xf32> to vector<2x1x32xf32>
    %15 = vector.extract_strided_slice %9 {offsets = [0, 5, 0], sizes = [2, 1, 32], strides = [1, 1, 1]} : vector<2x14x32xf32> to vector<2x1x32xf32>
    %cst_7 = arith.constant dense<0.000000e+00> : vector<32xf32>
    %16 = vector.multi_reduction <add>, %8, %cst_7 [1] : vector<32x32xf32> to vector<32xf32>
    %17 = vector.shape_cast %16 : vector<32xf32> to vector<32x1xf32>
    %cst_8 = arith.constant 3.200000e+01 : f32
    %18 = vector.broadcast %cst_8 : f32 to vector<32x1xf32>
    %19 = arith.divf %17, %18 : vector<32x1xf32>
    %20 = vector.broadcast %19 : vector<32x1xf32> to vector<32x32xf32>
    %21 = arith.subf %8, %20 : vector<32x32xf32>
    %22 = arith.mulf %21, %21 : vector<32x32xf32>
    %cst_9 = arith.constant dense<0.000000e+00> : vector<32xf32>
    %23 = vector.multi_reduction <add>, %22, %cst_9 [1] : vector<32x32xf32> to vector<32xf32>
    %24 = vector.shape_cast %23 : vector<32xf32> to vector<32x1xf32>
    %cst_10 = arith.constant 3.200000e+01 : f32
    %25 = vector.broadcast %cst_10 : f32 to vector<32x1xf32>
    %26 = arith.divf %24, %25 : vector<32x1xf32>
    %cst_11 = arith.constant 9.99999997E-7 : f32
    %27 = vector.broadcast %cst_11 : f32 to vector<32x1xf32>
    %28 = arith.addf %26, %27 : vector<32x1xf32>
    %29 = math.rsqrt %28 : vector<32x1xf32>
    %30 = vector.broadcast %29 : vector<32x1xf32> to vector<32x32xf32>
    %31 = arith.mulf %21, %30 : vector<32x32xf32>
    %32 = vector.shape_cast %31 : vector<32x32xf32> to vector<2x16x32xf32>
    %33 = vector.broadcast %10 : vector<2x1x32xf32> to vector<2x16x32xf32>
    %34 = arith.mulf %33, %32 : vector<2x16x32xf32>
    %35 = vector.broadcast %11 : vector<2x1x32xf32> to vector<2x16x32xf32>
    %36 = arith.addf %34, %35 : vector<2x16x32xf32>
    %37 = vector.shape_cast %36 : vector<2x16x32xf32> to vector<32x32xf32>
    %c0_12 = arith.constant 0 : index
    %c0_13 = arith.constant 0 : index
    %c0_14 = arith.constant 0 : index
    %38 = vector.load %arg3[%c0_12, %c0_13, %c0_14] : memref<2x33x384xf32, #tpu.memory_space<vmem>>, vector<1x32x96xf32>
    %39 = vector.shape_cast %38 : vector<1x32x96xf32> to vector<32x96xf32>
    %c0_15 = arith.constant 0 : index
    %c32 = arith.constant 32 : index
    %c0_16 = arith.constant 0 : index
    %40 = vector.load %arg3[%c0_15, %c32, %c0_16] : memref<2x33x384xf32, #tpu.memory_space<vmem>>, vector<1x1x96xf32>
    %41 = vector.shape_cast %40 : vector<1x1x96xf32> to vector<1x96xf32>
    %cst_17 = arith.constant dense<0.000000e+00> : vector<32x96xf32>
    %42 = tpu.matmul %37, %39, %cst_17 {dimension_numbers = #tpu.dot_dimension_numbers<[1], [0], [0], [1], [0, 0, 1, 1], [], []>} : vector<32x32xf32>, vector<32x96xf32>, vector<32x96xf32> -> vector<32x96xf32>
    %43 = vector.broadcast %41 : vector<1x96xf32> to vector<32x96xf32>
    %44 = arith.addf %42, %43 : vector<32x96xf32>
    %45 = vector.shape_cast %44 : vector<32x96xf32> to vector<2x16x96xf32>
    %46 = vector.extract_strided_slice %45 {offsets = [0, 0, 0], sizes = [2, 16, 8], strides = [1, 1, 1]} : vector<2x16x96xf32> to vector<2x16x8xf32>
    %47 = vector.extract_strided_slice %45 {offsets = [0, 0, 32], sizes = [2, 16, 8], strides = [1, 1, 1]} : vector<2x16x96xf32> to vector<2x16x8xf32>
    %48 = vector.extract_strided_slice %45 {offsets = [0, 0, 64], sizes = [2, 16, 8], strides = [1, 1, 1]} : vector<2x16x96xf32> to vector<2x16x8xf32>
    "tpu.trace_start"() <{level = 10 : i32, message = "bqd,bkd->bqk"}> : () -> ()
    %cst_18 = arith.constant dense<0.000000e+00> : vector<2x16x16xf32>
    %49 = tpu.matmul %46, %47, %cst_18 {dimension_numbers = #tpu.dot_dimension_numbers<[2], [2], [1], [1], [0, 0, 0, 1, 1, 1], [0], [0]>} : vector<2x16x8xf32>, vector<2x16x8xf32>, vector<2x16x16xf32> -> vector<2x16x16xf32>
    "tpu.trace_stop"() : () -> ()
    %cst_19 = arith.constant 0.353553385 : f32
    %50 = vector.broadcast %cst_19 : f32 to vector<2x16x16xf32>
    %51 = arith.mulf %49, %50 : vector<2x16x16xf32>
    %cst_20 = arith.constant dense<0xFF800000> : vector<2x16xf32>
    %52 = vector.multi_reduction <maximumf>, %51, %cst_20 [2] : vector<2x16x16xf32> to vector<2x16xf32>
    %53 = vector.shape_cast %52 : vector<2x16xf32> to vector<2x16x1xf32>
    %54 = vector.broadcast %53 : vector<2x16x1xf32> to vector<2x16x16xf32>
    %55 = arith.subf %51, %54 : vector<2x16x16xf32>
    %56 = math.exp %55 : vector<2x16x16xf32>
    %cst_21 = arith.constant dense<0.000000e+00> : vector<2x16xf32>
    %57 = vector.multi_reduction <add>, %56, %cst_21 [2] : vector<2x16x16xf32> to vector<2x16xf32>
    %58 = vector.shape_cast %57 : vector<2x16xf32> to vector<2x16x1xf32>
    %59 = tpu.reciprocal %58 {approx = true} : vector<2x16x1xf32> -> vector<2x16x1xf32>
    %60 = vector.broadcast %59 : vector<2x16x1xf32> to vector<2x16x16xf32>
    %61 = arith.mulf %56, %60 : vector<2x16x16xf32>
    "tpu.trace_start"() <{level = 10 : i32, message = "bqk,bkd->bqd"}> : () -> ()
    %cst_22 = arith.constant dense<0.000000e+00> : vector<2x16x8xf32>
    %62 = tpu.matmul %61, %48, %cst_22 {dimension_numbers = #tpu.dot_dimension_numbers<[2], [1], [1], [2], [0, 0, 0, 1, 1, 2], [0], [0]>} : vector<2x16x16xf32>, vector<2x16x8xf32>, vector<2x16x8xf32> -> vector<2x16x8xf32>
    "tpu.trace_stop"() : () -> ()
    %63 = vector.extract_strided_slice %45 {offsets = [0, 0, 8], sizes = [2, 16, 8], strides = [1, 1, 1]} : vector<2x16x96xf32> to vector<2x16x8xf32>
    %64 = vector.extract_strided_slice %45 {offsets = [0, 0, 40], sizes = [2, 16, 8], strides = [1, 1, 1]} : vector<2x16x96xf32> to vector<2x16x8xf32>
    %65 = vector.extract_strided_slice %45 {offsets = [0, 0, 72], sizes = [2, 16, 8], strides = [1, 1, 1]} : vector<2x16x96xf32> to vector<2x16x8xf32>
    "tpu.trace_start"() <{level = 10 : i32, message = "bqd,bkd->bqk"}> : () -> ()
    %cst_23 = arith.constant dense<0.000000e+00> : vector<2x16x16xf32>
    %66 = tpu.matmul %63, %64, %cst_23 {dimension_numbers = #tpu.dot_dimension_numbers<[2], [2], [1], [1], [0, 0, 0, 1, 1, 1], [0], [0]>} : vector<2x16x8xf32>, vector<2x16x8xf32>, vector<2x16x16xf32> -> vector<2x16x16xf32>
    "tpu.trace_stop"() : () -> ()
    %cst_24 = arith.constant 0.353553385 : f32
    %67 = vector.broadcast %cst_24 : f32 to vector<2x16x16xf32>
    %68 = arith.mulf %66, %67 : vector<2x16x16xf32>
    %cst_25 = arith.constant dense<0xFF800000> : vector<2x16xf32>
    %69 = vector.multi_reduction <maximumf>, %68, %cst_25 [2] : vector<2x16x16xf32> to vector<2x16xf32>
    %70 = vector.shape_cast %69 : vector<2x16xf32> to vector<2x16x1xf32>
    %71 = vector.broadcast %70 : vector<2x16x1xf32> to vector<2x16x16xf32>
    %72 = arith.subf %68, %71 : vector<2x16x16xf32>
    %73 = math.exp %72 : vector<2x16x16xf32>
    %cst_26 = arith.constant dense<0.000000e+00> : vector<2x16xf32>
    %74 = vector.multi_reduction <add>, %73, %cst_26 [2] : vector<2x16x16xf32> to vector<2x16xf32>
    %75 = vector.shape_cast %74 : vector<2x16xf32> to vector<2x16x1xf32>
    %76 = tpu.reciprocal %75 {approx = true} : vector<2x16x1xf32> -> vector<2x16x1xf32>
    %77 = vector.broadcast %76 : vector<2x16x1xf32> to vector<2x16x16xf32>
    %78 = arith.mulf %73, %77 : vector<2x16x16xf32>
    "tpu.trace_start"() <{level = 10 : i32, message = "bqk,bkd->bqd"}> : () -> ()
    %cst_27 = arith.constant dense<0.000000e+00> : vector<2x16x8xf32>
    %79 = tpu.matmul %78, %65, %cst_27 {dimension_numbers = #tpu.dot_dimension_numbers<[2], [1], [1], [2], [0, 0, 0, 1, 1, 2], [0], [0]>} : vector<2x16x16xf32>, vector<2x16x8xf32>, vector<2x16x8xf32> -> vector<2x16x8xf32>
    "tpu.trace_stop"() : () -> ()
    %80 = vector.extract_strided_slice %45 {offsets = [0, 0, 16], sizes = [2, 16, 8], strides = [1, 1, 1]} : vector<2x16x96xf32> to vector<2x16x8xf32>
    %81 = vector.extract_strided_slice %45 {offsets = [0, 0, 48], sizes = [2, 16, 8], strides = [1, 1, 1]} : vector<2x16x96xf32> to vector<2x16x8xf32>
    %82 = vector.extract_strided_slice %45 {offsets = [0, 0, 80], sizes = [2, 16, 8], strides = [1, 1, 1]} : vector<2x16x96xf32> to vector<2x16x8xf32>
    "tpu.trace_start"() <{level = 10 : i32, message = "bqd,bkd->bqk"}> : () -> ()
    %cst_28 = arith.constant dense<0.000000e+00> : vector<2x16x16xf32>
    %83 = tpu.matmul %80, %81, %cst_28 {dimension_numbers = #tpu.dot_dimension_numbers<[2], [2], [1], [1], [0, 0, 0, 1, 1, 1], [0], [0]>} : vector<2x16x8xf32>, vector<2x16x8xf32>, vector<2x16x16xf32> -> vector<2x16x16xf32>
    "tpu.trace_stop"() : () -> ()
    %cst_29 = arith.constant 0.353553385 : f32
    %84 = vector.broadcast %cst_29 : f32 to vector<2x16x16xf32>
    %85 = arith.mulf %83, %84 : vector<2x16x16xf32>
    %cst_30 = arith.constant dense<0xFF800000> : vector<2x16xf32>
    %86 = vector.multi_reduction <maximumf>, %85, %cst_30 [2] : vector<2x16x16xf32> to vector<2x16xf32>
    %87 = vector.shape_cast %86 : vector<2x16xf32> to vector<2x16x1xf32>
    %88 = vector.broadcast %87 : vector<2x16x1xf32> to vector<2x16x16xf32>
    %89 = arith.subf %85, %88 : vector<2x16x16xf32>
    %90 = math.exp %89 : vector<2x16x16xf32>
    %cst_31 = arith.constant dense<0.000000e+00> : vector<2x16xf32>
    %91 = vector.multi_reduction <add>, %90, %cst_31 [2] : vector<2x16x16xf32> to vector<2x16xf32>
    %92 = vector.shape_cast %91 : vector<2x16xf32> to vector<2x16x1xf32>
    %93 = tpu.reciprocal %92 {approx = true} : vector<2x16x1xf32> -> vector<2x16x1xf32>
    %94 = vector.broadcast %93 : vector<2x16x1xf32> to vector<2x16x16xf32>
    %95 = arith.mulf %90, %94 : vector<2x16x16xf32>
    "tpu.trace_start"() <{level = 10 : i32, message = "bqk,bkd->bqd"}> : () -> ()
    %cst_32 = arith.constant dense<0.000000e+00> : vector<2x16x8xf32>
    %96 = tpu.matmul %95, %82, %cst_32 {dimension_numbers = #tpu.dot_dimension_numbers<[2], [1], [1], [2], [0, 0, 0, 1, 1, 2], [0], [0]>} : vector<2x16x16xf32>, vector<2x16x8xf32>, vector<2x16x8xf32> -> vector<2x16x8xf32>
    "tpu.trace_stop"() : () -> ()
    %97 = vector.extract_strided_slice %45 {offsets = [0, 0, 24], sizes = [2, 16, 8], strides = [1, 1, 1]} : vector<2x16x96xf32> to vector<2x16x8xf32>
    %98 = vector.extract_strided_slice %45 {offsets = [0, 0, 56], sizes = [2, 16, 8], strides = [1, 1, 1]} : vector<2x16x96xf32> to vector<2x16x8xf32>
    %99 = vector.extract_strided_slice %45 {offsets = [0, 0, 88], sizes = [2, 16, 8], strides = [1, 1, 1]} : vector<2x16x96xf32> to vector<2x16x8xf32>
    "tpu.trace_start"() <{level = 10 : i32, message = "bqd,bkd->bqk"}> : () -> ()
    %cst_33 = arith.constant dense<0.000000e+00> : vector<2x16x16xf32>
    %100 = tpu.matmul %97, %98, %cst_33 {dimension_numbers = #tpu.dot_dimension_numbers<[2], [2], [1], [1], [0, 0, 0, 1, 1, 1], [0], [0]>} : vector<2x16x8xf32>, vector<2x16x8xf32>, vector<2x16x16xf32> -> vector<2x16x16xf32>
    "tpu.trace_stop"() : () -> ()
    %cst_34 = arith.constant 0.353553385 : f32
    %101 = vector.broadcast %cst_34 : f32 to vector<2x16x16xf32>
    %102 = arith.mulf %100, %101 : vector<2x16x16xf32>
    %cst_35 = arith.constant dense<0xFF800000> : vector<2x16xf32>
    %103 = vector.multi_reduction <maximumf>, %102, %cst_35 [2] : vector<2x16x16xf32> to vector<2x16xf32>
    %104 = vector.shape_cast %103 : vector<2x16xf32> to vector<2x16x1xf32>
    %105 = vector.broadcast %104 : vector<2x16x1xf32> to vector<2x16x16xf32>
    %106 = arith.subf %102, %105 : vector<2x16x16xf32>
    %107 = math.exp %106 : vector<2x16x16xf32>
    %cst_36 = arith.constant dense<0.000000e+00> : vector<2x16xf32>
    %108 = vector.multi_reduction <add>, %107, %cst_36 [2] : vector<2x16x16xf32> to vector<2x16xf32>
    %109 = vector.shape_cast %108 : vector<2x16xf32> to vector<2x16x1xf32>
    %110 = tpu.reciprocal %109 {approx = true} : vector<2x16x1xf32> -> vector<2x16x1xf32>
    %111 = vector.broadcast %110 : vector<2x16x1xf32> to vector<2x16x16xf32>
    %112 = arith.mulf %107, %111 : vector<2x16x16xf32>
    "tpu.trace_start"() <{level = 10 : i32, message = "bqk,bkd->bqd"}> : () -> ()
    %cst_37 = arith.constant dense<0.000000e+00> : vector<2x16x8xf32>
    %113 = tpu.matmul %112, %99, %cst_37 {dimension_numbers = #tpu.dot_dimension_numbers<[2], [1], [1], [2], [0, 0, 0, 1, 1, 2], [0], [0]>} : vector<2x16x16xf32>, vector<2x16x8xf32>, vector<2x16x8xf32> -> vector<2x16x8xf32>
    "tpu.trace_stop"() : () -> ()
    %114 = tpu.concatenate %62, %79, %96, %113 in 2 : vector<2x16x8xf32>, vector<2x16x8xf32>, vector<2x16x8xf32>, vector<2x16x8xf32> -> vector<2x16x32xf32>
    %115 = vector.shape_cast %114 : vector<2x16x32xf32> to vector<32x32xf32>
    %c0_38 = arith.constant 0 : index
    %c0_39 = arith.constant 0 : index
    %c128 = arith.constant 128 : index
    %116 = vector.load %arg3[%c0_38, %c0_39, %c128] : memref<2x33x384xf32, #tpu.memory_space<vmem>>, vector<1x32x32xf32>
    %117 = vector.shape_cast %116 : vector<1x32x32xf32> to vector<32x32xf32>
    %c0_40 = arith.constant 0 : index
    %c32_41 = arith.constant 32 : index
    %c128_42 = arith.constant 128 : index
    %118 = vector.load %arg3[%c0_40, %c32_41, %c128_42] : memref<2x33x384xf32, #tpu.memory_space<vmem>>, vector<1x1x32xf32>
    %119 = vector.shape_cast %118 : vector<1x1x32xf32> to vector<1x32xf32>
    %cst_43 = arith.constant dense<0.000000e+00> : vector<32x32xf32>
    %120 = tpu.matmul %115, %117, %cst_43 {dimension_numbers = #tpu.dot_dimension_numbers<[1], [0], [0], [1], [0, 0, 1, 1], [], []>} : vector<32x32xf32>, vector<32x32xf32>, vector<32x32xf32> -> vector<32x32xf32>
    %121 = vector.broadcast %119 : vector<1x32xf32> to vector<32x32xf32>
    %122 = arith.addf %120, %121 : vector<32x32xf32>
    %123 = vector.shape_cast %122 : vector<32x32xf32> to vector<2x16x32xf32>
    %124 = vector.broadcast %12 : vector<2x1x32xf32> to vector<2x16x32xf32>
    %125 = arith.mulf %124, %123 : vector<2x16x32xf32>
    %126 = vector.shape_cast %125 : vector<2x16x32xf32> to vector<32x32xf32>
    %127 = arith.addf %8, %126 : vector<32x32xf32>
    %cst_44 = arith.constant dense<0.000000e+00> : vector<32xf32>
    %128 = vector.multi_reduction <add>, %127, %cst_44 [1] : vector<32x32xf32> to vector<32xf32>
    %129 = vector.shape_cast %128 : vector<32xf32> to vector<32x1xf32>
    %cst_45 = arith.constant 3.200000e+01 : f32
    %130 = vector.broadcast %cst_45 : f32 to vector<32x1xf32>
    %131 = arith.divf %129, %130 : vector<32x1xf32>
    %132 = vector.broadcast %131 : vector<32x1xf32> to vector<32x32xf32>
    %133 = arith.subf %127, %132 : vector<32x32xf32>
    %134 = arith.mulf %133, %133 : vector<32x32xf32>
    %cst_46 = arith.constant dense<0.000000e+00> : vector<32xf32>
    %135 = vector.multi_reduction <add>, %134, %cst_46 [1] : vector<32x32xf32> to vector<32xf32>
    %136 = vector.shape_cast %135 : vector<32xf32> to vector<32x1xf32>
    %cst_47 = arith.constant 3.200000e+01 : f32
    %137 = vector.broadcast %cst_47 : f32 to vector<32x1xf32>
    %138 = arith.divf %136, %137 : vector<32x1xf32>
    %cst_48 = arith.constant 9.99999997E-7 : f32
    %139 = vector.broadcast %cst_48 : f32 to vector<32x1xf32>
    %140 = arith.addf %138, %139 : vector<32x1xf32>
    %141 = math.rsqrt %140 : vector<32x1xf32>
    %142 = vector.broadcast %141 : vector<32x1xf32> to vector<32x32xf32>
    %143 = arith.mulf %133, %142 : vector<32x32xf32>
    %144 = vector.shape_cast %143 : vector<32x32xf32> to vector<2x16x32xf32>
    %145 = vector.broadcast %13 : vector<2x1x32xf32> to vector<2x16x32xf32>
    %146 = arith.mulf %145, %144 : vector<2x16x32xf32>
    %147 = vector.broadcast %14 : vector<2x1x32xf32> to vector<2x16x32xf32>
    %148 = arith.addf %146, %147 : vector<2x16x32xf32>
    %149 = vector.shape_cast %148 : vector<2x16x32xf32> to vector<32x32xf32>
    %c0_49 = arith.constant 0 : index
    %c0_50 = arith.constant 0 : index
    %c256 = arith.constant 256 : index
    %150 = vector.load %arg3[%c0_49, %c0_50, %c256] : memref<2x33x384xf32, #tpu.memory_space<vmem>>, vector<1x32x128xf32>
    %151 = vector.shape_cast %150 : vector<1x32x128xf32> to vector<32x128xf32>
    %c0_51 = arith.constant 0 : index
    %c32_52 = arith.constant 32 : index
    %c256_53 = arith.constant 256 : index
    %152 = vector.load %arg3[%c0_51, %c32_52, %c256_53] : memref<2x33x384xf32, #tpu.memory_space<vmem>>, vector<1x1x128xf32>
    %153 = vector.shape_cast %152 : vector<1x1x128xf32> to vector<1x128xf32>
    %cst_54 = arith.constant dense<0.000000e+00> : vector<32x128xf32>
    %154 = tpu.matmul %149, %151, %cst_54 {dimension_numbers = #tpu.dot_dimension_numbers<[1], [0], [0], [1], [0, 0, 1, 1], [], []>} : vector<32x32xf32>, vector<32x128xf32>, vector<32x128xf32> -> vector<32x128xf32>
    %155 = vector.broadcast %153 : vector<1x128xf32> to vector<32x128xf32>
    %156 = arith.addf %154, %155 : vector<32x128xf32>
    %157 = arith.mulf %156, %156 : vector<32x128xf32>
    %158 = arith.mulf %156, %157 : vector<32x128xf32>
    %cst_55 = arith.constant 4.471500e-02 : f32
    %159 = vector.broadcast %cst_55 : f32 to vector<32x128xf32>
    %160 = arith.mulf %159, %158 : vector<32x128xf32>
    %161 = arith.addf %156, %160 : vector<32x128xf32>
    %cst_56 = arith.constant 0.797884583 : f32
    %162 = vector.broadcast %cst_56 : f32 to vector<32x128xf32>
    %163 = arith.mulf %162, %161 : vector<32x128xf32>
    %164 = math.tanh %163 : vector<32x128xf32>
    %cst_57 = arith.constant 1.000000e+00 : f32
    %165 = vector.broadcast %cst_57 : f32 to vector<32x128xf32>
    %166 = arith.addf %165, %164 : vector<32x128xf32>
    %cst_58 = arith.constant 5.000000e-01 : f32
    %167 = vector.broadcast %cst_58 : f32 to vector<32x128xf32>
    %168 = arith.mulf %167, %166 : vector<32x128xf32>
    %169 = arith.mulf %156, %168 : vector<32x128xf32>
    %c0_59 = arith.constant 0 : index
    %c0_60 = arith.constant 0 : index
    %c0_61 = arith.constant 0 : index
    %170 = vector.load %arg4[%c0_59, %c0_60, %c0_61] : memref<2x129x32xf32, #tpu.memory_space<vmem>>, vector<1x128x32xf32>
    %171 = vector.shape_cast %170 : vector<1x128x32xf32> to vector<128x32xf32>
    %c0_62 = arith.constant 0 : index
    %c128_63 = arith.constant 128 : index
    %c0_64 = arith.constant 0 : index
    %172 = vector.load %arg4[%c0_62, %c128_63, %c0_64] : memref<2x129x32xf32, #tpu.memory_space<vmem>>, vector<1x1x32xf32>
    %173 = vector.shape_cast %172 : vector<1x1x32xf32> to vector<1x32xf32>
    %cst_65 = arith.constant dense<0.000000e+00> : vector<32x32xf32>
    %174 = tpu.matmul %169, %171, %cst_65 {dimension_numbers = #tpu.dot_dimension_numbers<[1], [0], [0], [1], [0, 0, 1, 1], [], []>} : vector<32x128xf32>, vector<128x32xf32>, vector<32x32xf32> -> vector<32x32xf32>
    %175 = vector.broadcast %173 : vector<1x32xf32> to vector<32x32xf32>
    %176 = arith.addf %174, %175 : vector<32x32xf32>
    %177 = vector.shape_cast %176 : vector<32x32xf32> to vector<2x16x32xf32>
    %178 = vector.broadcast %15 : vector<2x1x32xf32> to vector<2x16x32xf32>
    %179 = arith.mulf %178, %177 : vector<2x16x32xf32>
    %180 = vector.shape_cast %179 : vector<2x16x32xf32> to vector<32x32xf32>
    %181 = arith.addf %127, %180 : vector<32x32xf32>
    %182 = vector.extract_strided_slice %9 {offsets = [0, 6, 0], sizes = [2, 1, 32], strides = [1, 1, 1]} : vector<2x14x32xf32> to vector<2x1x32xf32>
    %183 = vector.extract_strided_slice %9 {offsets = [0, 7, 0], sizes = [2, 1, 32], strides = [1, 1, 1]} : vector<2x14x32xf32> to vector<2x1x32xf32>
    %184 = vector.extract_strided_slice %9 {offsets = [0, 8, 0], sizes = [2, 1, 32], strides = [1, 1, 1]} : vector<2x14x32xf32> to vector<2x1x32xf32>
    %185 = vector.extract_strided_slice %9 {offsets = [0, 9, 0], sizes = [2, 1, 32], strides = [1, 1, 1]} : vector<2x14x32xf32> to vector<2x1x32xf32>
    %186 = vector.extract_strided_slice %9 {offsets = [0, 10, 0], sizes = [2, 1, 32], strides = [1, 1, 1]} : vector<2x14x32xf32> to vector<2x1x32xf32>
    %187 = vector.extract_strided_slice %9 {offsets = [0, 11, 0], sizes = [2, 1, 32], strides = [1, 1, 1]} : vector<2x14x32xf32> to vector<2x1x32xf32>
    %cst_66 = arith.constant dense<0.000000e+00> : vector<32xf32>
    %188 = vector.multi_reduction <add>, %181, %cst_66 [1] : vector<32x32xf32> to vector<32xf32>
    %189 = vector.shape_cast %188 : vector<32xf32> to vector<32x1xf32>
    %cst_67 = arith.constant 3.200000e+01 : f32
    %190 = vector.broadcast %cst_67 : f32 to vector<32x1xf32>
    %191 = arith.divf %189, %190 : vector<32x1xf32>
    %192 = vector.broadcast %191 : vector<32x1xf32> to vector<32x32xf32>
    %193 = arith.subf %181, %192 : vector<32x32xf32>
    %194 = arith.mulf %193, %193 : vector<32x32xf32>
    %cst_68 = arith.constant dense<0.000000e+00> : vector<32xf32>
    %195 = vector.multi_reduction <add>, %194, %cst_68 [1] : vector<32x32xf32> to vector<32xf32>
    %196 = vector.shape_cast %195 : vector<32xf32> to vector<32x1xf32>
    %cst_69 = arith.constant 3.200000e+01 : f32
    %197 = vector.broadcast %cst_69 : f32 to vector<32x1xf32>
    %198 = arith.divf %196, %197 : vector<32x1xf32>
    %cst_70 = arith.constant 9.99999997E-7 : f32
    %199 = vector.broadcast %cst_70 : f32 to vector<32x1xf32>
    %200 = arith.addf %198, %199 : vector<32x1xf32>
    %201 = math.rsqrt %200 : vector<32x1xf32>
    %202 = vector.broadcast %201 : vector<32x1xf32> to vector<32x32xf32>
    %203 = arith.mulf %193, %202 : vector<32x32xf32>
    %204 = vector.shape_cast %203 : vector<32x32xf32> to vector<2x16x32xf32>
    %205 = vector.broadcast %182 : vector<2x1x32xf32> to vector<2x16x32xf32>
    %206 = arith.mulf %205, %204 : vector<2x16x32xf32>
    %207 = vector.broadcast %183 : vector<2x1x32xf32> to vector<2x16x32xf32>
    %208 = arith.addf %206, %207 : vector<2x16x32xf32>
    %209 = vector.shape_cast %208 : vector<2x16x32xf32> to vector<32x32xf32>
    %c1 = arith.constant 1 : index
    %c0_71 = arith.constant 0 : index
    %c0_72 = arith.constant 0 : index
    %210 = vector.load %arg3[%c1, %c0_71, %c0_72] : memref<2x33x384xf32, #tpu.memory_space<vmem>>, vector<1x32x96xf32>
    %211 = vector.shape_cast %210 : vector<1x32x96xf32> to vector<32x96xf32>
    %c1_73 = arith.constant 1 : index
    %c32_74 = arith.constant 32 : index
    %c0_75 = arith.constant 0 : index
    %212 = vector.load %arg3[%c1_73, %c32_74, %c0_75] : memref<2x33x384xf32, #tpu.memory_space<vmem>>, vector<1x1x96xf32>
    %213 = vector.shape_cast %212 : vector<1x1x96xf32> to vector<1x96xf32>
    %cst_76 = arith.constant dense<0.000000e+00> : vector<32x96xf32>
    %214 = tpu.matmul %209, %211, %cst_76 {dimension_numbers = #tpu.dot_dimension_numbers<[1], [0], [0], [1], [0, 0, 1, 1], [], []>} : vector<32x32xf32>, vector<32x96xf32>, vector<32x96xf32> -> vector<32x96xf32>
    %215 = vector.broadcast %213 : vector<1x96xf32> to vector<32x96xf32>
    %216 = arith.addf %214, %215 : vector<32x96xf32>
    %217 = vector.shape_cast %216 : vector<32x96xf32> to vector<2x16x96xf32>
    %218 = vector.extract_strided_slice %217 {offsets = [0, 0, 0], sizes = [2, 16, 8], strides = [1, 1, 1]} : vector<2x16x96xf32> to vector<2x16x8xf32>
    %219 = vector.extract_strided_slice %217 {offsets = [0, 0, 32], sizes = [2, 16, 8], strides = [1, 1, 1]} : vector<2x16x96xf32> to vector<2x16x8xf32>
    %220 = vector.extract_strided_slice %217 {offsets = [0, 0, 64], sizes = [2, 16, 8], strides = [1, 1, 1]} : vector<2x16x96xf32> to vector<2x16x8xf32>
    "tpu.trace_start"() <{level = 10 : i32, message = "bqd,bkd->bqk"}> : () -> ()
    %cst_77 = arith.constant dense<0.000000e+00> : vector<2x16x16xf32>
    %221 = tpu.matmul %218, %219, %cst_77 {dimension_numbers = #tpu.dot_dimension_numbers<[2], [2], [1], [1], [0, 0, 0, 1, 1, 1], [0], [0]>} : vector<2x16x8xf32>, vector<2x16x8xf32>, vector<2x16x16xf32> -> vector<2x16x16xf32>
    "tpu.trace_stop"() : () -> ()
    %cst_78 = arith.constant 0.353553385 : f32
    %222 = vector.broadcast %cst_78 : f32 to vector<2x16x16xf32>
    %223 = arith.mulf %221, %222 : vector<2x16x16xf32>
    %cst_79 = arith.constant dense<0xFF800000> : vector<2x16xf32>
    %224 = vector.multi_reduction <maximumf>, %223, %cst_79 [2] : vector<2x16x16xf32> to vector<2x16xf32>
    %225 = vector.shape_cast %224 : vector<2x16xf32> to vector<2x16x1xf32>
    %226 = vector.broadcast %225 : vector<2x16x1xf32> to vector<2x16x16xf32>
    %227 = arith.subf %223, %226 : vector<2x16x16xf32>
    %228 = math.exp %227 : vector<2x16x16xf32>
    %cst_80 = arith.constant dense<0.000000e+00> : vector<2x16xf32>
    %229 = vector.multi_reduction <add>, %228, %cst_80 [2] : vector<2x16x16xf32> to vector<2x16xf32>
    %230 = vector.shape_cast %229 : vector<2x16xf32> to vector<2x16x1xf32>
    %231 = tpu.reciprocal %230 {approx = true} : vector<2x16x1xf32> -> vector<2x16x1xf32>
    %232 = vector.broadcast %231 : vector<2x16x1xf32> to vector<2x16x16xf32>
    %233 = arith.mulf %228, %232 : vector<2x16x16xf32>
    "tpu.trace_start"() <{level = 10 : i32, message = "bqk,bkd->bqd"}> : () -> ()
    %cst_81 = arith.constant dense<0.000000e+00> : vector<2x16x8xf32>
    %234 = tpu.matmul %233, %220, %cst_81 {dimension_numbers = #tpu.dot_dimension_numbers<[2], [1], [1], [2], [0, 0, 0, 1, 1, 2], [0], [0]>} : vector<2x16x16xf32>, vector<2x16x8xf32>, vector<2x16x8xf32> -> vector<2x16x8xf32>
    "tpu.trace_stop"() : () -> ()
    %235 = vector.extract_strided_slice %217 {offsets = [0, 0, 8], sizes = [2, 16, 8], strides = [1, 1, 1]} : vector<2x16x96xf32> to vector<2x16x8xf32>
    %236 = vector.extract_strided_slice %217 {offsets = [0, 0, 40], sizes = [2, 16, 8], strides = [1, 1, 1]} : vector<2x16x96xf32> to vector<2x16x8xf32>
    %237 = vector.extract_strided_slice %217 {offsets = [0, 0, 72], sizes = [2, 16, 8], strides = [1, 1, 1]} : vector<2x16x96xf32> to vector<2x16x8xf32>
    "tpu.trace_start"() <{level = 10 : i32, message = "bqd,bkd->bqk"}> : () -> ()
    %cst_82 = arith.constant dense<0.000000e+00> : vector<2x16x16xf32>
    %238 = tpu.matmul %235, %236, %cst_82 {dimension_numbers = #tpu.dot_dimension_numbers<[2], [2], [1], [1], [0, 0, 0, 1, 1, 1], [0], [0]>} : vector<2x16x8xf32>, vector<2x16x8xf32>, vector<2x16x16xf32> -> vector<2x16x16xf32>
    "tpu.trace_stop"() : () -> ()
    %cst_83 = arith.constant 0.353553385 : f32
    %239 = vector.broadcast %cst_83 : f32 to vector<2x16x16xf32>
    %240 = arith.mulf %238, %239 : vector<2x16x16xf32>
    %cst_84 = arith.constant dense<0xFF800000> : vector<2x16xf32>
    %241 = vector.multi_reduction <maximumf>, %240, %cst_84 [2] : vector<2x16x16xf32> to vector<2x16xf32>
    %242 = vector.shape_cast %241 : vector<2x16xf32> to vector<2x16x1xf32>
    %243 = vector.broadcast %242 : vector<2x16x1xf32> to vector<2x16x16xf32>
    %244 = arith.subf %240, %243 : vector<2x16x16xf32>
    %245 = math.exp %244 : vector<2x16x16xf32>
    %cst_85 = arith.constant dense<0.000000e+00> : vector<2x16xf32>
    %246 = vector.multi_reduction <add>, %245, %cst_85 [2] : vector<2x16x16xf32> to vector<2x16xf32>
    %247 = vector.shape_cast %246 : vector<2x16xf32> to vector<2x16x1xf32>
    %248 = tpu.reciprocal %247 {approx = true} : vector<2x16x1xf32> -> vector<2x16x1xf32>
    %249 = vector.broadcast %248 : vector<2x16x1xf32> to vector<2x16x16xf32>
    %250 = arith.mulf %245, %249 : vector<2x16x16xf32>
    "tpu.trace_start"() <{level = 10 : i32, message = "bqk,bkd->bqd"}> : () -> ()
    %cst_86 = arith.constant dense<0.000000e+00> : vector<2x16x8xf32>
    %251 = tpu.matmul %250, %237, %cst_86 {dimension_numbers = #tpu.dot_dimension_numbers<[2], [1], [1], [2], [0, 0, 0, 1, 1, 2], [0], [0]>} : vector<2x16x16xf32>, vector<2x16x8xf32>, vector<2x16x8xf32> -> vector<2x16x8xf32>
    "tpu.trace_stop"() : () -> ()
    %252 = vector.extract_strided_slice %217 {offsets = [0, 0, 16], sizes = [2, 16, 8], strides = [1, 1, 1]} : vector<2x16x96xf32> to vector<2x16x8xf32>
    %253 = vector.extract_strided_slice %217 {offsets = [0, 0, 48], sizes = [2, 16, 8], strides = [1, 1, 1]} : vector<2x16x96xf32> to vector<2x16x8xf32>
    %254 = vector.extract_strided_slice %217 {offsets = [0, 0, 80], sizes = [2, 16, 8], strides = [1, 1, 1]} : vector<2x16x96xf32> to vector<2x16x8xf32>
    "tpu.trace_start"() <{level = 10 : i32, message = "bqd,bkd->bqk"}> : () -> ()
    %cst_87 = arith.constant dense<0.000000e+00> : vector<2x16x16xf32>
    %255 = tpu.matmul %252, %253, %cst_87 {dimension_numbers = #tpu.dot_dimension_numbers<[2], [2], [1], [1], [0, 0, 0, 1, 1, 1], [0], [0]>} : vector<2x16x8xf32>, vector<2x16x8xf32>, vector<2x16x16xf32> -> vector<2x16x16xf32>
    "tpu.trace_stop"() : () -> ()
    %cst_88 = arith.constant 0.353553385 : f32
    %256 = vector.broadcast %cst_88 : f32 to vector<2x16x16xf32>
    %257 = arith.mulf %255, %256 : vector<2x16x16xf32>
    %cst_89 = arith.constant dense<0xFF800000> : vector<2x16xf32>
    %258 = vector.multi_reduction <maximumf>, %257, %cst_89 [2] : vector<2x16x16xf32> to vector<2x16xf32>
    %259 = vector.shape_cast %258 : vector<2x16xf32> to vector<2x16x1xf32>
    %260 = vector.broadcast %259 : vector<2x16x1xf32> to vector<2x16x16xf32>
    %261 = arith.subf %257, %260 : vector<2x16x16xf32>
    %262 = math.exp %261 : vector<2x16x16xf32>
    %cst_90 = arith.constant dense<0.000000e+00> : vector<2x16xf32>
    %263 = vector.multi_reduction <add>, %262, %cst_90 [2] : vector<2x16x16xf32> to vector<2x16xf32>
    %264 = vector.shape_cast %263 : vector<2x16xf32> to vector<2x16x1xf32>
    %265 = tpu.reciprocal %264 {approx = true} : vector<2x16x1xf32> -> vector<2x16x1xf32>
    %266 = vector.broadcast %265 : vector<2x16x1xf32> to vector<2x16x16xf32>
    %267 = arith.mulf %262, %266 : vector<2x16x16xf32>
    "tpu.trace_start"() <{level = 10 : i32, message = "bqk,bkd->bqd"}> : () -> ()
    %cst_91 = arith.constant dense<0.000000e+00> : vector<2x16x8xf32>
    %268 = tpu.matmul %267, %254, %cst_91 {dimension_numbers = #tpu.dot_dimension_numbers<[2], [1], [1], [2], [0, 0, 0, 1, 1, 2], [0], [0]>} : vector<2x16x16xf32>, vector<2x16x8xf32>, vector<2x16x8xf32> -> vector<2x16x8xf32>
    "tpu.trace_stop"() : () -> ()
    %269 = vector.extract_strided_slice %217 {offsets = [0, 0, 24], sizes = [2, 16, 8], strides = [1, 1, 1]} : vector<2x16x96xf32> to vector<2x16x8xf32>
    %270 = vector.extract_strided_slice %217 {offsets = [0, 0, 56], sizes = [2, 16, 8], strides = [1, 1, 1]} : vector<2x16x96xf32> to vector<2x16x8xf32>
    %271 = vector.extract_strided_slice %217 {offsets = [0, 0, 88], sizes = [2, 16, 8], strides = [1, 1, 1]} : vector<2x16x96xf32> to vector<2x16x8xf32>
    "tpu.trace_start"() <{level = 10 : i32, message = "bqd,bkd->bqk"}> : () -> ()
    %cst_92 = arith.constant dense<0.000000e+00> : vector<2x16x16xf32>
    %272 = tpu.matmul %269, %270, %cst_92 {dimension_numbers = #tpu.dot_dimension_numbers<[2], [2], [1], [1], [0, 0, 0, 1, 1, 1], [0], [0]>} : vector<2x16x8xf32>, vector<2x16x8xf32>, vector<2x16x16xf32> -> vector<2x16x16xf32>
    "tpu.trace_stop"() : () -> ()
    %cst_93 = arith.constant 0.353553385 : f32
    %273 = vector.broadcast %cst_93 : f32 to vector<2x16x16xf32>
    %274 = arith.mulf %272, %273 : vector<2x16x16xf32>
    %cst_94 = arith.constant dense<0xFF800000> : vector<2x16xf32>
    %275 = vector.multi_reduction <maximumf>, %274, %cst_94 [2] : vector<2x16x16xf32> to vector<2x16xf32>
    %276 = vector.shape_cast %275 : vector<2x16xf32> to vector<2x16x1xf32>
    %277 = vector.broadcast %276 : vector<2x16x1xf32> to vector<2x16x16xf32>
    %278 = arith.subf %274, %277 : vector<2x16x16xf32>
    %279 = math.exp %278 : vector<2x16x16xf32>
    %cst_95 = arith.constant dense<0.000000e+00> : vector<2x16xf32>
    %280 = vector.multi_reduction <add>, %279, %cst_95 [2] : vector<2x16x16xf32> to vector<2x16xf32>
    %281 = vector.shape_cast %280 : vector<2x16xf32> to vector<2x16x1xf32>
    %282 = tpu.reciprocal %281 {approx = true} : vector<2x16x1xf32> -> vector<2x16x1xf32>
    %283 = vector.broadcast %282 : vector<2x16x1xf32> to vector<2x16x16xf32>
    %284 = arith.mulf %279, %283 : vector<2x16x16xf32>
    "tpu.trace_start"() <{level = 10 : i32, message = "bqk,bkd->bqd"}> : () -> ()
    %cst_96 = arith.constant dense<0.000000e+00> : vector<2x16x8xf32>
    %285 = tpu.matmul %284, %271, %cst_96 {dimension_numbers = #tpu.dot_dimension_numbers<[2], [1], [1], [2], [0, 0, 0, 1, 1, 2], [0], [0]>} : vector<2x16x16xf32>, vector<2x16x8xf32>, vector<2x16x8xf32> -> vector<2x16x8xf32>
    "tpu.trace_stop"() : () -> ()
    %286 = tpu.concatenate %234, %251, %268, %285 in 2 : vector<2x16x8xf32>, vector<2x16x8xf32>, vector<2x16x8xf32>, vector<2x16x8xf32> -> vector<2x16x32xf32>
    %287 = vector.shape_cast %286 : vector<2x16x32xf32> to vector<32x32xf32>
    %c1_97 = arith.constant 1 : index
    %c0_98 = arith.constant 0 : index
    %c128_99 = arith.constant 128 : index
    %288 = vector.load %arg3[%c1_97, %c0_98, %c128_99] : memref<2x33x384xf32, #tpu.memory_space<vmem>>, vector<1x32x32xf32>
    %289 = vector.shape_cast %288 : vector<1x32x32xf32> to vector<32x32xf32>
    %c1_100 = arith.constant 1 : index
    %c32_101 = arith.constant 32 : index
    %c128_102 = arith.constant 128 : index
    %290 = vector.load %arg3[%c1_100, %c32_101, %c128_102] : memref<2x33x384xf32, #tpu.memory_space<vmem>>, vector<1x1x32xf32>
    %291 = vector.shape_cast %290 : vector<1x1x32xf32> to vector<1x32xf32>
    %cst_103 = arith.constant dense<0.000000e+00> : vector<32x32xf32>
    %292 = tpu.matmul %287, %289, %cst_103 {dimension_numbers = #tpu.dot_dimension_numbers<[1], [0], [0], [1], [0, 0, 1, 1], [], []>} : vector<32x32xf32>, vector<32x32xf32>, vector<32x32xf32> -> vector<32x32xf32>
    %293 = vector.broadcast %291 : vector<1x32xf32> to vector<32x32xf32>
    %294 = arith.addf %292, %293 : vector<32x32xf32>
    %295 = vector.shape_cast %294 : vector<32x32xf32> to vector<2x16x32xf32>
    %296 = vector.broadcast %184 : vector<2x1x32xf32> to vector<2x16x32xf32>
    %297 = arith.mulf %296, %295 : vector<2x16x32xf32>
    %298 = vector.shape_cast %297 : vector<2x16x32xf32> to vector<32x32xf32>
    %299 = arith.addf %181, %298 : vector<32x32xf32>
    %cst_104 = arith.constant dense<0.000000e+00> : vector<32xf32>
    %300 = vector.multi_reduction <add>, %299, %cst_104 [1] : vector<32x32xf32> to vector<32xf32>
    %301 = vector.shape_cast %300 : vector<32xf32> to vector<32x1xf32>
    %cst_105 = arith.constant 3.200000e+01 : f32
    %302 = vector.broadcast %cst_105 : f32 to vector<32x1xf32>
    %303 = arith.divf %301, %302 : vector<32x1xf32>
    %304 = vector.broadcast %303 : vector<32x1xf32> to vector<32x32xf32>
    %305 = arith.subf %299, %304 : vector<32x32xf32>
    %306 = arith.mulf %305, %305 : vector<32x32xf32>
    %cst_106 = arith.constant dense<0.000000e+00> : vector<32xf32>
    %307 = vector.multi_reduction <add>, %306, %cst_106 [1] : vector<32x32xf32> to vector<32xf32>
    %308 = vector.shape_cast %307 : vector<32xf32> to vector<32x1xf32>
    %cst_107 = arith.constant 3.200000e+01 : f32
    %309 = vector.broadcast %cst_107 : f32 to vector<32x1xf32>
    %310 = arith.divf %308, %309 : vector<32x1xf32>
    %cst_108 = arith.constant 9.99999997E-7 : f32
    %311 = vector.broadcast %cst_108 : f32 to vector<32x1xf32>
    %312 = arith.addf %310, %311 : vector<32x1xf32>
    %313 = math.rsqrt %312 : vector<32x1xf32>
    %314 = vector.broadcast %313 : vector<32x1xf32> to vector<32x32xf32>
    %315 = arith.mulf %305, %314 : vector<32x32xf32>
    %316 = vector.shape_cast %315 : vector<32x32xf32> to vector<2x16x32xf32>
    %317 = vector.broadcast %185 : vector<2x1x32xf32> to vector<2x16x32xf32>
    %318 = arith.mulf %317, %316 : vector<2x16x32xf32>
    %319 = vector.broadcast %186 : vector<2x1x32xf32> to vector<2x16x32xf32>
    %320 = arith.addf %318, %319 : vector<2x16x32xf32>
    %321 = vector.shape_cast %320 : vector<2x16x32xf32> to vector<32x32xf32>
    %c1_109 = arith.constant 1 : index
    %c0_110 = arith.constant 0 : index
    %c256_111 = arith.constant 256 : index
    %322 = vector.load %arg3[%c1_109, %c0_110, %c256_111] : memref<2x33x384xf32, #tpu.memory_space<vmem>>, vector<1x32x128xf32>
    %323 = vector.shape_cast %322 : vector<1x32x128xf32> to vector<32x128xf32>
    %c1_112 = arith.constant 1 : index
    %c32_113 = arith.constant 32 : index
    %c256_114 = arith.constant 256 : index
    %324 = vector.load %arg3[%c1_112, %c32_113, %c256_114] : memref<2x33x384xf32, #tpu.memory_space<vmem>>, vector<1x1x128xf32>
    %325 = vector.shape_cast %324 : vector<1x1x128xf32> to vector<1x128xf32>
    %cst_115 = arith.constant dense<0.000000e+00> : vector<32x128xf32>
    %326 = tpu.matmul %321, %323, %cst_115 {dimension_numbers = #tpu.dot_dimension_numbers<[1], [0], [0], [1], [0, 0, 1, 1], [], []>} : vector<32x32xf32>, vector<32x128xf32>, vector<32x128xf32> -> vector<32x128xf32>
    %327 = vector.broadcast %325 : vector<1x128xf32> to vector<32x128xf32>
    %328 = arith.addf %326, %327 : vector<32x128xf32>
    %329 = arith.mulf %328, %328 : vector<32x128xf32>
    %330 = arith.mulf %328, %329 : vector<32x128xf32>
    %cst_116 = arith.constant 4.471500e-02 : f32
    %331 = vector.broadcast %cst_116 : f32 to vector<32x128xf32>
    %332 = arith.mulf %331, %330 : vector<32x128xf32>
    %333 = arith.addf %328, %332 : vector<32x128xf32>
    %cst_117 = arith.constant 0.797884583 : f32
    %334 = vector.broadcast %cst_117 : f32 to vector<32x128xf32>
    %335 = arith.mulf %334, %333 : vector<32x128xf32>
    %336 = math.tanh %335 : vector<32x128xf32>
    %cst_118 = arith.constant 1.000000e+00 : f32
    %337 = vector.broadcast %cst_118 : f32 to vector<32x128xf32>
    %338 = arith.addf %337, %336 : vector<32x128xf32>
    %cst_119 = arith.constant 5.000000e-01 : f32
    %339 = vector.broadcast %cst_119 : f32 to vector<32x128xf32>
    %340 = arith.mulf %339, %338 : vector<32x128xf32>
    %341 = arith.mulf %328, %340 : vector<32x128xf32>
    %c1_120 = arith.constant 1 : index
    %c0_121 = arith.constant 0 : index
    %c0_122 = arith.constant 0 : index
    %342 = vector.load %arg4[%c1_120, %c0_121, %c0_122] : memref<2x129x32xf32, #tpu.memory_space<vmem>>, vector<1x128x32xf32>
    %343 = vector.shape_cast %342 : vector<1x128x32xf32> to vector<128x32xf32>
    %c1_123 = arith.constant 1 : index
    %c128_124 = arith.constant 128 : index
    %c0_125 = arith.constant 0 : index
    %344 = vector.load %arg4[%c1_123, %c128_124, %c0_125] : memref<2x129x32xf32, #tpu.memory_space<vmem>>, vector<1x1x32xf32>
    %345 = vector.shape_cast %344 : vector<1x1x32xf32> to vector<1x32xf32>
    %cst_126 = arith.constant dense<0.000000e+00> : vector<32x32xf32>
    %346 = tpu.matmul %341, %343, %cst_126 {dimension_numbers = #tpu.dot_dimension_numbers<[1], [0], [0], [1], [0, 0, 1, 1], [], []>} : vector<32x128xf32>, vector<128x32xf32>, vector<32x32xf32> -> vector<32x32xf32>
    %347 = vector.broadcast %345 : vector<1x32xf32> to vector<32x32xf32>
    %348 = arith.addf %346, %347 : vector<32x32xf32>
    %349 = vector.shape_cast %348 : vector<32x32xf32> to vector<2x16x32xf32>
    %350 = vector.broadcast %187 : vector<2x1x32xf32> to vector<2x16x32xf32>
    %351 = arith.mulf %350, %349 : vector<2x16x32xf32>
    %352 = vector.shape_cast %351 : vector<2x16x32xf32> to vector<32x32xf32>
    %353 = arith.addf %299, %352 : vector<32x32xf32>
    %354 = vector.extract_strided_slice %9 {offsets = [0, 12, 0], sizes = [2, 1, 32], strides = [1, 1, 1]} : vector<2x14x32xf32> to vector<2x1x32xf32>
    %355 = vector.extract_strided_slice %9 {offsets = [0, 13, 0], sizes = [2, 1, 32], strides = [1, 1, 1]} : vector<2x14x32xf32> to vector<2x1x32xf32>
    %cst_127 = arith.constant dense<0.000000e+00> : vector<32xf32>
    %356 = vector.multi_reduction <add>, %353, %cst_127 [1] : vector<32x32xf32> to vector<32xf32>
    %357 = vector.shape_cast %356 : vector<32xf32> to vector<32x1xf32>
    %cst_128 = arith.constant 3.200000e+01 : f32
    %358 = vector.broadcast %cst_128 : f32 to vector<32x1xf32>
    %359 = arith.divf %357, %358 : vector<32x1xf32>
    %360 = vector.broadcast %359 : vector<32x1xf32> to vector<32x32xf32>
    %361 = arith.subf %353, %360 : vector<32x32xf32>
    %362 = arith.mulf %361, %361 : vector<32x32xf32>
    %cst_129 = arith.constant dense<0.000000e+00> : vector<32xf32>
    %363 = vector.multi_reduction <add>, %362, %cst_129 [1] : vector<32x32xf32> to vector<32xf32>
    %364 = vector.shape_cast %363 : vector<32xf32> to vector<32x1xf32>
    %cst_130 = arith.constant 3.200000e+01 : f32
    %365 = vector.broadcast %cst_130 : f32 to vector<32x1xf32>
    %366 = arith.divf %364, %365 : vector<32x1xf32>
    %cst_131 = arith.constant 9.99999997E-7 : f32
    %367 = vector.broadcast %cst_131 : f32 to vector<32x1xf32>
    %368 = arith.addf %366, %367 : vector<32x1xf32>
    %369 = math.rsqrt %368 : vector<32x1xf32>
    %370 = vector.broadcast %369 : vector<32x1xf32> to vector<32x32xf32>
    %371 = arith.mulf %361, %370 : vector<32x32xf32>
    %372 = vector.shape_cast %371 : vector<32x32xf32> to vector<2x16x32xf32>
    %373 = vector.broadcast %354 : vector<2x1x32xf32> to vector<2x16x32xf32>
    %374 = arith.mulf %373, %372 : vector<2x16x32xf32>
    %375 = vector.broadcast %355 : vector<2x1x32xf32> to vector<2x16x32xf32>
    %376 = arith.addf %374, %375 : vector<2x16x32xf32>
    %377 = vector.shape_cast %376 : vector<2x16x32xf32> to vector<32x32xf32>
    %c0_132 = arith.constant 0 : index
    %c0_133 = arith.constant 0 : index
    %378 = vector.load %arg5[%c0_132, %c0_133] : memref<33x128xf32, #tpu.memory_space<vmem>>, vector<32x128xf32>
    %c32_134 = arith.constant 32 : index
    %c0_135 = arith.constant 0 : index
    %379 = vector.load %arg5[%c32_134, %c0_135] : memref<33x128xf32, #tpu.memory_space<vmem>>, vector<1x128xf32>
    %cst_136 = arith.constant dense<0.000000e+00> : vector<32x128xf32>
    %380 = tpu.matmul %377, %378, %cst_136 {dimension_numbers = #tpu.dot_dimension_numbers<[1], [0], [0], [1], [0, 0, 1, 1], [], []>} : vector<32x32xf32>, vector<32x128xf32>, vector<32x128xf32> -> vector<32x128xf32>
    %381 = vector.broadcast %379 : vector<1x128xf32> to vector<32x128xf32>
    %382 = arith.addf %380, %381 : vector<32x128xf32>
    %c0_137 = arith.constant 0 : index
    %c0_138 = arith.constant 0 : index
    %383 = vector.load %arg6[%c0_137, %c0_138] : memref<32x128xf32, #tpu.memory_space<vmem>>, vector<32x128xf32>
    tpu.vector_store %arg6[%c0_137, %c0_138], %382 {strides = array<i32>} : memref<32x128xf32, #tpu.memory_space<vmem>>, vector<32x128xf32>,
    return
  }
}

</mosaic_0001>

<bundles_post_ra>
// kernel: ncst_forward.1
= control target key start
LH: loop header
LB: loop body
LE: loop exit
PB: predicated region body
PF: predicated region fallthrough
CT: control target
= control target key end

     0   :  { %vm35_vm0 = vcmask 392192   ;;  %vm141_vm1 = vcmask 261120   ;;  %v195_v55 = vlaneseq  ;;  %vm327_vm2 = vcmask 64512   ;;  %s6411_s9 = smov 96   ;;  %s6412_s10 = smov 64   ;;  %s7421_s1 = inlined_call_operand.vmem [shape: f32[64,32], index: 1, kind: input, shape index: {}]   ;;  %s7422_s0 = inlined_call_operand.vmem [shape: f32[32,48], index: 0, kind: input, shape index: {}]   ;;  %s7423_s3 = inlined_call_operand.vmem [shape: f32[2,33,384], index: 3, kind: input, shape index: {}]   ;;  %s7424_s2 = inlined_call_operand.vmem [shape: f32[2,14,32], index: 2, kind: input, shape index: {}]   ;;  %s7425_s4 = inlined_call_operand.vmem [shape: f32[2,129,32], index: 4, kind: input, shape index: {}]   ;;  %s7426_s5 = inlined_call_operand.vmem [shape: f32[33,128], index: 5, kind: input, shape index: {}]   ;;  %s7427_s6 = inlined_call_operand.vmem [shape: f32[32,128], index: 6, kind: output, shape index: {}]  }
   0x1   :  { %v23_v0 = vld [vmem:[%s7421_s1] sm:$0xff]  ;;  %v24_v1 = vld [vmem:[%s7421_s1 + $0x8] sm:$0xff]  ;;  %v25_v2 = vld [vmem:[%s7421_s1 + $0x10] sm:$0xff]  ;;  %vm504_vm4 = vcmask 130048   ;;  %s6413_s11 = smov 88   ;;  %s6414_s12 = smov 120  }
   0x2   :  { %v5759_v3 = vpack.c.bf16 %v24_v1, %v23_v0  ;;  %v26_v4 = vld [vmem:[%s7421_s1 + $0x18] sm:$0xff]  ;;  %v27_v6 = vld [vmem:[%s7421_s1 + $0x20] sm:$0xff]  ;;  %v28_v7 = vld [vmem:[%s7421_s1 + $0x28] sm:$0xff]  ;;  %v6536_v61 = vshrl.u32 %v195_v55, 7  ;;  %s6415_s13 = smov 56   ;;  %s6416_s14 = smov 80  }
   0x3   :  { %v5763_v5 = vpack.c.bf16 %v26_v4, %v25_v2  ;;  %v31_v8 = vld [vmem:[%s7422_s0] sm:$0xff]  ;;  %v5767_v9 = vpack.c.bf16 %v28_v7, %v27_v6  ;;  %v32_v10 = vld [vmem:[%s7422_s0 + $0x8] sm:$0xff]  ;;  %v33_v11 = vld [vmem:[%s7422_s0 + $0x10] sm:$0xff]  ;;  %s6417_s15 = smov 112   ;;  %s6418_s16 = smov 48   ;;  %vm1991_vm5 = vcmask 195584  }
   0x4   :  { %5760 = vmatprep.subr.bf16.mxu0 %v5759_v3  ;;  %5355 = vmatprep.mubr.msk.f32.mxu0 %vm35_vm0, %v31_v8  ;;  %v34_v12 = vld [vmem:[%s7422_s0 + $0x18] sm:$0xff]  ;;  %v29_v13 = vld [vmem:[%s7421_s1 + $0x30] sm:$0xff]  ;;  %v219_v47 = vld [vmem:[%s7423_s3] sm:$0xff]  ;;  %v6539_v2 = vsub.s32 0, %v6536_v61  ;;  %s6419_s17 = smov 72   ;;  %s6420_s18 = smov 104  }
   0x5   :  { %5762 = vmatpush3.bf16.msra.mxu0 %v5759_v3  ;;  %v30_v15 = vld [vmem:[%s7421_s1 + $0x38] sm:$0xff]  ;;  %v221_v50 = vld [vmem:[%s7423_s3 + $0x30] sm:$0xff]  ;;  %v222_v51 = vld [vmem:[%s7423_s3 + $0x48] sm:$0xff]  ;;  %s6421_s19 = smov 40   ;;  %s6422_s20 = smov 8  }
   0x6   :  { %5764 = vmatprep.subr.bf16.mxu0 %v5763_v5  ;;  %v220_v48 = vld [vmem:[%s7423_s3 + $0x18] sm:$0xff]  ;;  %v5775_v52 = vpack.c.bf16 %v222_v51, %v221_v50  ;;  %v137_v4 = vld [vmem:[%s7424_s2] sm:$0xff]  ;;  %v139_v8 = vld [vmem:[%s7424_s2 + $0x10] sm:$0xff]  ;;  %s6423_s0 = smov 16   ;;  %s6424_s28 = smov 24  }
   0x7   :  { %v5771_v49 = vpack.c.bf16 %v220_v48, %v219_v47  ;;  %v198_v6 = vrot.slane %v137_v4, %v6539_v2  ;;  %vm6587_vm3 = vmpackc.low %vm327_vm2, %vm327_vm2 }
   0x9   :  { %5766 = vmatpush3.bf16.msra.mxu0 %v5763_v5  ;;  %v6545_v5 = vsub.s32 1, %v6536_v61 }
   0xa   :  { %5768 = vmatprep.subr.bf16.mxu0 %v5767_v9 }
   0xd   :  { %5770 = vmatpush3.bf16.msra.mxu0 %v5767_v9 }
   0xe   :  { %5772 = vmatprep.subr.bf16.mxu0 %v5771_v49 }
  0x10   :  { %5356 = vmatmul.mubr.msk.f32.vlgmr.msra.gmra.mrb[0].mxu0 %vm35_vm0, %v32_v10  ;;  %v210_v10 = vrot.slane %v137_v4, %v6545_v5 }
  0x11   :  { %5358 = vmatprep.mubr.msk.f32.mxu0 %vm35_vm0, %v33_v11  ;;  %5774 = vmatpush3.bf16.msra.mxu0 %v5771_v49 }
  0x12   :  { %5776 = vmatprep.subr.bf16.mxu0 %v5775_v52 }
  0x14   :  { %5359 = vmatmul.mubr.msk.f32.gmra.mrb[2].mxu0 %vm35_vm0, %v34_v12  ;;  %v202_v12 = vrot.slane %v139_v8, %v6539_v2 }
  0x15   :  { %5778 = vmatpush3.bf16.msra.mxu0 %v5775_v52 }
  0xe3   :  { %v5357_v14 = vpop.f32.mrb[0].mxu0 }
  0xe4   :  { %v114_v16 = vpop.f32.mrb[1].mxu0  ;;  %v6502_v18 = vadd.f32 %v5357_v14, %v30_v15 }
  0xe5   :  { %v6500_v17 = vadd.f32 %v114_v16, %v29_v13 }
  0xe6   :  { %v145_v24 = vsel %vm141_vm1, %v6502_v18, 0.0 }
  0xe7   :  { %v5360_v19 = vpop.f32.mrb[2].mxu0  ;;  %v142_v20 = vsel %vm141_vm1, %v6500_v17, 0.0 }
  0xe8   :  { %143 = vadd.xlane.f32.xlu0 %v142_v20  ;;  %v124_v21 = vpop.f32.mrb[3].mxu0  ;;  %v6508_v23 = vadd.f32 %v5360_v19, %v30_v15  ;;  %v214_v19 = vrot.slane %v139_v8, %v6545_v5 }
  0xe9   :  { %v6506_v22 = vadd.f32 %v124_v21, %v29_v13 }
  0xea   :  { %v151_v26 = vsel %vm141_vm1, %v6508_v23, 0.0 }
  0xeb   :  { %v148_v25 = vsel %vm141_vm1, %v6506_v22, 0.0 }
  0xec   :  { %146 = vadd.xlane.f32.xlu0 %v145_v24  ;;  %149 = vadd.xlane.f32.xlu1 %v148_v25 }
  0xf0   :  { %152 = vadd.xlane.f32.xlu1 %v151_v26 }
 0x175   :  { %v144_v27 = vpop.xlane.xlu0 %143 }
 0x176   :  { %v155_v28 = vmul.f32 0.03125, %v144_v27 }
 0x178   :  { %v159_v29 = vsub.f32 %v6500_v17, %v155_v28 }
 0x179   :  { %v147_v30 = vpop.xlane.xlu0 %146  ;;  %v150_v31 = vpop.xlane.xlu1 %149 }
 0x17a   :  { %v156_v32 = vmul.f32 0.03125, %v147_v30  ;;  %v157_v33 = vmul.f32 0.03125, %v150_v31  ;;  %v163_v34 = vmul.f32 %v159_v29, %v159_v29  ;;  %v223_v31 = vld [vmem:[%s7423_s3 + $0x60] ss:$0 sm:$0xff] }
 0x17c   :  { %v160_v35 = vsub.f32 %v6502_v18, %v156_v32  ;;  %v161_v36 = vsub.f32 %v6506_v22, %v157_v33  ;;  %v167_v37 = vsel %vm141_vm1, %v163_v34, 0.0 }
 0x17d   :  { %168 = vadd.xlane.f32.xlu0 %v167_v37  ;;  %v153_v38 = vpop.xlane.xlu1 %152 }
 0x17e   :  { %v158_v39 = vmul.f32 0.03125, %v153_v38  ;;  %v164_v40 = vmul.f32 %v160_v35, %v160_v35  ;;  %v165_v41 = vmul.f32 %v161_v36, %v161_v36 }
 0x180   :  { %v162_v42 = vsub.f32 %v6508_v23, %v158_v39  ;;  %v170_v43 = vsel %vm141_vm1, %v164_v40, 0.0  ;;  %v173_v44 = vsel %vm141_vm1, %v165_v41, 0.0 }
 0x181   :  { %171 = vadd.xlane.f32.xlu1 %v170_v43  ;;  %174 = vadd.xlane.f32.xlu0 %v173_v44 }
 0x182   :  { %v166_v45 = vmul.f32 %v162_v42, %v162_v42 }
 0x184   :  { %v176_v46 = vsel %vm141_vm1, %v166_v45, 0.0 }
 0x185   :  { %177 = vadd.xlane.f32.xlu1 %v176_v46 }
 0x20a   :  { %v169_v53 = vpop.xlane.xlu0 %168 }
 0x20b   :  { %v179_v54 = vmul.f32 0.03125, %v169_v53 }
 0x20d   :  { %v183_v56 = vadd.f32 1e-06, %v179_v54 }
 0x20e   :  { %v175_v57 = vpop.xlane.xlu0 %174  ;;  %v172_v58 = vpop.xlane.xlu1 %171 }
 0x20f   :  { %6225 = vrsqrt.f32 %v183_v56  ;;  %v181_v59 = vmul.f32 0.03125, %v175_v57  ;;  %v180_v60 = vmul.f32 0.03125, %v172_v58 }
 0x211   :  { %v185_v62 = vadd.f32 1e-06, %v181_v59  ;;  %v184_v63 = vadd.f32 1e-06, %v180_v60 }
 0x212   :  { %v178_v0 = vpop.xlane.xlu1 %177 }
 0x213   :  { %6227 = vrsqrt.f32 %v185_v62  ;;  %v182_v1 = vmul.f32 0.03125, %v178_v0 }
 0x214   :  { %6229 = vrsqrt.f32 %v184_v63 }
 0x215   :  { %v186_v3 = vadd.f32 1e-06, %v182_v1 }
 0x217   :  { %6231 = vrsqrt.f32 %v186_v3 }
 0x219   :  { %v6226_v7 = vpop.eup %6225 }
 0x21a   :  { %v191_v9 = vmul.f32 %v6226_v7, %v159_v29 }
 0x21c   :  { %v203_v11 = vmul.f32 %v198_v6, %v191_v9 }
 0x21d   :  { %v6228_v13 = vpop.eup %6227 }
 0x21e   :  { %v6230_v14 = vpop.eup %6229  ;;  %v215_v15 = vadd.f32 %v210_v10, %v203_v11  ;;  %v193_v16 = vmul.f32 %v6228_v13, %v161_v36 }
 0x21f   :  { %v192_v20 = vmul.f32 %v6230_v14, %v160_v35 }
 0x220   :  { %5369 = vmatprep.mubr.msk.f32.mxu0 %vm141_vm1, %v215_v15  ;;  %v205_v21 = vmul.f32 %v202_v12, %v193_v16 }
 0x221   :  { %v6232_v24 = vpop.eup %6231  ;;  %v204_v25 = vmul.f32 %v198_v6, %v192_v20 }
 0x222   :  { %v217_v26 = vadd.f32 %v214_v19, %v205_v21  ;;  %v194_v27 = vmul.f32 %v6232_v24, %v162_v42 }
 0x223   :  { %v216_v28 = vadd.f32 %v210_v10, %v204_v25 }
 0x224   :  { %v206_v29 = vmul.f32 %v202_v12, %v194_v27 }
 0x225   :  { %5370 = vmatmul.mubr.msk.f32.vlgmr.msra.gmra.mrb[4].mxu0 %vm141_vm1, %v216_v28 }
 0x226   :  { %5372 = vmatprep.mubr.msk.f32.mxu0 %vm141_vm1, %v217_v26  ;;  %v218_v30 = vadd.f32 %v214_v19, %v206_v29 }
 0x229   :  { %5373 = vmatmul.mubr.msk.f32.gmra.mrb[6].mxu0 %vm141_vm1, %v218_v30 }
 0x2f8   :  { %v5371_v32 = vpop.f32.mrb[4].mxu0 }
 0x2f9   :  { %v6561_v33 = vadd.f32 %v5371_v32, %v223_v31  ;;  %v302_v34 = vpop.f32.mrb[5].mxu0 }
 0x2fa   :  { %v6563_v35 = vadd.f32 %v302_v34, %v223_v31 }
 0x2fc   :  { %v5374_v36 = vpop.f32.mrb[6].mxu0  ;;  %5379 = vmatprep.mubr.msk.f32.mxu1 %vm327_vm2, %v6563_v35  ;;  %v6569_v37 = vpack.i.bf16 %v6561_v33, %v6563_v35 }
 0x2fd   :  { %v6571_v38 = vadd.f32 %v5374_v36, %v223_v31  ;;  %v312_v39 = vpop.f32.mrb[7].mxu0 }
 0x2fe   :  { %v6573_v40 = vadd.f32 %v312_v39, %v223_v31  ;;  %6066 = vrot.lane.b32.xlu0 %v6569_v37, %s6411_s9 }
 0x300   :  { %5386 = vmatprep.mubr.msk.f32.mxu0 %vm327_vm2, %v6573_v40  ;;  %v6581_v41 = vpack.i.bf16 %v6571_v38, %v6573_v40 }
 0x302   :  { %6071 = vrot.lane.b32.xlu1 %v6581_v41, %s6411_s9 }
 0x370   :  { %v6067_v42 = vpop.permute.xlu0 %6066 }
 0x371   :  { %v6069_v43 = vunpack.i.h.bf16 %v6067_v42  ;;  %v6068_v44 = vunpack.i.l.bf16 %v6067_v42 }
 0x373   :  { %v5779_v46 = vpack.c.bf16 %v6069_v43, %v6068_v44 }
 0x374   :  { %v6072_v47 = vpop.permute.xlu1 %6071 }
 0x375   :  { %v6074_v48 = vunpack.i.h.bf16 %v6072_v47  ;;  %v6073_v49 = vunpack.i.l.bf16 %v6072_v47  ;;  %5781 = vmatprep.subr.msk.bf16.mxu1 %vm6587_vm3, %v5779_v46 }
 0x376   :  { %5784 = vmatpush3.bf16.xpose.msk.msra.mxu1 %vm6587_vm3, %v5779_v46 }
 0x377   :  { %v5785_v50 = vpack.c.bf16 %v6074_v48, %v6073_v49 }
 0x379   :  { %5787 = vmatprep.subr.msk.bf16.mxu0 %vm6587_vm3, %v5785_v50 }
 0x37a   :  { %5790 = vmatpush3.bf16.xpose.msk.msra.mxu0 %vm6587_vm3, %v5785_v50 }
 0x37d   :  { %5380 = vmatmul.mubr.msk.f32.vlgmr.msra.gmra.mrb[0].mxu1 %vm327_vm2, %v6561_v33 }
 0x381   :  { %5387 = vmatmul.mubr.msk.f32.vlgmr.msra.gmra.mrb[8].mxu0 %vm327_vm2, %v6571_v38 }
 0x450   :  { %v5381_v51 = vpop.f32.mrb[0].mxu1 }
 0x451   :  { %v501_v52 = vmul.f32 0.35355338, %v5381_v51  ;;  %v402_v53 = vpop.f32.mrb[1].mxu1 }
 0x452   :  { %v500_v54 = vmul.f32 0.35355338, %v402_v53 }
 0x453   :  { %v508_v55 = vsel %vm504_vm4, %v501_v52, -inf }
 0x454   :  { %509 = vmax.xlane.f32.xlu0 %v508_v55  ;;  %v5388_v56 = vpop.f32.mrb[8].mxu0  ;;  %v505_v57 = vsel %vm504_vm4, %v500_v54, -inf }
 0x455   :  { %v503_v58 = vmul.f32 0.35355338, %v5388_v56  ;;  %506 = vmax.xlane.f32.xlu1 %v505_v57  ;;  %v491_v59 = vpop.f32.mrb[9].mxu0 }
 0x456   :  { %v502_v60 = vmul.f32 0.35355338, %v491_v59 }
 0x457   :  { %v514_v62 = vsel %vm504_vm4, %v503_v58, -inf }
 0x458   :  { %v511_v63 = vsel %vm504_vm4, %v502_v60, -inf }
 0x459   :  { %515 = vmax.xlane.f32.xlu1 %v514_v62  ;;  %512 = vmax.xlane.f32.xlu0 %v511_v63 }
 0x46a   :  { %6081 = vrot.lane.b32.xlu1 %v6581_v41, %s6412_s10 }
 0x46e   :  { %6086 = vrot.lane.b32.xlu1 %v6569_v37, %s6413_s11 }
 0x46f   :  { %6076 = vrot.lane.b32.xlu0 %v6569_v37, %s6412_s10 }
 0x472   :  { %723 = vrot.lane.b32.xlu1 %v6563_v35, %s6414_s12 }
 0x4e1   :  { %v510_v0 = vpop.xlane.xlu0 %509 }
 0x4e2   :  { %v518_v1 = vsub.f32 %v501_v52, %v510_v0  ;;  %v507_v3 = vpop.xlane.xlu1 %506 }
 0x4e3   :  { %v517_v4 = vsub.f32 %v500_v54, %v507_v3 }
 0x4e4   :  { %v523_v6 = vmul.f32 1.442695, %v518_v1 }
 0x4e5   :  { %v521_v7 = vmul.f32 1.442695, %v517_v4 }
 0x4e6   :  { %6233 = vpow2.f32 %v523_v6  ;;  %v516_v8 = vpop.xlane.xlu1 %515  ;;  %v513_v9 = vpop.xlane.xlu0 %512 }
 0x4e7   :  { %6235 = vpow2.f32 %v521_v7  ;;  %v520_v10 = vsub.f32 %v503_v58, %v516_v8  ;;  %v519_v11 = vsub.f32 %v502_v60, %v513_v9 }
 0x4e9   :  { %v527_v12 = vmul.f32 1.442695, %v520_v10  ;;  %v525_v13 = vmul.f32 1.442695, %v519_v11 }
 0x4ea   :  { %v6082_v14 = vpop.permute.xlu1 %6081  ;;  %v6077_v15 = vpop.permute.xlu0 %6076 }
 0x4eb   :  { %6237 = vpow2.f32 %v527_v12  ;;  %v6084_v16 = vunpack.i.h.bf16 %v6082_v14  ;;  %v6083_v19 = vunpack.i.l.bf16 %v6082_v14  ;;  %v6079_v20 = vunpack.i.h.bf16 %v6077_v15 }
 0x4ec   :  { %6239 = vpow2.f32 %v525_v13  ;;  %v6078_v21 = vunpack.i.l.bf16 %v6077_v15 }
 0x4ed   :  { %v5795_v24 = vpack.c.bf16 %v6084_v16, %v6083_v19 }
 0x4ee   :  { %v6087_v25 = vpop.permute.xlu1 %6086  ;;  %v5791_v26 = vpack.c.bf16 %v6079_v20, %v6078_v21 }
 0x4ef   :  { %v6089_v27 = vunpack.i.h.bf16 %v6087_v25  ;;  %v6088_v28 = vunpack.i.l.bf16 %v6087_v25  ;;  %5796 = vmatprep.subr.bf16.mxu0 %v5795_v24 }
 0x4f0   :  { %v6234_v29 = vpop.eup %6233  ;;  %5792 = vmatprep.subr.bf16.mxu1 %v5791_v26  ;;  %5798 = vmatpush3.bf16.msra.mxu0 %v5795_v24 }
 0x4f1   :  { %v6236_v30 = vpop.eup %6235  ;;  %v5799_v31 = vpack.c.bf16 %v6089_v27, %v6088_v28  ;;  %5794 = vmatpush3.bf16.msra.mxu1 %v5791_v26  ;;  %v532_v32 = vsel %vm504_vm4, %v6234_v29, 0.0 }
 0x4f2   :  { %533 = vadd.xlane.f32.xlu1 %v532_v32  ;;  %v529_v34 = vsel %vm504_vm4, %v6236_v30, 0.0  ;;  %v724_v44 = vpop.permute.xlu1 %723 }
 0x4f3   :  { %530 = vadd.xlane.f32.xlu0 %v529_v34  ;;  %5801 = vmatprep.subr.msk.bf16.mxu1 %vm6587_vm3, %v5799_v31 }
 0x4f5   :  { %v6238_v36 = vpop.eup %6237 }
 0x4f6   :  { %v6240_v39 = vpop.eup %6239  ;;  %v538_v42 = vsel %vm504_vm4, %v6238_v36, 0.0 }
 0x4f7   :  { %539 = vadd.xlane.f32.xlu1 %v538_v42  ;;  %v535_v43 = vsel %vm504_vm4, %v6240_v39, 0.0 }
 0x4f8   :  { %536 = vadd.xlane.f32.xlu0 %v535_v43 }
 0x508   :  { %725 = vrot.lane.b32.xlu1 %v6561_v33, %s6414_s12 }
 0x50c   :  { %816 = vrot.lane.b32.xlu1 %v6571_v38, %s6414_s12 }
 0x50e   :  { %6091 = vrot.lane.b32.xlu0 %v6581_v41, %s6413_s11 }
 0x512   :  { %814 = vrot.lane.b32.xlu0 %v6573_v40, %s6414_s12 }
 0x57f   :  { %v534_v46 = vpop.xlane.xlu1 %533 }
 0x580   :  { %6241 = vrcp.f32 %v534_v46  ;;  %v531_v47 = vpop.xlane.xlu0 %530 }
 0x581   :  { %6243 = vrcp.f32 %v531_v47 }
 0x584   :  { %v540_v48 = vpop.xlane.xlu1 %539 }
 0x585   :  { %6245 = vrcp.f32 %v540_v48  ;;  %v537_v49 = vpop.xlane.xlu0 %536 }
 0x586   :  { %6247 = vrcp.f32 %v537_v49 }
 0x588   :  { %v726_v0 = vpop.permute.xlu1 %725 }
 0x589   :  { %v6092_v50 = vpop.permute.xlu0 %6091 }
 0x58a   :  { %v6242_v51 = vpop.eup %6241  ;;  %v6094_v52 = vunpack.i.h.bf16 %v6092_v50  ;;  %v6093_v53 = vunpack.i.l.bf16 %v6092_v50 }
 0x58b   :  { %v6244_v54 = vpop.eup %6243  ;;  %v546_v57 = vmul.f32 %v6242_v51, %v6234_v29 }
 0x58c   :  { %v5805_v55 = vpack.c.bf16 %v6094_v52, %v6093_v53  ;;  %v545_v56 = vmul.f32 %v6244_v54, %v6236_v30  ;;  %v817_v1 = vpop.permute.xlu1 %816 }
 0x58d   :  { %v815_v63 = vpop.permute.xlu0 %814 }
 0x58e   :  { %5807 = vmatprep.subr.msk.bf16.mxu0 %vm6587_vm3, %v5805_v55  ;;  %5393 = vmatprep.mubr.msk.f32.mxu1 %vm504_vm4, %v545_v56 }
 0x58f   :  { %v6246_v58 = vpop.eup %6245  ;;  %5394 = vmatmul.mubr.msk.f32.vlgmr.msra.gmra.mrb[2].mxu1 %vm504_vm4, %v546_v57 }
 0x590   :  { %v6248_v59 = vpop.eup %6247  ;;  %5804 = vmatpush3.bf16.xpose.msk.msra.mxu1 %vm6587_vm3, %v5799_v31  ;;  %5407 = vmatprep.mubr.msk.f32.mxu1 %vm327_vm2, %v724_v44  ;;  %v548_v60 = vmul.f32 %v6246_v58, %v6238_v36 }
 0x591   :  { %v547_v62 = vmul.f32 %v6248_v59, %v6240_v39 }
 0x593   :  { %5400 = vmatprep.mubr.msk.f32.mxu0 %vm504_vm4, %v547_v62 }
 0x594   :  { %5401 = vmatmul.mubr.msk.f32.vlgmr.msra.gmra.mrb[10].mxu0 %vm504_vm4, %v548_v60 }
 0x595   :  { %5810 = vmatpush3.bf16.xpose.msk.msra.mxu0 %vm6587_vm3, %v5805_v55  ;;  %5414 = vmatprep.mubr.msk.f32.mxu0 %vm327_vm2, %v815_v63 }
 0x597   :  { %5408 = vmatmul.mubr.msk.f32.vlgmr.msra.gmra.mrb[4].mxu1 %vm327_vm2, %v726_v0 }
 0x59c   :  { %5415 = vmatmul.mubr.msk.f32.vlgmr.msra.gmra.mrb[12].mxu0 %vm327_vm2, %v817_v1 }
 0x662   :  { %v6643_v3 = vpop.f32.mrb[2].mxu1 }
 0x663   :  { %v6645_v4 = vpop.f32.mrb[3].mxu1 }
 0x667   :  { %v6647_v6 = vpop.f32.mrb[10].mxu0 }
 0x668   :  { %v6649_v7 = vpop.f32.mrb[11].mxu0 }
 0x66a   :  { %v5409_v8 = vpop.f32.mrb[4].mxu1 }
 0x66b   :  { %v906_v9 = vmul.f32 0.35355338, %v5409_v8  ;;  %v805_v10 = vpop.f32.mrb[5].mxu1 }
 0x66c   :  { %v905_v11 = vmul.f32 0.35355338, %v805_v10 }
 0x66d   :  { %v912_v12 = vsel %vm504_vm4, %v906_v9, -inf }
 0x66e   :  { %913 = vmax.xlane.f32.xlu1 %v912_v12  ;;  %v909_v13 = vsel %vm504_vm4, %v905_v11, -inf }
 0x66f   :  { %v5416_v14 = vpop.f32.mrb[12].mxu0  ;;  %910 = vmax.xlane.f32.xlu0 %v909_v13 }
 0x670   :  { %v896_v15 = vpop.f32.mrb[13].mxu0  ;;  %v908_v19 = vmul.f32 0.35355338, %v5416_v14 }
 0x671   :  { %v907_v16 = vmul.f32 0.35355338, %v896_v15 }
 0x672   :  { %v918_v21 = vsel %vm504_vm4, %v908_v19, -inf }
 0x673   :  { %v915_v20 = vsel %vm504_vm4, %v907_v16, -inf }
 0x674   :  { %916 = vmax.xlane.f32.xlu0 %v915_v20 }
 0x678   :  { %919 = vmax.xlane.f32.xlu0 %v918_v21 }
 0x67f   :  { %6101 = vrot.lane.b32.xlu1 %v6581_v41, %s6415_s13 }
 0x683   :  { %6106 = vrot.lane.b32.xlu1 %v6569_v37, %s6416_s14 }
 0x687   :  { %1127 = vrot.lane.b32.xlu1 %v6563_v35, %s6417_s15 }
 0x68e   :  { %6096 = vrot.lane.b32.xlu0 %v6569_v37, %s6415_s13 }
 0x6fb   :  { %v914_v24 = vpop.xlane.xlu1 %913 }
 0x6fc   :  { %v922_v25 = vsub.f32 %v906_v9, %v914_v24  ;;  %v911_v26 = vpop.xlane.xlu0 %910 }
 0x6fd   :  { %v921_v27 = vsub.f32 %v905_v11, %v911_v26 }
 0x6fe   :  { %v927_v28 = vmul.f32 1.442695, %v922_v25 }
 0x6ff   :  { %v925_v29 = vmul.f32 1.442695, %v921_v27  ;;  %v6102_v30 = vpop.permute.xlu1 %6101 }
 0x700   :  { %6249 = vpow2.f32 %v927_v28  ;;  %v6104_v31 = vunpack.i.h.bf16 %v6102_v30  ;;  %v6103_v32 = vunpack.i.l.bf16 %v6102_v30 }
 0x701   :  { %6251 = vpow2.f32 %v925_v29  ;;  %v917_v34 = vpop.xlane.xlu0 %916 }
 0x702   :  { %v923_v36 = vsub.f32 %v907_v16, %v917_v34  ;;  %v5815_v39 = vpack.c.bf16 %v6104_v31, %v6103_v32 }
 0x703   :  { %v6107_v44 = vpop.permute.xlu1 %6106 }
 0x704   :  { %v929_v42 = vmul.f32 1.442695, %v923_v36  ;;  %5816 = vmatprep.subr.bf16.mxu0 %v5815_v39  ;;  %v6109_v48 = vunpack.i.h.bf16 %v6107_v44  ;;  %v6108_v51 = vunpack.i.l.bf16 %v6107_v44 }
 0x705   :  { %v920_v43 = vpop.xlane.xlu0 %919  ;;  %5818 = vmatpush3.bf16.msra.mxu0 %v5815_v39 }
 0x706   :  { %6253 = vpow2.f32 %v929_v42  ;;  %v924_v46 = vsub.f32 %v908_v19, %v920_v43  ;;  %v5819_v58 = vpack.c.bf16 %v6109_v48, %v6108_v51 }
 0x707   :  { %v1128_v0 = vpop.permute.xlu1 %1127 }
 0x708   :  { %v931_v47 = vmul.f32 1.442695, %v924_v46 }
 0x709   :  { %v6097_v49 = vpop.permute.xlu0 %6096 }
 0x70a   :  { %v6250_v50 = vpop.eup %6249  ;;  %6255 = vpow2.f32 %v931_v47  ;;  %v6099_v52 = vunpack.i.h.bf16 %v6097_v49  ;;  %v6098_v53 = vunpack.i.l.bf16 %v6097_v49 }
 0x70b   :  { %v6252_v54 = vpop.eup %6251  ;;  %v936_v55 = vsel %vm504_vm4, %v6250_v50, 0.0 }
 0x70c   :  { %937 = vadd.xlane.f32.xlu1 %v936_v55  ;;  %v933_v56 = vsel %vm504_vm4, %v6252_v54, 0.0  ;;  %v5811_v57 = vpack.c.bf16 %v6099_v52, %v6098_v53 }
 0x70d   :  { %934 = vadd.xlane.f32.xlu0 %v933_v56 }
 0x70e   :  { %5812 = vmatprep.subr.bf16.mxu1 %v5811_v57 }
 0x70f   :  { %5814 = vmatpush3.bf16.msra.mxu1 %v5811_v57 }
 0x710   :  { %v6254_v59 = vpop.eup %6253  ;;  %5821 = vmatprep.subr.msk.bf16.mxu1 %vm6587_vm3, %v5819_v58 }
 0x711   :  { %v939_v60 = vsel %vm504_vm4, %v6254_v59, 0.0 }
 0x712   :  { %940 = vadd.xlane.f32.xlu0 %v939_v60 }
 0x714   :  { %v6256_v62 = vpop.eup %6255 }
 0x715   :  { %v942_v63 = vsel %vm504_vm4, %v6256_v62, 0.0 }
 0x716   :  { %943 = vadd.xlane.f32.xlu1 %v942_v63 }
 0x727   :  { %1129 = vrot.lane.b32.xlu1 %v6561_v33, %s6417_s15 }
 0x728   :  { %6111 = vrot.lane.b32.xlu0 %v6581_v41, %s6416_s14 }
 0x72b   :  { %1220 = vrot.lane.b32.xlu1 %v6571_v38, %s6417_s15 }
 0x72c   :  { %1218 = vrot.lane.b32.xlu0 %v6573_v40, %s6417_s15 }
 0x799   :  { %v938_v1 = vpop.xlane.xlu1 %937 }
 0x79a   :  { %6257 = vrcp.f32 %v938_v1  ;;  %v935_v8 = vpop.xlane.xlu0 %934 }
 0x79b   :  { %6259 = vrcp.f32 %v935_v8 }
 0x79f   :  { %v941_v9 = vpop.xlane.xlu0 %940 }
 0x7a0   :  { %6261 = vrcp.f32 %v941_v9 }
 0x7a3   :  { %v944_v10 = vpop.xlane.xlu1 %943  ;;  %v6112_v11 = vpop.permute.xlu0 %6111 }
 0x7a4   :  { %v6258_v12 = vpop.eup %6257  ;;  %6263 = vrcp.f32 %v944_v10  ;;  %v6114_v13 = vunpack.i.h.bf16 %v6112_v11  ;;  %v6113_v14 = vunpack.i.l.bf16 %v6112_v11 }
 0x7a5   :  { %v6260_v15 = vpop.eup %6259  ;;  %v950_v20 = vmul.f32 %v6258_v12, %v6250_v50 }
 0x7a6   :  { %v5825_v16 = vpack.c.bf16 %v6114_v13, %v6113_v14  ;;  %v949_v19 = vmul.f32 %v6260_v15, %v6252_v54 }
 0x7a7   :  { %v1130_v27 = vpop.permute.xlu1 %1129  ;;  %v1219_v28 = vpop.permute.xlu0 %1218 }
 0x7a8   :  { %5827 = vmatprep.subr.msk.bf16.mxu0 %vm6587_vm3, %v5825_v16  ;;  %5421 = vmatprep.mubr.msk.f32.mxu1 %vm504_vm4, %v949_v19 }
 0x7a9   :  { %5422 = vmatmul.mubr.msk.f32.vlgmr.msra.gmra.mrb[6].mxu1 %vm504_vm4, %v950_v20 }
 0x7aa   :  { %v6262_v21 = vpop.eup %6261  ;;  %5824 = vmatpush3.bf16.xpose.msk.msra.mxu1 %vm6587_vm3, %v5819_v58  ;;  %5435 = vmatprep.mubr.msk.f32.mxu1 %vm327_vm2, %v1128_v0 }
 0x7ab   :  { %v951_v24 = vmul.f32 %v6262_v21, %v6254_v59  ;;  %v1221_v29 = vpop.permute.xlu1 %1220 }
 0x7ad   :  { %5428 = vmatprep.mubr.msk.f32.mxu0 %vm504_vm4, %v951_v24 }
 0x7ae   :  { %v6264_v25 = vpop.eup %6263 }
 0x7af   :  { %v952_v26 = vmul.f32 %v6264_v25, %v6256_v62 }
 0x7b1   :  { %5429 = vmatmul.mubr.msk.f32.vlgmr.msra.gmra.mrb[14].mxu0 %vm504_vm4, %v952_v26  ;;  %5436 = vmatmul.mubr.msk.f32.vlgmr.msra.gmra.mrb[8].mxu1 %vm327_vm2, %v1130_v27 }
 0x7b2   :  { %5830 = vmatpush3.bf16.xpose.msk.msra.mxu0 %vm6587_vm3, %v5825_v16  ;;  %5442 = vmatprep.mubr.msk.f32.mxu0 %vm327_vm2, %v1219_v28 }
 0x7b9   :  { %5443 = vmatmul.mubr.msk.f32.vlgmr.msra.gmra.mrb[16].mxu0 %vm327_vm2, %v1221_v29 }
 0x87c   :  { %v6691_v30 = vpop.f32.mrb[6].mxu1 }
 0x87d   :  { %v6693_v31 = vpop.f32.mrb[7].mxu1 }
 0x884   :  { %v6695_v32 = vpop.f32.mrb[14].mxu0  ;;  %v5437_v34 = vpop.f32.mrb[8].mxu1 }
 0x885   :  { %v1310_v36 = vmul.f32 0.35355338, %v5437_v34  ;;  %v6697_v39 = vpop.f32.mrb[15].mxu0  ;;  %v1209_v42 = vpop.f32.mrb[9].mxu1 }
 0x886   :  { %v1309_v43 = vmul.f32 0.35355338, %v1209_v42 }
 0x887   :  { %v1316_v44 = vsel %vm504_vm4, %v1310_v36, -inf }
 0x888   :  { %1317 = vmax.xlane.f32.xlu1 %v1316_v44  ;;  %v1313_v46 = vsel %vm504_vm4, %v1309_v43, -inf }
 0x889   :  { %1314 = vmax.xlane.f32.xlu0 %v1313_v46 }
 0x88c   :  { %v5444_v47 = vpop.f32.mrb[16].mxu0 }
 0x88d   :  { %v1300_v48 = vpop.f32.mrb[17].mxu0  ;;  %v1312_v50 = vmul.f32 0.35355338, %v5444_v47 }
 0x88e   :  { %v1311_v49 = vmul.f32 0.35355338, %v1300_v48 }
 0x88f   :  { %v1322_v52 = vsel %vm504_vm4, %v1312_v50, -inf }
 0x890   :  { %v1319_v51 = vsel %vm504_vm4, %v1311_v49, -inf }
 0x891   :  { %1320 = vmax.xlane.f32.xlu0 %v1319_v51 }
 0x895   :  { %1323 = vmax.xlane.f32.xlu0 %v1322_v52 }
 0x899   :  { %6121 = vrot.lane.b32.xlu1 %v6581_v41, %s6418_s16 }
 0x89d   :  { %6126 = vrot.lane.b32.xlu1 %v6569_v37, %s6419_s17 }
 0x8a1   :  { %1531 = vrot.lane.b32.xlu1 %v6563_v35, %s6420_s18 }
 0x8ab   :  { %6116 = vrot.lane.b32.xlu0 %v6569_v37, %s6418_s16 }
 0x915   :  { %v1318_v53 = vpop.xlane.xlu1 %1317 }
 0x916   :  { %v1326_v54 = vsub.f32 %v1310_v36, %v1318_v53  ;;  %v1315_v55 = vpop.xlane.xlu0 %1314 }
 0x917   :  { %v1325_v56 = vsub.f32 %v1309_v43, %v1315_v55 }
 0x918   :  { %v1331_v57 = vmul.f32 1.442695, %v1326_v54 }
 0x919   :  { %v1329_v58 = vmul.f32 1.442695, %v1325_v56  ;;  %v6122_v59 = vpop.permute.xlu1 %6121 }
 0x91a   :  { %6265 = vpow2.f32 %v1331_v57  ;;  %v6124_v60 = vunpack.i.h.bf16 %v6122_v59  ;;  %v6123_v62 = vunpack.i.l.bf16 %v6122_v59 }
 0x91b   :  { %6267 = vpow2.f32 %v1329_v58 }
 0x91c   :  { %v5835_v63 = vpack.c.bf16 %v6124_v60, %v6123_v62 }
 0x91d   :  { %v6127_v9 = vpop.permute.xlu1 %6126 }
 0x91e   :  { %v1321_v0 = vpop.xlane.xlu0 %1320  ;;  %5836 = vmatprep.subr.bf16.mxu0 %v5835_v63  ;;  %v6129_v15 = vunpack.i.h.bf16 %v6127_v9  ;;  %v6128_v20 = vunpack.i.l.bf16 %v6127_v9 }
 0x91f   :  { %v1327_v1 = vsub.f32 %v1311_v49, %v1321_v0  ;;  %5838 = vmatpush3.bf16.msra.mxu0 %v5835_v63 }
 0x920   :  { %v5839_v26 = vpack.c.bf16 %v6129_v15, %v6128_v20 }
 0x921   :  { %v1333_v35 = vmul.f32 1.442695, %v1327_v1  ;;  %v1532_v36 = vpop.permute.xlu1 %1531 }
 0x922   :  { %v1324_v8 = vpop.xlane.xlu0 %1323 }
 0x923   :  { %6269 = vpow2.f32 %v1333_v35  ;;  %v1328_v10 = vsub.f32 %v1312_v50, %v1324_v8 }
 0x924   :  { %v6266_v11 = vpop.eup %6265 }
 0x925   :  { %v6268_v12 = vpop.eup %6267  ;;  %v1335_v13 = vmul.f32 1.442695, %v1328_v10  ;;  %v1340_v14 = vsel %vm504_vm4, %v6266_v11, 0.0 }
 0x926   :  { %v6117_v16 = vpop.permute.xlu0 %6116  ;;  %1341 = vadd.xlane.f32.xlu1 %v1340_v14  ;;  %v1337_v19 = vsel %vm504_vm4, %v6268_v12, 0.0 }
 0x927   :  { %6271 = vpow2.f32 %v1335_v13  ;;  %v6119_v21 = vunpack.i.h.bf16 %v6117_v16  ;;  %v6118_v24 = vunpack.i.l.bf16 %v6117_v16  ;;  %1338 = vadd.xlane.f32.xlu0 %v1337_v19 }
 0x929   :  { %v5831_v25 = vpack.c.bf16 %v6119_v21, %v6118_v24 }
 0x92b   :  { %5832 = vmatprep.subr.bf16.mxu1 %v5831_v25 }
 0x92c   :  { %5834 = vmatpush3.bf16.msra.mxu1 %v5831_v25 }
 0x92d   :  { %v6270_v27 = vpop.eup %6269  ;;  %5841 = vmatprep.subr.msk.bf16.mxu1 %vm6587_vm3, %v5839_v26 }
 0x92e   :  { %v1343_v28 = vsel %vm504_vm4, %v6270_v27, 0.0 }
 0x92f   :  { %1344 = vadd.xlane.f32.xlu0 %v1343_v28 }
 0x931   :  { %v6272_v29 = vpop.eup %6271 }
 0x932   :  { %v1346_v34 = vsel %vm504_vm4, %v6272_v29, 0.0 }
 0x933   :  { %1347 = vadd.xlane.f32.xlu1 %v1346_v34 }
 0x944   :  { %1533 = vrot.lane.b32.xlu1 %v6561_v33, %s6420_s18 }
 0x945   :  { %6131 = vrot.lane.b32.xlu0 %v6581_v41, %s6419_s17 }
 0x948   :  { %1624 = vrot.lane.b32.xlu1 %v6571_v38, %s6420_s18 }
 0x949   :  { %1622 = vrot.lane.b32.xlu0 %v6573_v40, %s6420_s18 }
 0x9b3   :  { %v1342_v42 = vpop.xlane.xlu1 %1341 }
 0x9b4   :  { %6273 = vrcp.f32 %v1342_v42  ;;  %v1339_v43 = vpop.xlane.xlu0 %1338 }
 0x9b5   :  { %6275 = vrcp.f32 %v1339_v43 }
 0x9bc   :  { %v1345_v44 = vpop.xlane.xlu0 %1344 }
 0x9bd   :  { %6277 = vrcp.f32 %v1345_v44 }
 0x9be   :  { %v6274_v46 = vpop.eup %6273 }
 0x9bf   :  { %v6276_v47 = vpop.eup %6275  ;;  %v1354_v52 = vmul.f32 %v6274_v46, %v6266_v11 }
 0x9c0   :  { %v1348_v48 = vpop.xlane.xlu1 %1347  ;;  %v6132_v33 = vpop.permute.xlu0 %6131  ;;  %v1353_v49 = vmul.f32 %v6276_v47, %v6268_v12 }
 0x9c1   :  { %6279 = vrcp.f32 %v1348_v48  ;;  %v6134_v50 = vunpack.i.h.bf16 %v6132_v33  ;;  %v6133_v51 = vunpack.i.l.bf16 %v6132_v33 }
 0x9c2   :  { %5449 = vmatprep.mubr.msk.f32.mxu1 %vm504_vm4, %v1353_v49 }
 0x9c3   :  { %v5845_v38 = vpack.c.bf16 %v6134_v50, %v6133_v51  ;;  %5450 = vmatmul.mubr.msk.f32.vlgmr.msra.gmra.mrb[10].mxu1 %vm504_vm4, %v1354_v52 }
 0x9c4   :  { %5844 = vmatpush3.bf16.xpose.msk.msra.mxu1 %vm6587_vm3, %v5839_v26  ;;  %5463 = vmatprep.mubr.msk.f32.mxu1 %vm327_vm2, %v1532_v36  ;;  %v1534_v54 = vpop.permute.xlu1 %1533  ;;  %v1623_v57 = vpop.permute.xlu0 %1622 }
 0x9c5   :  { %5847 = vmatprep.subr.msk.bf16.mxu0 %vm6587_vm3, %v5845_v38 }
 0x9c7   :  { %v6278_v40 = vpop.eup %6277 }
 0x9c8   :  { %v1355_v53 = vmul.f32 %v6278_v40, %v6270_v27  ;;  %v1625_v58 = vpop.permute.xlu1 %1624 }
 0x9ca   :  { %5456 = vmatprep.mubr.msk.f32.mxu0 %vm504_vm4, %v1355_v53 }
 0x9cb   :  { %v6280_v55 = vpop.eup %6279  ;;  %5464 = vmatmul.mubr.msk.f32.vlgmr.msra.gmra.mrb[12].mxu1 %vm327_vm2, %v1534_v54 }
 0x9cc   :  { %v1356_v56 = vmul.f32 %v6280_v55, %v6272_v29 }
 0x9ce   :  { %5457 = vmatmul.mubr.msk.f32.vlgmr.msra.gmra.mrb[18].mxu0 %vm504_vm4, %v1356_v56 }
 0x9cf   :  { %5850 = vmatpush3.bf16.xpose.msk.msra.mxu0 %vm6587_vm3, %v5845_v38  ;;  %5470 = vmatprep.mubr.msk.f32.mxu0 %vm327_vm2, %v1623_v57 }
 0x9d6   :  { %5471 = vmatmul.mubr.msk.f32.vlgmr.msra.gmra.mrb[20].mxu0 %vm327_vm2, %v1625_v58 }
 0xa96   :  { %v5451_v59 = vpop.f32.mrb[10].mxu1 }
 0xa97   :  { %v1435_v60 = vpop.f32.mrb[11].mxu1 }
 0xa9e   :  { %v5465_v62 = vpop.f32.mrb[12].mxu1 }
 0xa9f   :  { %v1714_v63 = vmul.f32 0.35355338, %v5465_v62  ;;  %v1613_v0 = vpop.f32.mrb[13].mxu1 }
 0xaa0   :  { %v1713_v1 = vmul.f32 0.35355338, %v1613_v0 }
 0xaa1   :  { %v6739_v35 = vpop.f32.mrb[18].mxu0  ;;  %v1720_v8 = vsel %vm504_vm4, %v1714_v63, -inf }
 0xaa2   :  { %v6742_v9 = vpop.f32.mrb[19].mxu0  ;;  %1721 = vmax.xlane.f32.xlu1 %v1720_v8  ;;  %v1717_v10 = vsel %vm504_vm4, %v1713_v1, -inf  ;;  %v1996_v8 = vld [vmem:[%s7423_s3 + $0x8] sm:$0xff] }
 0xaa3   :  { %1718 = vmax.xlane.f32.xlu0 %v1717_v10  ;;  %v1997_v10 = vld [vmem:[%s7423_s3 + $0x20] sm:$0xff] }
 0xaa9   :  { %v5472_v11 = vpop.f32.mrb[20].mxu0 }
 0xaaa   :  { %v1704_v12 = vpop.f32.mrb[21].mxu0  ;;  %v1716_v14 = vmul.f32 0.35355338, %v5472_v11  ;;  %v1998_v11 = vld [vmem:[%s7423_s3 + $0x38] sm:$0xff] }
 0xaab   :  { %v1715_v13 = vmul.f32 0.35355338, %v1704_v12  ;;  %v5859_v12 = vpack.c.bf16 %v1997_v10, %v1996_v8 }
 0xaac   :  { %v1726_v16 = vsel %vm504_vm4, %v1716_v14, -inf }
 0xaad   :  { %v1723_v15 = vsel %vm504_vm4, %v1715_v13, -inf }
 0xaae   :  { %1724 = vmax.xlane.f32.xlu0 %v1723_v15 }
 0xab2   :  { %1727 = vmax.xlane.f32.xlu0 %v1726_v16 }
 0xb2f   :  { %v1722_v19 = vpop.xlane.xlu1 %1721 }
 0xb30   :  { %v1730_v20 = vsub.f32 %v1714_v63, %v1722_v19  ;;  %v1719_v21 = vpop.xlane.xlu0 %1718 }
 0xb31   :  { %v1729_v24 = vsub.f32 %v1713_v1, %v1719_v21 }
 0xb32   :  { %v1735_v25 = vmul.f32 1.442695, %v1730_v20 }
 0xb33   :  { %v1733_v26 = vmul.f32 1.442695, %v1729_v24 }
 0xb34   :  { %6281 = vpow2.f32 %v1735_v25 }
 0xb35   :  { %6283 = vpow2.f32 %v1733_v26 }
 0xb3b   :  { %v1725_v27 = vpop.xlane.xlu0 %1724 }
 0xb3c   :  { %v1731_v28 = vsub.f32 %v1715_v13, %v1725_v27  ;;  %v1999_v13 = vld [vmem:[%s7423_s3 + $0x50] sm:$0xff] }
 0xb3e   :  { %v6282_v29 = vpop.eup %6281  ;;  %v1737_v34 = vmul.f32 1.442695, %v1731_v28 }
 0xb3f   :  { %v6284_v36 = vpop.eup %6283  ;;  %v1728_v42 = vpop.xlane.xlu0 %1727  ;;  %v1744_v43 = vsel %vm504_vm4, %v6282_v29, 0.0 }
 0xb40   :  { %6285 = vpow2.f32 %v1737_v34  ;;  %v1732_v44 = vsub.f32 %v1716_v14, %v1728_v42  ;;  %1745 = vadd.xlane.f32.xlu1 %v1744_v43  ;;  %v1741_v46 = vsel %vm504_vm4, %v6284_v36, 0.0  ;;  %v5863_v14 = vpack.c.bf16 %v1999_v13, %v1998_v11 }
 0xb41   :  { %1742 = vadd.xlane.f32.xlu0 %v1741_v46 }
 0xb42   :  { %v1739_v47 = vmul.f32 1.442695, %v1732_v44 }
 0xb44   :  { %6287 = vpow2.f32 %v1739_v47 }
 0xb4a   :  { %v6286_v48 = vpop.eup %6285 }
 0xb4b   :  { %v1747_v33 = vsel %vm504_vm4, %v6286_v48, 0.0 }
 0xb4c   :  { %1748 = vadd.xlane.f32.xlu0 %v1747_v33 }
 0xb4e   :  { %v6288_v49 = vpop.eup %6287 }
 0xb4f   :  { %v1750_v50 = vsel %vm504_vm4, %v6288_v49, 0.0 }
 0xb50   :  { %1751 = vadd.xlane.f32.xlu1 %v1750_v50 }
 0xb61   :  { %6141 = vrot.lane.b32.xlu1 %v6581_v41, %s6421_s19 }
 0xb62   :  { %6136 = vrot.lane.b32.xlu0 %v6569_v37, %s6421_s19 }
 0xb65   :  { %1939 = vrot.lane.b32.xlu1 %v6693_v31, %s6422_s20 }
 0xb66   :  { %1955 = vrot.lane.b32.xlu0 %v1435_v60, %s6423_s0 }
 0xb69   :  { %1941 = vrot.lane.b32.xlu1 %v6691_v30, %s6422_s20 }
 0xb6d   :  { %1957 = vrot.lane.b32.xlu1 %v5451_v59, %s6423_s0 }
 0xbcd   :  { %v1746_v52 = vpop.xlane.xlu1 %1745 }
 0xbce   :  { %v1743_v51 = vpop.xlane.xlu0 %1742 }
 0xbcf   :  { %6289 = vrcp.f32 %v1743_v51  ;;  %v6810_v51 = vsub.s32 2, %v6536_v61 }
 0xbd0   :  { %6291 = vrcp.f32 %v1746_v52 }
 0xbd9   :  { %v6290_v41 = vpop.eup %6289  ;;  %v1749_v38 = vpop.xlane.xlu0 %1748 }
 0xbda   :  { %6293 = vrcp.f32 %v1749_v38  ;;  %v1757_v37 = vmul.f32 %v6290_v41, %v6284_v36  ;;  %v6292_v56 = vpop.eup %6291 }
 0xbdb   :  { %v1758_v60 = vmul.f32 %v6292_v56, %v6282_v29 }
 0xbdc   :  { %5477 = vmatprep.mubr.msk.f32.mxu1 %vm504_vm4, %v1757_v37 }
 0xbdd   :  { %v1752_v40 = vpop.xlane.xlu1 %1751  ;;  %v6137_v31 = vpop.permute.xlu0 %6136 }
 0xbde   :  { %6295 = vrcp.f32 %v1752_v40  ;;  %v6139_v53 = vunpack.i.h.bf16 %v6137_v31  ;;  %v6138_v54 = vunpack.i.l.bf16 %v6137_v31 }
 0xbe0   :  { %v5851_v55 = vpack.c.bf16 %v6139_v53, %v6138_v54 }
 0xbe1   :  { %v6142_v30 = vpop.permute.xlu1 %6141  ;;  %v1956_v26 = vpop.permute.xlu0 %1955 }
 0xbe2   :  { %v6144_v57 = vunpack.i.h.bf16 %v6142_v30  ;;  %v6143_v58 = vunpack.i.l.bf16 %v6142_v30  ;;  %5852 = vmatprep.subr.bf16.mxu1 %v5851_v55 }
 0xbe3   :  { %5854 = vmatpush3.bf16.msra.mxu1 %v5851_v55 }
 0xbe4   :  { %v6294_v59 = vpop.eup %6293  ;;  %v5855_v62 = vpack.c.bf16 %v6144_v57, %v6143_v58  ;;  %5860 = vmatprep.subr.bf16.mxu1 %v5859_v12  ;;  %v6835_v58 = vld [vmem:[%s7424_s2 + $0x10] sm:$0xff] }
 0xbe5   :  { %v1759_v63 = vmul.f32 %v6294_v59, %v6286_v48  ;;  %v1940_v21 = vpop.permute.xlu1 %1939 }
 0xbe6   :  { %5478 = vmatmul.mubr.msk.f32.vlgmr.msra.gmra.mrb[14].mxu1 %vm504_vm4, %v1758_v60  ;;  %5856 = vmatprep.subr.bf16.mxu0 %v5855_v62 }
 0xbe7   :  { %5858 = vmatpush3.bf16.msra.mxu0 %v5855_v62  ;;  %5484 = vmatprep.mubr.msk.f32.mxu0 %vm504_vm4, %v1759_v63 }
 0xbe8   :  { %v6296_v0 = vpop.eup %6295  ;;  %5862 = vmatpush3.bf16.msra.mxu1 %v5859_v12 }
 0xbe9   :  { %v1760_v1 = vmul.f32 %v6296_v0, %v6288_v49  ;;  %5864 = vmatprep.subr.bf16.mxu1 %v5863_v14  ;;  %v1942_v24 = vpop.permute.xlu1 %1941 }
 0xbeb   :  { %5485 = vmatmul.mubr.msk.f32.vlgmr.msra.gmra.mrb[22].mxu0 %vm504_vm4, %v1760_v1 }
 0xbec   :  { %5866 = vmatpush3.bf16.msra.mxu1 %v5863_v14 }
 0xbed   :  { %v1958_v25 = vpop.permute.xlu1 %1957 }
 0xcb9   :  { %v5479_v15 = vpop.f32.mrb[14].mxu1 }
 0xcba   :  { %1973 = vrot.lane.b32.xlu1 %v5479_v15, %s6424_s28  ;;  %v1839_v16 = vpop.f32.mrb[15].mxu1 }
 0xcbb   :  { %1971 = vrot.lane.b32.xlu0 %v1839_v16, %s6424_s28 }
 0xcbe   :  { %v5486_v19 = vpop.f32.mrb[22].mxu0  ;;  %1945 = vrot.lane.b32.xlu1 %v6695_v32, %s6422_s20  ;;  %v1983_v32 = vsel %vm327_vm2, %v6645_v4, %v1940_v21 }
 0xcbf   :  { %v1926_v20 = vpop.f32.mrb[23].mxu0  ;;  %1943 = vrot.lane.b32.xlu0 %v6697_v39, %s6422_s20  ;;  %v1984_v39 = vsel %vm327_vm2, %v6643_v3, %v1942_v24 }
 0xcc2   :  { %1961 = vrot.lane.b32.xlu1 %v6739_v35, %s6423_s0  ;;  %v1987_v35 = vsel %vm504_vm4, %v1983_v32, %v1956_v26 }
 0xcc3   :  { %1959 = vrot.lane.b32.xlu0 %v6742_v9, %s6423_s0  ;;  %v1988_v9 = vsel %vm504_vm4, %v1984_v39, %v1958_v25 }
 0xcc6   :  { %1977 = vrot.lane.b32.xlu1 %v5486_v19, %s6424_s28 }
 0xcc7   :  { %1975 = vrot.lane.b32.xlu0 %v1926_v20, %s6424_s28 }
 0xd2c   :  { %v1974_v27 = vpop.permute.xlu1 %1973 }
 0xd2d   :  { %v1972_v28 = vpop.permute.xlu0 %1971  ;;  %v1993_v34 = vsel %vm1991_vm5, %v1988_v9, %v1974_v27 }
 0xd2e   :  { %v1992_v29 = vsel %vm1991_vm5, %v1987_v35, %v1972_v28 }
 0xd2f   :  { %5495 = vmatprep.mubr.msk.f32.mxu1 %vm141_vm1, %v1992_v29  ;;  %v2190_v29 = vld [vmem:[%s7423_s3 + $0x10] sm:$0xff] }
 0xd30   :  { %v1946_v36 = vpop.permute.xlu1 %1945  ;;  %5496 = vmatmul.mubr.msk.f32.vlgmr.msra.gmra.mrb[16].mxu1 %vm141_vm1, %v1993_v34  ;;  %v2191_v34 = vld [vmem:[%s7423_s3 + $0x28] sm:$0xff] }
 0xd31   :  { %v1944_v4 = vpop.permute.xlu0 %1943  ;;  %v1986_v46 = vsel %vm327_vm2, %v6647_v6, %v1946_v36  ;;  %v2000_v6 = vld [vmem:[%s7423_s3 + $0x68] ss:$0 sm:$0xff]  ;;  %v5867_v36 = vpack.c.bf16 %v2191_v34, %v2190_v29 }
 0xd32   :  { %v1985_v3 = vsel %vm327_vm2, %v6649_v7, %v1944_v4  ;;  %v6818_v7 = vld [vmem:[%s7424_s2] sm:$0xff]  ;;  %v2337_v29 = vld [vmem:[%s7425_s4 + $0x48] sm:$0xff] }
 0xd33   :  { %v2101_v52 = vrot.slane %v6818_v7, %v6810_v51  ;;  %5868 = vmatprep.subr.bf16.mxu0 %v5867_v36  ;;  %v2192_v4 = vld [vmem:[%s7423_s3 + $0x40] sm:$0xff] }
 0xd34   :  { %v1962_v42 = vpop.permute.xlu1 %1961  ;;  %5870 = vmatpush3.bf16.msra.mxu0 %v5867_v36  ;;  %v2338_v36 = vld [vmem:[%s7425_s4 + $0x50] sm:$0xff] }
 0xd35   :  { %v1960_v43 = vpop.permute.xlu0 %1959  ;;  %v1990_v33 = vsel %vm504_vm4, %v1986_v46, %v1962_v42  ;;  %v2193_v42 = vld [vmem:[%s7423_s3 + $0x58] sm:$0xff] }
 0xd36   :  { %v1989_v47 = vsel %vm504_vm4, %v1985_v3, %v1960_v43  ;;  %v5871_v43 = vpack.c.bf16 %v2193_v42, %v2192_v4  ;;  %v2339_v4 = vld [vmem:[%s7425_s4 + $0x58] sm:$0xff] }
 0xd37   :  { %v5895_v42 = vpack.c.bf16 %v2339_v4, %v2338_v36 }
 0xd38   :  { %v1978_v44 = vpop.permute.xlu1 %1977  ;;  %5872 = vmatprep.subr.bf16.mxu0 %v5871_v43 }
 0xd39   :  { %v1976_v48 = vpop.permute.xlu0 %1975  ;;  %v1995_v50 = vsel %vm1991_vm5, %v1990_v33, %v1978_v44  ;;  %5874 = vmatpush3.bf16.msra.mxu0 %v5871_v43  ;;  %v2340_v43 = vld [vmem:[%s7425_s4 + $0x60] sm:$0xff] }
 0xd3a   :  { %v1994_v49 = vsel %vm1991_vm5, %v1989_v47, %v1976_v48 }
 0xd3b   :  { %5498 = vmatprep.mubr.msk.f32.mxu1 %vm141_vm1, %v1994_v49  ;;  %v6870_v49 = vsub.s32 3, %v6536_v61 }
 0xd3c   :  { %5499 = vmatmul.mubr.msk.f32.gmra.mrb[18].mxu1 %vm141_vm1, %v1995_v50 }
 0xe03   :  { %v5497_v41 = vpop.f32.mrb[16].mxu1 }
 0xe04   :  { %v2085_v38 = vadd.f32 %v5497_v41, %v2000_v6  ;;  %v2079_v37 = vpop.f32.mrb[17].mxu1  ;;  %v2169_v41 = vrot.slane %v6818_v7, %v6870_v49 }
 0xe05   :  { %v2080_v40 = vadd.f32 %v2079_v37, %v2000_v6 }
 0xe06   :  { %v2107_v31 = vmul.f32 %v2101_v52, %v2085_v38 }
 0xe07   :  { %v2106_v53 = vmul.f32 %v2101_v52, %v2080_v40 }
 0xe08   :  { %v6823_v54 = vadd.f32 %v2107_v31, %v6502_v18  ;;  %v2105_v18 = vrot.slane %v6835_v58, %v6810_v51 }
 0xe09   :  { %v6826_v55 = vadd.f32 %v2106_v53, %v6500_v17 }
 0xe0a   :  { %v2117_v56 = vsel %vm141_vm1, %v6823_v54, 0.0 }
 0xe0b   :  { %2118 = vadd.xlane.f32.xlu1 %v2117_v56  ;;  %v2114_v30 = vsel %vm141_vm1, %v6826_v55, 0.0 }
 0xe0c   :  { %2115 = vadd.xlane.f32.xlu0 %v2114_v30 }
 0xe0f   :  { %v5500_v57 = vpop.f32.mrb[18].mxu1 }
 0xe10   :  { %v2095_v59 = vadd.f32 %v5500_v57, %v2000_v6  ;;  %v2089_v17 = vpop.f32.mrb[19].mxu1 }
 0xe11   :  { %v2090_v60 = vadd.f32 %v2089_v17, %v2000_v6  ;;  %v6873_v6 = vsub.s32 4, %v6536_v61 }
 0xe12   :  { %v2109_v62 = vmul.f32 %v2105_v18, %v2095_v59 }
 0xe13   :  { %v2108_v63 = vmul.f32 %v2105_v18, %v2090_v60  ;;  %v2181_v30 = vrot.slane %v6818_v7, %v6873_v6 }
 0xe14   :  { %v6843_v1 = vadd.f32 %v2109_v62, %v6508_v23 }
 0xe15   :  { %v6840_v0 = vadd.f32 %v2108_v63, %v6506_v22  ;;  %v2173_v63 = vrot.slane %v6835_v58, %v6870_v49 }
 0xe16   :  { %v2123_v10 = vsel %vm141_vm1, %v6843_v1, 0.0 }
 0xe17   :  { %v2120_v8 = vsel %vm141_vm1, %v6840_v0, 0.0 }
 0xe18   :  { %2121 = vadd.xlane.f32.xlu0 %v2120_v8 }
 0xe1c   :  { %2124 = vadd.xlane.f32.xlu0 %v2123_v10 }
 0xe98   :  { %v2119_v11 = vpop.xlane.xlu1 %2118 }
 0xe99   :  { %v2127_v12 = vmul.f32 0.03125, %v2119_v11  ;;  %v2116_v13 = vpop.xlane.xlu0 %2115  ;;  %v2185_v11 = vrot.slane %v6835_v58, %v6873_v6 }
 0xe9a   :  { %v2126_v14 = vmul.f32 0.03125, %v2116_v13 }
 0xe9b   :  { %v2131_v15 = vsub.f32 %v6823_v54, %v2127_v12 }
 0xe9c   :  { %v2130_v22 = vsub.f32 %v6826_v55, %v2126_v14 }
 0xe9d   :  { %v2135_v16 = vmul.f32 %v2131_v15, %v2131_v15 }
 0xe9e   :  { %v2134_v19 = vmul.f32 %v2130_v22, %v2130_v22 }
 0xe9f   :  { %v2141_v23 = vsel %vm141_vm1, %v2135_v16, 0.0 }
 0xea0   :  { %2142 = vadd.xlane.f32.xlu1 %v2141_v23  ;;  %v2138_v20 = vsel %vm141_vm1, %v2134_v19, 0.0  ;;  %v2328_v19 = vld [vmem:[%s7425_s4] sm:$0xff]  ;;  %v2329_v23 = vld [vmem:[%s7425_s4 + $0x8] sm:$0xff] }
 0xea1   :  { %2139 = vadd.xlane.f32.xlu0 %v2138_v20  ;;  %v5875_v20 = vpack.c.bf16 %v2329_v23, %v2328_v19 }
 0xea3   :  { %5876 = vmatprep.subr.bf16.mxu1 %v5875_v20 }
 0xea4   :  { %5878 = vmatpush3.bf16.msra.mxu1 %v5875_v20 }
 0xea5   :  { %v2122_v21 = vpop.xlane.xlu0 %2121 }
 0xea6   :  { %v2128_v24 = vmul.f32 0.03125, %v2122_v21  ;;  %v2330_v21 = vld [vmem:[%s7425_s4 + $0x10] sm:$0xff] }
 0xea8   :  { %v2132_v25 = vsub.f32 %v6840_v0, %v2128_v24  ;;  %v2331_v24 = vld [vmem:[%s7425_s4 + $0x18] sm:$0xff] }
 0xea9   :  { %v2125_v26 = vpop.xlane.xlu0 %2124 }
 0xeaa   :  { %v2129_v32 = vmul.f32 0.03125, %v2125_v26  ;;  %v2136_v27 = vmul.f32 %v2132_v25, %v2132_v25  ;;  %v2332_v26 = vld [vmem:[%s7425_s4 + $0x20] sm:$0xff] }
 0xeac   :  { %v2133_v39 = vsub.f32 %v6843_v1, %v2129_v32  ;;  %v2144_v35 = vsel %vm141_vm1, %v2136_v27, 0.0  ;;  %v2333_v32 = vld [vmem:[%s7425_s4 + $0x28] sm:$0xff] }
 0xead   :  { %2145 = vadd.xlane.f32.xlu0 %v2144_v35  ;;  %v5883_v27 = vpack.c.bf16 %v2333_v32, %v2332_v26  ;;  %v2335_v35 = vld [vmem:[%s7425_s4 + $0x38] sm:$0xff] }
 0xeae   :  { %v2137_v28 = vmul.f32 %v2133_v39, %v2133_v39 }
 0xeb0   :  { %v2147_v9 = vsel %vm141_vm1, %v2137_v28, 0.0 }
 0xeb1   :  { %2148 = vadd.xlane.f32.xlu1 %v2147_v9  ;;  %v2336_v9 = vld [vmem:[%s7425_s4 + $0x40] sm:$0xff] }
 0xeb2   :  { %v5891_v34 = vpack.c.bf16 %v2337_v29, %v2336_v9 }
 0xf2d   :  { %v2143_v3 = vpop.xlane.xlu1 %2142 }
 0xf2e   :  { %v2151_v44 = vmul.f32 0.03125, %v2143_v3  ;;  %v2140_v46 = vpop.xlane.xlu0 %2139  ;;  %v2341_v3 = vld [vmem:[%s7425_s4 + $0x68] sm:$0xff] }
 0xf2f   :  { %v2150_v47 = vmul.f32 0.03125, %v2140_v46  ;;  %v2342_v46 = vld [vmem:[%s7425_s4 + $0x70] sm:$0xff] }
 0xf30   :  { %v2155_v48 = vadd.f32 1e-06, %v2151_v44  ;;  %v5899_v44 = vpack.c.bf16 %v2341_v3, %v2340_v43  ;;  %v6939_v43 = vsub.s32 5, %v6536_v61  ;;  %v5010_v3 = vld [vmem:[%s7425_s4 + $0x80] ss:$0 sm:$0xff] }
 0xf31   :  { %v2154_v33 = vadd.f32 1e-06, %v2150_v47  ;;  %v2343_v47 = vld [vmem:[%s7425_s4 + $0x78] sm:$0xff] }
 0xf32   :  { %6297 = vrsqrt.f32 %v2155_v48  ;;  %v5903_v48 = vpack.c.bf16 %v2343_v47, %v2342_v46 }
 0xf33   :  { %6299 = vrsqrt.f32 %v2154_v33  ;;  %v2194_v33 = vld [vmem:[%s7423_s3 + $0x70] ss:$0 sm:$0xff] }
 0xf3a   :  { %v2146_v50 = vpop.xlane.xlu0 %2145 }
 0xf3b   :  { %v2152_v52 = vmul.f32 0.03125, %v2146_v50 }
 0xf3c   :  { %v6298_v38 = vpop.eup %6297 }
 0xf3d   :  { %v6300_v37 = vpop.eup %6299  ;;  %v2163_v40 = vmul.f32 %v6298_v38, %v2131_v15  ;;  %v2156_v31 = vadd.f32 1e-06, %v2152_v52 }
 0xf3e   :  { %v2149_v53 = vpop.xlane.xlu1 %2148  ;;  %v2162_v56 = vmul.f32 %v6300_v37, %v2130_v22 }
 0xf3f   :  { %6301 = vrsqrt.f32 %v2156_v31  ;;  %v2153_v57 = vmul.f32 0.03125, %v2149_v53  ;;  %v2175_v18 = vmul.f32 %v2169_v41, %v2163_v40 }
 0xf40   :  { %v2174_v59 = vmul.f32 %v2169_v41, %v2162_v56 }
 0xf41   :  { %v2157_v17 = vadd.f32 1e-06, %v2153_v57  ;;  %v2187_v62 = vadd.f32 %v2181_v30, %v2175_v18 }
 0xf42   :  { %v2186_v60 = vadd.f32 %v2181_v30, %v2174_v59 }
 0xf43   :  { %6303 = vrsqrt.f32 %v2157_v17 }
 0xf44   :  { %5509 = vmatprep.mubr.msk.f32.mxu0 %vm141_vm1, %v2186_v60 }
 0xf45   :  { %5510 = vmatmul.mubr.msk.f32.vlgmr.msra.gmra.mrb[24].mxu0 %vm141_vm1, %v2187_v62 }
 0xf49   :  { %v6302_v8 = vpop.eup %6301 }
 0xf4a   :  { %v2164_v10 = vmul.f32 %v6302_v8, %v2132_v25  ;;  %v5879_v25 = vpack.c.bf16 %v2331_v24, %v2330_v21 }
 0xf4c   :  { %v2176_v12 = vmul.f32 %v2173_v63, %v2164_v10  ;;  %5880 = vmatprep.subr.bf16.mxu1 %v5879_v25 }
 0xf4d   :  { %v6304_v13 = vpop.eup %6303  ;;  %5882 = vmatpush3.bf16.msra.mxu1 %v5879_v25 }
 0xf4e   :  { %v2188_v14 = vadd.f32 %v2185_v11, %v2176_v12  ;;  %v2165_v15 = vmul.f32 %v6304_v13, %v2133_v39  ;;  %5884 = vmatprep.subr.bf16.mxu1 %v5883_v27  ;;  %v2334_v39 = vld [vmem:[%s7425_s4 + $0x30] sm:$0xff] }
 0xf4f   :  { %v5887_v28 = vpack.c.bf16 %v2335_v35, %v2334_v39 }
 0xf50   :  { %5512 = vmatprep.mubr.msk.f32.mxu0 %vm141_vm1, %v2188_v14  ;;  %v2177_v22 = vmul.f32 %v2173_v63, %v2165_v15 }
 0xf51   :  { %5886 = vmatpush3.bf16.msra.mxu1 %v5883_v27 }
 0xf52   :  { %v2189_v16 = vadd.f32 %v2185_v11, %v2177_v22  ;;  %5888 = vmatprep.subr.bf16.mxu1 %v5887_v28 }
 0xf54   :  { %5513 = vmatmul.mubr.msk.f32.gmra.mrb[26].mxu0 %vm141_vm1, %v2189_v16 }
 0xf55   :  { %5890 = vmatpush3.bf16.msra.mxu1 %v5887_v28 }
 0xf56   :  { %5892 = vmatprep.subr.bf16.mxu1 %v5891_v34 }
 0xf59   :  { %5894 = vmatpush3.bf16.msra.mxu1 %v5891_v34 }
 0xf5a   :  { %5896 = vmatprep.subr.bf16.mxu1 %v5895_v42 }
 0xf5d   :  { %5898 = vmatpush3.bf16.msra.mxu1 %v5895_v42 }
 0xf5e   :  { %5900 = vmatprep.subr.bf16.mxu1 %v5899_v44 }
 0xf61   :  { %5902 = vmatpush3.bf16.msra.mxu1 %v5899_v44  ;;  %v2437_v44 = vrot.slane %v6818_v7, %v6939_v43 }
 0xf62   :  { %5904 = vmatprep.subr.bf16.mxu1 %v5903_v48 }
 0xf65   :  { %5906 = vmatpush3.bf16.msra.mxu1 %v5903_v48 }
0x1018   :  { %v5511_v50 = vpop.f32.mrb[24].mxu0 }
0x1019   :  { %v2279_v52 = vadd.f32 %v5511_v50, %v2194_v33  ;;  %v2273_v41 = vpop.f32.mrb[25].mxu0 }
0x101a   :  { %v2274_v38 = vadd.f32 %v2273_v41, %v2194_v33 }
0x101b   :  { %v2293_v37 = vmul.f32 %v2279_v52, %v2279_v52 }
0x101c   :  { %v2292_v40 = vmul.f32 %v2274_v38, %v2274_v38 }
0x101d   :  { %v2297_v31 = vmul.f32 %v2293_v37, %v2279_v52 }
0x101e   :  { %v2296_v53 = vmul.f32 %v2292_v40, %v2274_v38 }
0x101f   :  { %v2301_v56 = vmul.f32 0.044715, %v2297_v31  ;;  %v2441_v31 = vrot.slane %v6835_v58, %v6939_v43 }
0x1020   :  { %v2300_v30 = vmul.f32 0.044715, %v2296_v53 }
0x1021   :  { %v2305_v57 = vadd.f32 %v2301_v56, %v2279_v52 }
0x1022   :  { %v2304_v18 = vadd.f32 %v2300_v30, %v2274_v38 }
0x1023   :  { %v2309_v59 = vmul.f32 0.7978846, %v2305_v57 }
0x1024   :  { %v2308_v17 = vmul.f32 0.7978846, %v2304_v18 }
0x1025   :  { %6305 = vtanh.f32 %v2309_v59 }
0x1026   :  { %6307 = vtanh.f32 %v2308_v17 }
0x1027   :  { %v5514_v60 = vpop.f32.mrb[26].mxu0 }
0x1028   :  { %v2289_v62 = vadd.f32 %v5514_v60, %v2194_v33  ;;  %v2283_v63 = vpop.f32.mrb[27].mxu0 }
0x1029   :  { %v2284_v8 = vadd.f32 %v2283_v63, %v2194_v33 }
0x102a   :  { %v2295_v10 = vmul.f32 %v2289_v62, %v2289_v62 }
0x102b   :  { %v2294_v11 = vmul.f32 %v2284_v8, %v2284_v8 }
0x102c   :  { %v2299_v12 = vmul.f32 %v2295_v10, %v2289_v62 }
0x102d   :  { %v2298_v13 = vmul.f32 %v2294_v11, %v2284_v8 }
0x102e   :  { %v2303_v14 = vmul.f32 0.044715, %v2299_v12 }
0x102f   :  { %v6306_v15 = vpop.eup %6305  ;;  %v2302_v22 = vmul.f32 0.044715, %v2298_v13 }
0x1030   :  { %v6308_v16 = vpop.eup %6307  ;;  %v2317_v19 = vadd.f32 1.0, %v6306_v15  ;;  %v2307_v23 = vadd.f32 %v2303_v14, %v2289_v62 }
0x1031   :  { %v2306_v20 = vadd.f32 %v2302_v22, %v2284_v8  ;;  %v2316_v21 = vadd.f32 1.0, %v6308_v16 }
0x1032   :  { %v2321_v24 = vmul.f32 0.5, %v2317_v19  ;;  %v2311_v25 = vmul.f32 0.7978846, %v2307_v23 }
0x1033   :  { %v2310_v26 = vmul.f32 0.7978846, %v2306_v20  ;;  %v2320_v32 = vmul.f32 0.5, %v2316_v21 }
0x1034   :  { %6309 = vtanh.f32 %v2311_v25  ;;  %v2325_v39 = vmul.f32 %v2321_v24, %v2279_v52 }
0x1035   :  { %v2324_v27 = vmul.f32 %v2320_v32, %v2274_v38  ;;  %6311 = vtanh.f32 %v2310_v26  ;;  %v5011_v32 = vld [vmem:[%s7423_s3 + $0x78] sm:$0xff] }
0x1037   :  { %5547 = vmatprep.mubr.f32.mxu1 %v2324_v27  ;;  %v5012_v27 = vld [vmem:[%s7423_s3 + $0x90] sm:$0xff] }
0x1038   :  { %5548 = vmatmul.mubr.f32.vlgmr.msra.gmra.mrb[20].mxu1 %v2325_v39  ;;  %v5907_v39 = vpack.c.bf16 %v5012_v27, %v5011_v32 }
0x103a   :  { %5908 = vmatprep.subr.bf16.mxu0 %v5907_v39 }
0x103b   :  { %5910 = vmatpush3.bf16.msra.mxu0 %v5907_v39 }
0x103e   :  { %v6310_v35 = vpop.eup %6309 }
0x103f   :  { %v6312_v28 = vpop.eup %6311  ;;  %v2319_v9 = vadd.f32 1.0, %v6310_v35  ;;  %v5013_v35 = vld [vmem:[%s7423_s3 + $0xa8] sm:$0xff] }
0x1040   :  { %v2318_v29 = vadd.f32 1.0, %v6312_v28  ;;  %v5014_v28 = vld [vmem:[%s7423_s3 + $0xc0] sm:$0xff] }
0x1041   :  { %v2323_v34 = vmul.f32 0.5, %v2319_v9  ;;  %v5911_v9 = vpack.c.bf16 %v5014_v28, %v5013_v35 }
0x1042   :  { %v2322_v36 = vmul.f32 0.5, %v2318_v29 }
0x1043   :  { %v2327_v42 = vmul.f32 %v2323_v34, %v2289_v62  ;;  %5912 = vmatprep.subr.bf16.mxu0 %v5911_v9 }
0x1044   :  { %v2326_v4 = vmul.f32 %v2322_v36, %v2284_v8  ;;  %5914 = vmatpush3.bf16.msra.mxu0 %v5911_v9 }
0x1046   :  { %5550 = vmatprep.mubr.f32.mxu1 %v2326_v4 }
0x1047   :  { %5551 = vmatmul.mubr.f32.gmra.mrb[22].mxu1 %v2327_v42 }
0x110b   :  { %v5549_v46 = vpop.f32.mrb[20].mxu1 }
0x110c   :  { %v2421_v47 = vadd.f32 %v5549_v46, %v5010_v3  ;;  %v2415_v48 = vpop.f32.mrb[21].mxu1  ;;  %v2516_v46 = vsub.s32 7, %v6536_v61 }
0x110d   :  { %v2416_v33 = vadd.f32 %v5010_v3, %v2415_v48 }
0x110e   :  { %v2443_v50 = vmul.f32 %v2437_v44, %v2421_v47 }
0x110f   :  { %v2442_v52 = vmul.f32 %v2437_v44, %v2416_v33  ;;  %v2504_v44 = vsub.s32 6, %v6536_v61 }
0x1110   :  { %v6947_v41 = vadd.f32 %v2443_v50, %v6823_v54 }
0x1111   :  { %v6950_v38 = vadd.f32 %v2442_v52, %v6826_v55  ;;  %v2505_v47 = vrot.slane %v6818_v7, %v2504_v44 }
0x1112   :  { %v2453_v37 = vsel %vm141_vm1, %v6947_v41, 0.0 }
0x1113   :  { %2454 = vadd.xlane.f32.xlu1 %v2453_v37  ;;  %v2450_v40 = vsel %vm141_vm1, %v6950_v38, 0.0 }
0x1114   :  { %2451 = vadd.xlane.f32.xlu0 %v2450_v40 }
0x111a   :  { %v5552_v53 = vpop.f32.mrb[22].mxu1 }
0x111b   :  { %v2431_v56 = vadd.f32 %v5552_v53, %v5010_v3  ;;  %v2425_v30 = vpop.f32.mrb[23].mxu1 }
0x111c   :  { %v2426_v57 = vadd.f32 %v5010_v3, %v2425_v30 }
0x111d   :  { %v2445_v54 = vmul.f32 %v2441_v31, %v2431_v56  ;;  %v2517_v56 = vrot.slane %v6818_v7, %v2516_v46  ;;  %v2521_v7 = vrot.slane %v6835_v58, %v2516_v46 }
0x111e   :  { %v2444_v18 = vmul.f32 %v2441_v31, %v2426_v57 }
0x111f   :  { %v6959_v55 = vadd.f32 %v2445_v54, %v6843_v1 }
0x1120   :  { %v6962_v59 = vadd.f32 %v2444_v18, %v6840_v0 }
0x1121   :  { %v2459_v17 = vsel %vm141_vm1, %v6959_v55, 0.0 }
0x1122   :  { %2460 = vadd.xlane.f32.xlu1 %v2459_v17  ;;  %v2456_v60 = vsel %vm141_vm1, %v6962_v59, 0.0 }
0x1123   :  { %2457 = vadd.xlane.f32.xlu0 %v2456_v60  ;;  %v2509_v60 = vrot.slane %v6835_v58, %v2504_v44 }
0x11a0   :  { %v2455_v62 = vpop.xlane.xlu1 %2454 }
0x11a1   :  { %v2463_v63 = vmul.f32 0.03125, %v2455_v62  ;;  %v2452_v8 = vpop.xlane.xlu0 %2451 }
0x11a2   :  { %v2462_v10 = vmul.f32 0.03125, %v2452_v8 }
0x11a3   :  { %v2467_v11 = vsub.f32 %v6947_v41, %v2463_v63 }
0x11a4   :  { %v2466_v1 = vsub.f32 %v6950_v38, %v2462_v10 }
0x11a5   :  { %v2471_v12 = vmul.f32 %v2467_v11, %v2467_v11 }
0x11a6   :  { %v2470_v13 = vmul.f32 %v2466_v1, %v2466_v1 }
0x11a7   :  { %v2477_v0 = vsel %vm141_vm1, %v2471_v12, 0.0 }
0x11a8   :  { %2478 = vadd.xlane.f32.xlu1 %v2477_v0  ;;  %v2474_v14 = vsel %vm141_vm1, %v2470_v13, 0.0  ;;  %v5015_v0 = vld [vmem:[%s7423_s3 + $0xd8] ss:$0 sm:$0xff] }
0x11a9   :  { %2475 = vadd.xlane.f32.xlu0 %v2474_v14 }
0x11af   :  { %v2461_v15 = vpop.xlane.xlu1 %2460 }
0x11b0   :  { %v2465_v22 = vmul.f32 0.03125, %v2461_v15  ;;  %v2458_v16 = vpop.xlane.xlu0 %2457 }
0x11b1   :  { %v2464_v19 = vmul.f32 0.03125, %v2458_v16 }
0x11b2   :  { %v2469_v23 = vsub.f32 %v6959_v55, %v2465_v22 }
0x11b3   :  { %v2468_v20 = vsub.f32 %v6962_v59, %v2464_v19 }
0x11b4   :  { %v2473_v21 = vmul.f32 %v2469_v23, %v2469_v23 }
0x11b5   :  { %v2472_v24 = vmul.f32 %v2468_v20, %v2468_v20 }
0x11b6   :  { %v2483_v25 = vsel %vm141_vm1, %v2473_v21, 0.0 }
0x11b7   :  { %2484 = vadd.xlane.f32.xlu1 %v2483_v25  ;;  %v2480_v26 = vsel %vm141_vm1, %v2472_v24, 0.0 }
0x11b8   :  { %2481 = vadd.xlane.f32.xlu0 %v2480_v26 }
0x1235   :  { %v2479_v29 = vpop.xlane.xlu1 %2478 }
0x1236   :  { %v2487_v34 = vmul.f32 0.03125, %v2479_v29  ;;  %v2476_v36 = vpop.xlane.xlu0 %2475 }
0x1237   :  { %v2486_v4 = vmul.f32 0.03125, %v2476_v36 }
0x1238   :  { %v2491_v42 = vadd.f32 1e-06, %v2487_v34 }
0x1239   :  { %v2490_v3 = vadd.f32 1e-06, %v2486_v4 }
0x123a   :  { %6313 = vrsqrt.f32 %v2491_v42 }
0x123b   :  { %6315 = vrsqrt.f32 %v2490_v3 }
0x1244   :  { %v6314_v48 = vpop.eup %6313  ;;  %v2485_v33 = vpop.xlane.xlu1 %2484 }
0x1245   :  { %v6316_v50 = vpop.eup %6315  ;;  %v2499_v52 = vmul.f32 %v6314_v48, %v2467_v11  ;;  %v2489_v37 = vmul.f32 0.03125, %v2485_v33  ;;  %v2482_v40 = vpop.xlane.xlu0 %2481 }
0x1246   :  { %v2488_v31 = vmul.f32 0.03125, %v2482_v40  ;;  %v2498_v53 = vmul.f32 %v6316_v50, %v2466_v1 }
0x1247   :  { %v2493_v30 = vadd.f32 1e-06, %v2489_v37  ;;  %v2511_v57 = vmul.f32 %v2505_v47, %v2499_v52 }
0x1248   :  { %v2492_v54 = vadd.f32 1e-06, %v2488_v31  ;;  %v2510_v18 = vmul.f32 %v2505_v47, %v2498_v53 }
0x1249   :  { %6317 = vrsqrt.f32 %v2493_v30  ;;  %v2523_v61 = vadd.f32 %v2517_v56, %v2511_v57 }
0x124a   :  { %6319 = vrsqrt.f32 %v2492_v54  ;;  %v2522_v17 = vadd.f32 %v2517_v56, %v2510_v18 }
0x124c   :  { %5561 = vmatprep.mubr.msk.f32.mxu0 %vm141_vm1, %v2522_v17 }
0x124d   :  { %5562 = vmatmul.mubr.msk.f32.vlgmr.msra.gmra.mrb[28].mxu0 %vm141_vm1, %v2523_v61 }
0x1253   :  { %v6318_v62 = vpop.eup %6317 }
0x1254   :  { %v6320_v63 = vpop.eup %6319  ;;  %v2501_v8 = vmul.f32 %v6318_v62, %v2469_v23 }
0x1255   :  { %v2500_v10 = vmul.f32 %v6320_v63, %v2468_v20 }
0x1256   :  { %v2513_v11 = vmul.f32 %v2509_v60, %v2501_v8 }
0x1257   :  { %v2512_v1 = vmul.f32 %v2509_v60, %v2500_v10 }
0x1258   :  { %v2525_v13 = vadd.f32 %v2521_v7, %v2513_v11 }
0x1259   :  { %v2524_v12 = vadd.f32 %v2521_v7, %v2512_v1 }
0x125b   :  { %5564 = vmatprep.mubr.msk.f32.mxu0 %vm141_vm1, %v2524_v12 }
0x125c   :  { %5565 = vmatmul.mubr.msk.f32.gmra.mrb[30].mxu0 %vm141_vm1, %v2525_v13 }
0x1320   :  { %v5563_v14 = vpop.f32.mrb[28].mxu0 }
0x1321   :  { %v7001_v15 = vadd.f32 %v5563_v14, %v5015_v0  ;;  %v2610_v22 = vpop.f32.mrb[29].mxu0 }
0x1322   :  { %v7003_v16 = vadd.f32 %v5015_v0, %v2610_v22 }
0x1324   :  { %5571 = vmatprep.mubr.msk.f32.mxu0 %vm327_vm2, %v7003_v16  ;;  %v7009_v58 = vpack.i.bf16 %v7001_v15, %v7003_v16 }
0x1326   :  { %6146 = vrot.lane.b32.xlu0 %v7009_v58, %s6411_s9 }
0x132f   :  { %v5566_v19 = vpop.f32.mrb[30].mxu0 }
0x1330   :  { %v7013_v23 = vadd.f32 %v5566_v19, %v5015_v0  ;;  %v2620_v20 = vpop.f32.mrb[31].mxu0 }
0x1331   :  { %v7015_v21 = vadd.f32 %v5015_v0, %v2620_v20 }
0x1333   :  { %v7019_v24 = vpack.i.bf16 %v7013_v23, %v7015_v21 }
0x1335   :  { %6151 = vrot.lane.b32.xlu1 %v7019_v24, %s6411_s9 }
0x1398   :  { %v6147_v25 = vpop.permute.xlu0 %6146 }
0x1399   :  { %v6149_v26 = vunpack.i.h.bf16 %v6147_v25  ;;  %v6148_v32 = vunpack.i.l.bf16 %v6147_v25 }
0x139b   :  { %v5915_v27 = vpack.c.bf16 %v6149_v26, %v6148_v32 }
0x139d   :  { %5917 = vmatprep.subr.msk.bf16.mxu0 %vm6587_vm3, %v5915_v27 }
0x139e   :  { %5920 = vmatpush3.bf16.xpose.msk.msra.mxu0 %vm6587_vm3, %v5915_v27 }
0x13a5   :  { %5572 = vmatmul.mubr.msk.f32.vlgmr.msra.gmra.mrb[32].mxu0 %vm327_vm2, %v7001_v15 }
0x13a6   :  { %5578 = vmatprep.mubr.msk.f32.mxu0 %vm327_vm2, %v7015_v21 }
0x13a7   :  { %v6152_v39 = vpop.permute.xlu1 %6151 }
0x13a8   :  { %v6154_v35 = vunpack.i.h.bf16 %v6152_v39  ;;  %v6153_v28 = vunpack.i.l.bf16 %v6152_v39 }
0x13aa   :  { %v5921_v9 = vpack.c.bf16 %v6154_v35, %v6153_v28 }
0x13ac   :  { %5923 = vmatprep.subr.msk.bf16.mxu0 %vm6587_vm3, %v5921_v9 }
0x13ad   :  { %5926 = vmatpush3.bf16.xpose.msk.msra.mxu0 %vm6587_vm3, %v5921_v9 }
0x13b4   :  { %5579 = vmatmul.mubr.msk.f32.vlgmr.msra.gmra.mrb[34].mxu0 %vm327_vm2, %v7013_v23 }
0x1478   :  { %v5573_v29 = vpop.f32.mrb[32].mxu0 }
0x1479   :  { %v2808_v34 = vmul.f32 0.35355338, %v5573_v29  ;;  %v2709_v36 = vpop.f32.mrb[33].mxu0 }
0x147a   :  { %v2807_v4 = vmul.f32 0.35355338, %v2709_v36 }
0x147b   :  { %v2814_v42 = vsel %vm504_vm4, %v2808_v34, -inf }
0x147c   :  { %2815 = vmax.xlane.f32.xlu0 %v2814_v42  ;;  %v2811_v3 = vsel %vm504_vm4, %v2807_v4, -inf }
0x147d   :  { %2812 = vmax.xlane.f32.xlu1 %v2811_v3 }
0x1487   :  { %v5580_v44 = vpop.f32.mrb[34].mxu0 }
0x1488   :  { %v2810_v46 = vmul.f32 0.35355338, %v5580_v44  ;;  %v2798_v47 = vpop.f32.mrb[35].mxu0 }
0x1489   :  { %v2809_v48 = vmul.f32 0.35355338, %v2798_v47 }
0x148a   :  { %v2820_v33 = vsel %vm504_vm4, %v2810_v46, -inf }
0x148b   :  { %2821 = vmax.xlane.f32.xlu1 %v2820_v33  ;;  %v2817_v50 = vsel %vm504_vm4, %v2809_v48, -inf }
0x148c   :  { %2818 = vmax.xlane.f32.xlu0 %v2817_v50 }
0x1509   :  { %v2816_v52 = vpop.xlane.xlu0 %2815 }
0x150a   :  { %v2824_v37 = vsub.f32 %v2808_v34, %v2816_v52  ;;  %v2813_v40 = vpop.xlane.xlu1 %2812 }
0x150b   :  { %v2823_v31 = vsub.f32 %v2807_v4, %v2813_v40 }
0x150c   :  { %v2829_v53 = vmul.f32 1.442695, %v2824_v37 }
0x150d   :  { %v2827_v56 = vmul.f32 1.442695, %v2823_v31 }
0x150e   :  { %6321 = vpow2.f32 %v2829_v53 }
0x150f   :  { %6323 = vpow2.f32 %v2827_v56 }
0x1518   :  { %v6322_v30 = vpop.eup %6321  ;;  %v2822_v60 = vpop.xlane.xlu1 %2821 }
0x1519   :  { %v6324_v57 = vpop.eup %6323  ;;  %v2838_v54 = vsel %vm504_vm4, %v6322_v30, 0.0  ;;  %v2819_v17 = vpop.xlane.xlu0 %2818  ;;  %v2826_v63 = vsub.f32 %v2810_v46, %v2822_v60 }
0x151a   :  { %2839 = vadd.xlane.f32.xlu1 %v2838_v54  ;;  %v2835_v18 = vsel %vm504_vm4, %v6324_v57, 0.0  ;;  %v2825_v61 = vsub.f32 %v2809_v48, %v2819_v17 }
0x151b   :  { %2836 = vadd.xlane.f32.xlu0 %v2835_v18  ;;  %v2833_v8 = vmul.f32 1.442695, %v2826_v63 }
0x151c   :  { %v2831_v62 = vmul.f32 1.442695, %v2825_v61 }
0x151e   :  { %6325 = vpow2.f32 %v2831_v62 }
0x151f   :  { %6327 = vpow2.f32 %v2833_v8 }
0x1528   :  { %v6326_v10 = vpop.eup %6325 }
0x1529   :  { %v2841_v7 = vsel %vm504_vm4, %v6326_v10, 0.0  ;;  %v6328_v11 = vpop.eup %6327 }
0x152a   :  { %v2844_v1 = vsel %vm504_vm4, %v6328_v11, 0.0 }
0x152b   :  { %6161 = vrot.lane.b32.xlu1 %v7019_v24, %s6412_s10 }
0x152f   :  { %6166 = vrot.lane.b32.xlu1 %v7009_v58, %s6413_s11 }
0x1531   :  { %6156 = vrot.lane.b32.xlu0 %v7009_v58, %s6412_s10 }
0x1533   :  { %6171 = vrot.lane.b32.xlu1 %v7019_v24, %s6413_s11 }
0x1550   :  { %2842 = vadd.xlane.f32.xlu0 %v2841_v7 }
0x1557   :  { %2845 = vadd.xlane.f32.xlu1 %v2844_v1 }
0x1566   :  { %3029 = vrot.lane.b32.xlu0 %v7003_v16, %s6414_s12 }
0x1568   :  { %3031 = vrot.lane.b32.xlu1 %v7001_v15, %s6414_s12 }
0x156a   :  { %3120 = vrot.lane.b32.xlu0 %v7015_v21, %s6414_s12 }
0x156c   :  { %3122 = vrot.lane.b32.xlu1 %v7013_v23, %s6414_s12 }
0x15a7   :  { %v2840_v12 = vpop.xlane.xlu1 %2839 }
0x15a8   :  { %6329 = vrcp.f32 %v2840_v12  ;;  %v2837_v13 = vpop.xlane.xlu0 %2836 }
0x15a9   :  { %6331 = vrcp.f32 %v2837_v13 }
0x15ab   :  { %v6162_v0 = vpop.permute.xlu1 %6161 }
0x15ac   :  { %v6157_v14 = vpop.permute.xlu0 %6156  ;;  %v6164_v22 = vunpack.i.h.bf16 %v6162_v0  ;;  %v6163_v19 = vunpack.i.l.bf16 %v6162_v0 }
0x15ad   :  { %v6159_v20 = vunpack.i.h.bf16 %v6157_v14  ;;  %v6158_v25 = vunpack.i.l.bf16 %v6157_v14 }
0x15ae   :  { %v5931_v35 = vpack.c.bf16 %v6164_v22, %v6163_v19 }
0x15af   :  { %v5927_v26 = vpack.c.bf16 %v6159_v20, %v6158_v25  ;;  %v6167_v32 = vpop.permute.xlu1 %6166 }
0x15b0   :  { %v6169_v27 = vunpack.i.h.bf16 %v6167_v32  ;;  %v6168_v39 = vunpack.i.l.bf16 %v6167_v32 }
0x15b1   :  { %5928 = vmatprep.subr.bf16.mxu0 %v5927_v26 }
0x15b2   :  { %v6330_v28 = vpop.eup %6329  ;;  %v5935_v9 = vpack.c.bf16 %v6169_v27, %v6168_v39  ;;  %5930 = vmatpush3.bf16.msra.mxu0 %v5927_v26 }
0x15b3   :  { %v6332_v29 = vpop.eup %6331  ;;  %v6172_v34 = vpop.permute.xlu1 %6171  ;;  %5932 = vmatprep.subr.bf16.mxu0 %v5931_v35  ;;  %v2852_v3 = vmul.f32 %v6330_v28, %v6322_v30 }
0x15b4   :  { %v6174_v36 = vunpack.i.h.bf16 %v6172_v34  ;;  %v6173_v4 = vunpack.i.l.bf16 %v6172_v34  ;;  %5937 = vmatprep.subr.msk.bf16.mxu1 %vm6587_vm3, %v5935_v9  ;;  %v2851_v42 = vmul.f32 %v6332_v29, %v6324_v57 }
0x15b5   :  { %5940 = vmatpush3.bf16.xpose.msk.msra.mxu1 %vm6587_vm3, %v5935_v9 }
0x15b6   :  { %v5941_v44 = vpack.c.bf16 %v6174_v36, %v6173_v4  ;;  %5585 = vmatprep.mubr.msk.f32.mxu0 %vm504_vm4, %v2851_v42 }
0x15b7   :  { %5586 = vmatmul.mubr.msk.f32.vlgmr.msra.gmra.mrb[36].mxu0 %vm504_vm4, %v2852_v3 }
0x15b8   :  { %5934 = vmatpush3.bf16.msra.mxu0 %v5931_v35 }
0x15b9   :  { %5943 = vmatprep.subr.msk.bf16.mxu0 %vm6587_vm3, %v5941_v44 }
0x15dd   :  { %v2843_v46 = vpop.xlane.xlu0 %2842 }
0x15de   :  { %6333 = vrcp.f32 %v2843_v46 }
0x15e1   :  { %v3030_v47 = vpop.permute.xlu0 %3029 }
0x15e2   :  { %5599 = vmatprep.mubr.msk.f32.mxu1 %vm327_vm2, %v3030_v47 }
0x15e4   :  { %v2846_v48 = vpop.xlane.xlu1 %2845 }
0x15e5   :  { %6335 = vrcp.f32 %v2846_v48  ;;  %v3121_v31 = vpop.permute.xlu0 %3120 }
0x15e8   :  { %v6334_v33 = vpop.eup %6333  ;;  %v3032_v50 = vpop.permute.xlu1 %3031 }
0x15e9   :  { %5600 = vmatmul.mubr.msk.f32.vlgmr.msra.gmra.mrb[24].mxu1 %vm327_vm2, %v3032_v50  ;;  %v2853_v52 = vmul.f32 %v6334_v33, %v6326_v10 }
0x15eb   :  { %5592 = vmatprep.mubr.msk.f32.mxu0 %vm504_vm4, %v2853_v52 }
0x15ec   :  { %v3123_v53 = vpop.permute.xlu1 %3122 }
0x15ef   :  { %v6336_v37 = vpop.eup %6335 }
0x15f0   :  { %v2854_v40 = vmul.f32 %v6336_v37, %v6328_v11 }
0x15f2   :  { %5593 = vmatmul.mubr.msk.f32.vlgmr.msra.gmra.mrb[38].mxu0 %vm504_vm4, %v2854_v40 }
0x15f3   :  { %5946 = vmatpush3.bf16.xpose.msk.msra.mxu0 %vm6587_vm3, %v5941_v44  ;;  %5606 = vmatprep.mubr.msk.f32.mxu0 %vm327_vm2, %v3121_v31 }
0x15fa   :  { %5607 = vmatmul.mubr.msk.f32.vlgmr.msra.gmra.mrb[40].mxu0 %vm327_vm2, %v3123_v53 }
0x168a   :  { %v7077_v56 = vpop.f32.mrb[36].mxu0 }
0x168b   :  { %v7079_v30 = vpop.f32.mrb[37].mxu0 }
0x16bc   :  { %v5601_v57 = vpop.f32.mrb[24].mxu1 }
0x16bd   :  { %v3212_v54 = vmul.f32 0.35355338, %v5601_v57  ;;  %v3111_v18 = vpop.f32.mrb[25].mxu1 }
0x16be   :  { %v3211_v17 = vmul.f32 0.35355338, %v3111_v18 }
0x16bf   :  { %v3218_v61 = vsel %vm504_vm4, %v3212_v54, -inf }
0x16c0   :  { %3219 = vmax.xlane.f32.xlu1 %v3218_v61  ;;  %v3215_v60 = vsel %vm504_vm4, %v3211_v17, -inf }
0x16c1   :  { %3216 = vmax.xlane.f32.xlu0 %v3215_v60 }
0x16c5   :  { %v7083_v62 = vpop.f32.mrb[38].mxu0 }
0x16c6   :  { %v7085_v63 = vpop.f32.mrb[39].mxu0 }
0x16cd   :  { %v5608_v8 = vpop.f32.mrb[40].mxu0 }
0x16ce   :  { %v3202_v10 = vpop.f32.mrb[41].mxu0  ;;  %v3214_v11 = vmul.f32 0.35355338, %v5608_v8 }
0x16cf   :  { %v3213_v7 = vmul.f32 0.35355338, %v3202_v10 }
0x16d0   :  { %v3224_v12 = vsel %vm504_vm4, %v3214_v11, -inf }
0x16d1   :  { %v3221_v1 = vsel %vm504_vm4, %v3213_v7, -inf }
0x16d2   :  { %3222 = vmax.xlane.f32.xlu0 %v3221_v1 }
0x16d6   :  { %3225 = vmax.xlane.f32.xlu0 %v3224_v12 }
0x174d   :  { %v3220_v13 = vpop.xlane.xlu1 %3219 }
0x174e   :  { %v3228_v0 = vsub.f32 %v3212_v54, %v3220_v13  ;;  %v3217_v14 = vpop.xlane.xlu0 %3216 }
0x174f   :  { %v3227_v22 = vsub.f32 %v3211_v17, %v3217_v14 }
0x1750   :  { %v3233_v19 = vmul.f32 1.442695, %v3228_v0 }
0x1751   :  { %v3231_v20 = vmul.f32 1.442695, %v3227_v22 }
0x1752   :  { %6337 = vpow2.f32 %v3233_v19 }
0x1753   :  { %6339 = vpow2.f32 %v3231_v20 }
0x175c   :  { %v6338_v25 = vpop.eup %6337 }
0x175d   :  { %v6340_v26 = vpop.eup %6339  ;;  %v3242_v32 = vsel %vm504_vm4, %v6338_v25, 0.0 }
0x175e   :  { %3243 = vadd.xlane.f32.xlu1 %v3242_v32  ;;  %v3239_v27 = vsel %vm504_vm4, %v6340_v26, 0.0 }
0x175f   :  { %3240 = vadd.xlane.f32.xlu0 %v3239_v27  ;;  %v3223_v39 = vpop.xlane.xlu0 %3222 }
0x1760   :  { %v3229_v35 = vsub.f32 %v3213_v7, %v3223_v39 }
0x1762   :  { %v3235_v28 = vmul.f32 1.442695, %v3229_v35 }
0x1763   :  { %v3226_v9 = vpop.xlane.xlu0 %3225 }
0x1764   :  { %v3230_v29 = vsub.f32 %v3214_v11, %v3226_v9  ;;  %6341 = vpow2.f32 %v3235_v28 }
0x1766   :  { %v3237_v34 = vmul.f32 1.442695, %v3230_v29 }
0x1768   :  { %6343 = vpow2.f32 %v3237_v34 }
0x176e   :  { %v6342_v36 = vpop.eup %6341 }
0x176f   :  { %6181 = vrot.lane.b32.xlu1 %v7019_v24, %s6415_s13  ;;  %v3245_v4 = vsel %vm504_vm4, %v6342_v36, 0.0 }
0x1772   :  { %v6344_v42 = vpop.eup %6343 }
0x1773   :  { %6186 = vrot.lane.b32.xlu1 %v7009_v58, %s6416_s14  ;;  %v3248_v3 = vsel %vm504_vm4, %v6344_v42, 0.0 }
0x1775   :  { %6176 = vrot.lane.b32.xlu0 %v7009_v58, %s6415_s13 }
0x1777   :  { %6191 = vrot.lane.b32.xlu1 %v7019_v24, %s6416_s14 }
0x1794   :  { %3246 = vadd.xlane.f32.xlu0 %v3245_v4 }
0x179b   :  { %3249 = vadd.xlane.f32.xlu1 %v3248_v3 }
0x17aa   :  { %3433 = vrot.lane.b32.xlu0 %v7003_v16, %s6417_s15 }
0x17ac   :  { %3435 = vrot.lane.b32.xlu1 %v7001_v15, %s6417_s15 }
0x17ae   :  { %3524 = vrot.lane.b32.xlu0 %v7015_v21, %s6417_s15 }
0x17b0   :  { %3526 = vrot.lane.b32.xlu1 %v7013_v23, %s6417_s15 }
0x17eb   :  { %v3244_v44 = vpop.xlane.xlu1 %3243 }
0x17ec   :  { %6345 = vrcp.f32 %v3244_v44  ;;  %v3241_v46 = vpop.xlane.xlu0 %3240 }
0x17ed   :  { %6347 = vrcp.f32 %v3241_v46 }
0x17ef   :  { %v6182_v47 = vpop.permute.xlu1 %6181 }
0x17f0   :  { %v6184_v48 = vunpack.i.h.bf16 %v6182_v47  ;;  %v6183_v33 = vunpack.i.l.bf16 %v6182_v47  ;;  %v6177_v50 = vpop.permute.xlu0 %6176 }
0x17f1   :  { %v6179_v52 = vunpack.i.h.bf16 %v6177_v50  ;;  %v6178_v37 = vunpack.i.l.bf16 %v6177_v50 }
0x17f2   :  { %v5951_v40 = vpack.c.bf16 %v6184_v48, %v6183_v33 }
0x17f3   :  { %v5947_v31 = vpack.c.bf16 %v6179_v52, %v6178_v37  ;;  %v6187_v53 = vpop.permute.xlu1 %6186 }
0x17f4   :  { %v6189_v57 = vunpack.i.h.bf16 %v6187_v53  ;;  %v6188_v54 = vunpack.i.l.bf16 %v6187_v53  ;;  %5952 = vmatprep.subr.bf16.mxu0 %v5951_v40 }
0x17f5   :  { %5948 = vmatprep.subr.bf16.mxu1 %v5947_v31  ;;  %5954 = vmatpush3.bf16.msra.mxu0 %v5951_v40 }
0x17f6   :  { %v6346_v18 = vpop.eup %6345  ;;  %v5955_v17 = vpack.c.bf16 %v6189_v57, %v6188_v54  ;;  %5950 = vmatpush3.bf16.msra.mxu1 %v5947_v31 }
0x17f7   :  { %v6348_v61 = vpop.eup %6347  ;;  %v6192_v60 = vpop.permute.xlu1 %6191  ;;  %v3256_v11 = vmul.f32 %v6346_v18, %v6338_v25 }
0x17f8   :  { %v6194_v8 = vunpack.i.h.bf16 %v6192_v60  ;;  %v6193_v10 = vunpack.i.l.bf16 %v6192_v60  ;;  %5957 = vmatprep.subr.msk.bf16.mxu1 %vm6587_vm3, %v5955_v17  ;;  %v3255_v7 = vmul.f32 %v6348_v61, %v6340_v26 }
0x17fa   :  { %v5961_v1 = vpack.c.bf16 %v6194_v8, %v6193_v10  ;;  %5613 = vmatprep.mubr.msk.f32.mxu1 %vm504_vm4, %v3255_v7 }
0x17fb   :  { %5614 = vmatmul.mubr.msk.f32.vlgmr.msra.gmra.mrb[26].mxu1 %vm504_vm4, %v3256_v11 }
0x17fc   :  { %5963 = vmatprep.subr.msk.bf16.mxu0 %vm6587_vm3, %v5961_v1 }
0x17ff   :  { %5960 = vmatpush3.bf16.xpose.msk.msra.mxu1 %vm6587_vm3, %v5955_v17 }
0x1821   :  { %v3247_v12 = vpop.xlane.xlu0 %3246 }
0x1822   :  { %6349 = vrcp.f32 %v3247_v12 }
0x1825   :  { %v3434_v13 = vpop.permute.xlu0 %3433 }
0x1826   :  { %5627 = vmatprep.mubr.msk.f32.mxu1 %vm327_vm2, %v3434_v13 }
0x1828   :  { %v3250_v0 = vpop.xlane.xlu1 %3249 }
0x1829   :  { %6351 = vrcp.f32 %v3250_v0  ;;  %v3525_v26 = vpop.permute.xlu0 %3524 }
0x182c   :  { %v6350_v14 = vpop.eup %6349  ;;  %v3436_v22 = vpop.permute.xlu1 %3435 }
0x182d   :  { %5628 = vmatmul.mubr.msk.f32.vlgmr.msra.gmra.mrb[28].mxu1 %vm327_vm2, %v3436_v22  ;;  %v3257_v19 = vmul.f32 %v6350_v14, %v6342_v36 }
0x182f   :  { %5620 = vmatprep.mubr.msk.f32.mxu0 %vm504_vm4, %v3257_v19 }
0x1830   :  { %v3527_v32 = vpop.permute.xlu1 %3526 }
0x1833   :  { %v6352_v20 = vpop.eup %6351 }
0x1834   :  { %v3258_v25 = vmul.f32 %v6352_v20, %v6344_v42 }
0x1836   :  { %5621 = vmatmul.mubr.msk.f32.vlgmr.msra.gmra.mrb[42].mxu0 %vm504_vm4, %v3258_v25 }
0x1837   :  { %5966 = vmatpush3.bf16.xpose.msk.msra.mxu0 %vm6587_vm3, %v5961_v1  ;;  %5634 = vmatprep.mubr.msk.f32.mxu0 %vm327_vm2, %v3525_v26 }
0x183e   :  { %5635 = vmatmul.mubr.msk.f32.vlgmr.msra.gmra.mrb[44].mxu0 %vm327_vm2, %v3527_v32 }
0x18ce   :  { %v7125_v27 = vpop.f32.mrb[26].mxu1 }
0x18cf   :  { %v7127_v39 = vpop.f32.mrb[27].mxu1 }
0x1900   :  { %v5629_v35 = vpop.f32.mrb[28].mxu1 }
0x1901   :  { %v3616_v28 = vmul.f32 0.35355338, %v5629_v35  ;;  %v3515_v9 = vpop.f32.mrb[29].mxu1 }
0x1902   :  { %v3615_v29 = vmul.f32 0.35355338, %v3515_v9 }
0x1903   :  { %v3622_v34 = vsel %vm504_vm4, %v3616_v28, -inf }
0x1904   :  { %3623 = vmax.xlane.f32.xlu1 %v3622_v34  ;;  %v3619_v36 = vsel %vm504_vm4, %v3615_v29, -inf }
0x1905   :  { %3620 = vmax.xlane.f32.xlu0 %v3619_v36 }
0x1909   :  { %v7131_v4 = vpop.f32.mrb[42].mxu0 }
0x190a   :  { %v7133_v42 = vpop.f32.mrb[43].mxu0 }
0x1911   :  { %v5636_v3 = vpop.f32.mrb[44].mxu0 }
0x1912   :  { %v3606_v44 = vpop.f32.mrb[45].mxu0  ;;  %v3618_v47 = vmul.f32 0.35355338, %v5636_v3 }
0x1913   :  { %v3617_v46 = vmul.f32 0.35355338, %v3606_v44 }
0x1914   :  { %v3628_v33 = vsel %vm504_vm4, %v3618_v47, -inf }
0x1915   :  { %v3625_v48 = vsel %vm504_vm4, %v3617_v46, -inf }
0x1916   :  { %3626 = vmax.xlane.f32.xlu0 %v3625_v48 }
0x191a   :  { %3629 = vmax.xlane.f32.xlu0 %v3628_v33 }
0x1991   :  { %v3624_v50 = vpop.xlane.xlu1 %3623 }
0x1992   :  { %v3632_v52 = vsub.f32 %v3616_v28, %v3624_v50  ;;  %v3621_v37 = vpop.xlane.xlu0 %3620 }
0x1993   :  { %v3631_v40 = vsub.f32 %v3615_v29, %v3621_v37 }
0x1994   :  { %v3637_v31 = vmul.f32 1.442695, %v3632_v52 }
0x1995   :  { %v3635_v53 = vmul.f32 1.442695, %v3631_v40 }
0x1996   :  { %6353 = vpow2.f32 %v3637_v31 }
0x1997   :  { %6355 = vpow2.f32 %v3635_v53 }
0x19a0   :  { %v6354_v57 = vpop.eup %6353 }
0x19a1   :  { %v6356_v54 = vpop.eup %6355  ;;  %v3646_v18 = vsel %vm504_vm4, %v6354_v57, 0.0 }
0x19a2   :  { %3647 = vadd.xlane.f32.xlu1 %v3646_v18  ;;  %v3643_v17 = vsel %vm504_vm4, %v6356_v54, 0.0 }
0x19a3   :  { %3644 = vadd.xlane.f32.xlu0 %v3643_v17  ;;  %v3627_v61 = vpop.xlane.xlu0 %3626 }
0x19a4   :  { %v3633_v60 = vsub.f32 %v3617_v46, %v3627_v61 }
0x19a6   :  { %v3639_v8 = vmul.f32 1.442695, %v3633_v60 }
0x19a7   :  { %v3630_v10 = vpop.xlane.xlu0 %3629 }
0x19a8   :  { %v3634_v7 = vsub.f32 %v3618_v47, %v3630_v10  ;;  %6357 = vpow2.f32 %v3639_v8 }
0x19aa   :  { %v3641_v11 = vmul.f32 1.442695, %v3634_v7 }
0x19ac   :  { %6359 = vpow2.f32 %v3641_v11 }
0x19b2   :  { %v6358_v1 = vpop.eup %6357 }
0x19b3   :  { %6201 = vrot.lane.b32.xlu1 %v7019_v24, %s6418_s16  ;;  %v3649_v12 = vsel %vm504_vm4, %v6358_v1, 0.0 }
0x19b6   :  { %v6360_v13 = vpop.eup %6359 }
0x19b7   :  { %6206 = vrot.lane.b32.xlu1 %v7009_v58, %s6419_s17  ;;  %v3652_v0 = vsel %vm504_vm4, %v6360_v13, 0.0 }
0x19b9   :  { %6196 = vrot.lane.b32.xlu0 %v7009_v58, %s6418_s16 }
0x19bb   :  { %6211 = vrot.lane.b32.xlu1 %v7019_v24, %s6419_s17 }
0x19d8   :  { %3650 = vadd.xlane.f32.xlu0 %v3649_v12 }
0x19df   :  { %3653 = vadd.xlane.f32.xlu1 %v3652_v0 }
0x19ee   :  { %3837 = vrot.lane.b32.xlu0 %v7003_v16, %s6420_s18 }
0x19f0   :  { %3839 = vrot.lane.b32.xlu1 %v7001_v15, %s6420_s18 }
0x19f2   :  { %3928 = vrot.lane.b32.xlu0 %v7015_v21, %s6420_s18 }
0x19f4   :  { %3930 = vrot.lane.b32.xlu1 %v7013_v23, %s6420_s18 }
0x1a2f   :  { %v3648_v14 = vpop.xlane.xlu1 %3647 }
0x1a30   :  { %6361 = vrcp.f32 %v3648_v14  ;;  %v3645_v22 = vpop.xlane.xlu0 %3644 }
0x1a31   :  { %6363 = vrcp.f32 %v3645_v22 }
0x1a33   :  { %v6202_v19 = vpop.permute.xlu1 %6201 }
0x1a34   :  { %v6204_v20 = vunpack.i.h.bf16 %v6202_v19  ;;  %v6203_v25 = vunpack.i.l.bf16 %v6202_v19  ;;  %v6197_v26 = vpop.permute.xlu0 %6196 }
0x1a35   :  { %v6199_v32 = vunpack.i.h.bf16 %v6197_v26  ;;  %v6198_v35 = vunpack.i.l.bf16 %v6197_v26 }
0x1a36   :  { %v5971_v16 = vpack.c.bf16 %v6204_v20, %v6203_v25 }
0x1a37   :  { %v5967_v28 = vpack.c.bf16 %v6199_v32, %v6198_v35  ;;  %v6207_v9 = vpop.permute.xlu1 %6206 }
0x1a38   :  { %v6209_v15 = vunpack.i.h.bf16 %v6207_v9  ;;  %v6208_v29 = vunpack.i.l.bf16 %v6207_v9  ;;  %5972 = vmatprep.subr.bf16.mxu0 %v5971_v16 }
0x1a39   :  { %5968 = vmatprep.subr.bf16.mxu1 %v5967_v28  ;;  %5974 = vmatpush3.bf16.msra.mxu0 %v5971_v16 }
0x1a3a   :  { %v6362_v21 = vpop.eup %6361  ;;  %v5975_v23 = vpack.c.bf16 %v6209_v15, %v6208_v29  ;;  %5970 = vmatpush3.bf16.msra.mxu1 %v5967_v28 }
0x1a3b   :  { %v6364_v34 = vpop.eup %6363  ;;  %v6212_v36 = vpop.permute.xlu1 %6211  ;;  %v3660_v47 = vmul.f32 %v6362_v21, %v6354_v57 }
0x1a3c   :  { %v6214_v3 = vunpack.i.h.bf16 %v6212_v36  ;;  %v6213_v44 = vunpack.i.l.bf16 %v6212_v36  ;;  %5977 = vmatprep.subr.msk.bf16.mxu1 %vm6587_vm3, %v5975_v23  ;;  %v3659_v46 = vmul.f32 %v6364_v34, %v6356_v54 }
0x1a3e   :  { %v5981_v48 = vpack.c.bf16 %v6214_v3, %v6213_v44  ;;  %5641 = vmatprep.mubr.msk.f32.mxu1 %vm504_vm4, %v3659_v46 }
0x1a3f   :  { %5642 = vmatmul.mubr.msk.f32.vlgmr.msra.gmra.mrb[30].mxu1 %vm504_vm4, %v3660_v47 }
0x1a40   :  { %5983 = vmatprep.subr.msk.bf16.mxu0 %vm6587_vm3, %v5981_v48 }
0x1a43   :  { %5980 = vmatpush3.bf16.xpose.msk.msra.mxu1 %vm6587_vm3, %v5975_v23 }
0x1a65   :  { %v3651_v33 = vpop.xlane.xlu0 %3650 }
0x1a66   :  { %6365 = vrcp.f32 %v3651_v33 }
0x1a69   :  { %v3838_v50 = vpop.permute.xlu0 %3837 }
0x1a6a   :  { %5655 = vmatprep.mubr.msk.f32.mxu1 %vm327_vm2, %v3838_v50 }
0x1a6c   :  { %v3654_v52 = vpop.xlane.xlu1 %3653 }
0x1a6d   :  { %6367 = vrcp.f32 %v3654_v52  ;;  %v3929_v54 = vpop.permute.xlu0 %3928 }
0x1a70   :  { %v6366_v37 = vpop.eup %6365  ;;  %v3840_v40 = vpop.permute.xlu1 %3839 }
0x1a71   :  { %5656 = vmatmul.mubr.msk.f32.vlgmr.msra.gmra.mrb[32].mxu1 %vm327_vm2, %v3840_v40  ;;  %v3661_v31 = vmul.f32 %v6366_v37, %v6358_v1 }
0x1a73   :  { %5648 = vmatprep.mubr.msk.f32.mxu0 %vm504_vm4, %v3661_v31 }
0x1a74   :  { %v3931_v18 = vpop.permute.xlu1 %3930 }
0x1a77   :  { %v6368_v53 = vpop.eup %6367 }
0x1a78   :  { %v3662_v57 = vmul.f32 %v6368_v53, %v6360_v13 }
0x1a7a   :  { %5649 = vmatmul.mubr.msk.f32.vlgmr.msra.gmra.mrb[46].mxu0 %vm504_vm4, %v3662_v57 }
0x1a7b   :  { %5986 = vmatpush3.bf16.xpose.msk.msra.mxu0 %vm6587_vm3, %v5981_v48  ;;  %5662 = vmatprep.mubr.msk.f32.mxu0 %vm327_vm2, %v3929_v54 }
0x1a82   :  { %5663 = vmatmul.mubr.msk.f32.vlgmr.msra.gmra.mrb[48].mxu0 %vm327_vm2, %v3931_v18 }
0x1b12   :  { %v5643_v17 = vpop.f32.mrb[30].mxu1 }
0x1b13   :  { %v3741_v61 = vpop.f32.mrb[31].mxu1 }
0x1b44   :  { %v5657_v60 = vpop.f32.mrb[32].mxu1 }
0x1b45   :  { %v4020_v8 = vmul.f32 0.35355338, %v5657_v60  ;;  %v3919_v10 = vpop.f32.mrb[33].mxu1 }
0x1b46   :  { %v4019_v7 = vmul.f32 0.35355338, %v3919_v10 }
0x1b47   :  { %v4026_v11 = vsel %vm504_vm4, %v4020_v8, -inf }
0x1b48   :  { %4027 = vmax.xlane.f32.xlu1 %v4026_v11  ;;  %v4023_v1 = vsel %vm504_vm4, %v4019_v7, -inf }
0x1b49   :  { %4024 = vmax.xlane.f32.xlu0 %v4023_v1 }
0x1b4d   :  { %v7175_v12 = vpop.f32.mrb[46].mxu0 }
0x1b4e   :  { %v7177_v45 = vpop.f32.mrb[47].mxu0 }
0x1b55   :  { %v5664_v13 = vpop.f32.mrb[48].mxu0 }
0x1b56   :  { %v4010_v0 = vpop.f32.mrb[49].mxu0  ;;  %v4022_v22 = vmul.f32 0.35355338, %v5664_v13  ;;  %v5068_v13 = vld [vmem:[%s7423_s3 + $0x80] sm:$0xff] }
0x1b57   :  { %v4021_v14 = vmul.f32 0.35355338, %v4010_v0  ;;  %v5069_v0 = vld [vmem:[%s7423_s3 + $0x98] sm:$0xff] }
0x1b58   :  { %v4032_v20 = vsel %vm504_vm4, %v4022_v22, -inf }
0x1b59   :  { %v4029_v19 = vsel %vm504_vm4, %v4021_v14, -inf }
0x1b5a   :  { %4030 = vmax.xlane.f32.xlu0 %v4029_v19  ;;  %v5071_v19 = vld [vmem:[%s7423_s3 + $0xc8] sm:$0xff] }
0x1b5e   :  { %4033 = vmax.xlane.f32.xlu0 %v4032_v20 }
0x1bd5   :  { %v4028_v25 = vpop.xlane.xlu1 %4027 }
0x1bd6   :  { %v4036_v26 = vsub.f32 %v4020_v8, %v4028_v25  ;;  %v4025_v32 = vpop.xlane.xlu0 %4024 }
0x1bd7   :  { %v4035_v35 = vsub.f32 %v4019_v7, %v4025_v32 }
0x1bd8   :  { %v4041_v16 = vmul.f32 1.442695, %v4036_v26 }
0x1bd9   :  { %v4039_v28 = vmul.f32 1.442695, %v4035_v35 }
0x1bda   :  { %6369 = vpow2.f32 %v4041_v16 }
0x1bdb   :  { %6371 = vpow2.f32 %v4039_v28 }
0x1be4   :  { %v6370_v9 = vpop.eup %6369 }
0x1be5   :  { %v6372_v15 = vpop.eup %6371  ;;  %v4050_v29 = vsel %vm504_vm4, %v6370_v9, 0.0 }
0x1be6   :  { %4051 = vadd.xlane.f32.xlu1 %v4050_v29  ;;  %v4047_v21 = vsel %vm504_vm4, %v6372_v15, 0.0 }
0x1be7   :  { %v4031_v23 = vpop.xlane.xlu0 %4030  ;;  %4048 = vadd.xlane.f32.xlu0 %v4047_v21 }
0x1be8   :  { %v4037_v34 = vsub.f32 %v4021_v14, %v4031_v23  ;;  %v5070_v14 = vld [vmem:[%s7423_s3 + $0xb0] sm:$0xff] }
0x1be9   :  { %v5999_v20 = vpack.c.bf16 %v5071_v19, %v5070_v14 }
0x1bea   :  { %v4043_v36 = vmul.f32 1.442695, %v4037_v34 }
0x1beb   :  { %v4034_v3 = vpop.xlane.xlu0 %4033 }
0x1bec   :  { %6373 = vpow2.f32 %v4043_v36  ;;  %v4038_v44 = vsub.f32 %v4022_v22, %v4034_v3  ;;  %v5995_v22 = vpack.c.bf16 %v5069_v0, %v5068_v13 }
0x1bee   :  { %v4045_v46 = vmul.f32 1.442695, %v4038_v44 }
0x1bf0   :  { %6375 = vpow2.f32 %v4045_v46 }
0x1bf6   :  { %v6374_v47 = vpop.eup %6373 }
0x1bf7   :  { %v4053_v48 = vsel %vm504_vm4, %v6374_v47, 0.0 }
0x1bf8   :  { %4054 = vadd.xlane.f32.xlu0 %v4053_v48 }
0x1bfa   :  { %v6376_v33 = vpop.eup %6375 }
0x1bfb   :  { %v4056_v50 = vsel %vm504_vm4, %v6376_v33, 0.0 }
0x1bfc   :  { %4057 = vadd.xlane.f32.xlu1 %v4056_v50 }
0x1c0d   :  { %6221 = vrot.lane.b32.xlu1 %v7019_v24, %s6421_s19 }
0x1c0e   :  { %6216 = vrot.lane.b32.xlu0 %v7009_v58, %s6421_s19 }
0x1c11   :  { %4245 = vrot.lane.b32.xlu1 %v7127_v39, %s6422_s20 }
0x1c12   :  { %4261 = vrot.lane.b32.xlu0 %v3741_v61, %s6423_s0 }
0x1c15   :  { %4247 = vrot.lane.b32.xlu1 %v7125_v27, %s6422_s20 }
0x1c19   :  { %4263 = vrot.lane.b32.xlu1 %v5643_v17, %s6423_s0 }
0x1c73   :  { %v4052_v40 = vpop.xlane.xlu1 %4051 }
0x1c74   :  { %v4049_v52 = vpop.xlane.xlu0 %4048 }
0x1c75   :  { %6377 = vrcp.f32 %v4049_v52 }
0x1c76   :  { %6379 = vrcp.f32 %v4052_v40 }
0x1c7f   :  { %v6378_v37 = vpop.eup %6377 }
0x1c80   :  { %v4063_v31 = vmul.f32 %v6378_v37, %v6372_v15  ;;  %v6380_v18 = vpop.eup %6379 }
0x1c81   :  { %v4064_v8 = vmul.f32 %v6380_v18, %v6370_v9 }
0x1c82   :  { %5669 = vmatprep.mubr.msk.f32.mxu1 %vm504_vm4, %v4063_v31 }
0x1c85   :  { %v4055_v24 = vpop.xlane.xlu0 %4054 }
0x1c86   :  { %6381 = vrcp.f32 %v4055_v24 }
0x1c89   :  { %v4058_v58 = vpop.xlane.xlu1 %4057  ;;  %v6217_v53 = vpop.permute.xlu0 %6216 }
0x1c8a   :  { %6383 = vrcp.f32 %v4058_v58  ;;  %v6219_v39 = vunpack.i.h.bf16 %v6217_v53  ;;  %v6218_v57 = vunpack.i.l.bf16 %v6217_v53 }
0x1c8c   :  { %v5987_v54 = vpack.c.bf16 %v6219_v39, %v6218_v57 }
0x1c8d   :  { %v6222_v27 = vpop.permute.xlu1 %6221  ;;  %v4262_v15 = vpop.permute.xlu0 %4261 }
0x1c8e   :  { %v6224_v61 = vunpack.i.h.bf16 %v6222_v27  ;;  %v6223_v17 = vunpack.i.l.bf16 %v6222_v27  ;;  %5988 = vmatprep.subr.bf16.mxu1 %v5987_v54 }
0x1c8f   :  { %5990 = vmatpush3.bf16.msra.mxu1 %v5987_v54 }
0x1c90   :  { %v6382_v60 = vpop.eup %6381  ;;  %v5991_v10 = vpack.c.bf16 %v6224_v61, %v6223_v17  ;;  %5996 = vmatprep.subr.bf16.mxu1 %v5995_v22  ;;  %v7266_v17 = vld [vmem:[%s7424_s2 + $0x18] sm:$0x3f] }
0x1c91   :  { %v4065_v7 = vmul.f32 %v6382_v60, %v6374_v47  ;;  %v4246_v16 = vpop.permute.xlu1 %4245 }
0x1c92   :  { %5670 = vmatmul.mubr.msk.f32.vlgmr.msra.gmra.mrb[34].mxu1 %vm504_vm4, %v4064_v8  ;;  %5992 = vmatprep.subr.bf16.mxu0 %v5991_v10 }
0x1c93   :  { %5994 = vmatpush3.bf16.msra.mxu0 %v5991_v10  ;;  %5676 = vmatprep.mubr.msk.f32.mxu0 %vm504_vm4, %v4065_v7 }
0x1c94   :  { %v6384_v11 = vpop.eup %6383  ;;  %5998 = vmatpush3.bf16.msra.mxu1 %v5995_v22 }
0x1c95   :  { %v4066_v1 = vmul.f32 %v6384_v11, %v6376_v33  ;;  %6000 = vmatprep.subr.bf16.mxu1 %v5999_v20  ;;  %v4248_v28 = vpop.permute.xlu1 %4247 }
0x1c97   :  { %5677 = vmatmul.mubr.msk.f32.vlgmr.msra.gmra.mrb[50].mxu0 %vm504_vm4, %v4066_v1 }
0x1c98   :  { %6002 = vmatpush3.bf16.msra.mxu1 %v5999_v20 }
0x1c99   :  { %v4264_v9 = vpop.permute.xlu1 %4263 }
0x1d65   :  { %v5671_v25 = vpop.f32.mrb[34].mxu1 }
0x1d66   :  { %4279 = vrot.lane.b32.xlu1 %v5671_v25, %s6424_s28  ;;  %v4145_v26 = vpop.f32.mrb[35].mxu1 }
0x1d67   :  { %4277 = vrot.lane.b32.xlu0 %v4145_v26, %s6424_s28 }
0x1d6a   :  { %v5678_v32 = vpop.f32.mrb[50].mxu0  ;;  %4251 = vrot.lane.b32.xlu1 %v7131_v4, %s6422_s20  ;;  %v4289_v4 = vsel %vm327_vm2, %v7079_v30, %v4246_v16 }
0x1d6b   :  { %v4232_v35 = vpop.f32.mrb[51].mxu0  ;;  %4249 = vrot.lane.b32.xlu0 %v7133_v42, %s6422_s20  ;;  %v4290_v42 = vsel %vm327_vm2, %v7077_v56, %v4248_v28 }
0x1d6e   :  { %4267 = vrot.lane.b32.xlu1 %v7175_v12, %s6423_s0  ;;  %v4293_v12 = vsel %vm504_vm4, %v4289_v4, %v4262_v15 }
0x1d6f   :  { %4265 = vrot.lane.b32.xlu0 %v7177_v45, %s6423_s0  ;;  %v4294_v45 = vsel %vm504_vm4, %v4290_v42, %v4264_v9 }
0x1d72   :  { %4283 = vrot.lane.b32.xlu1 %v5678_v32, %s6424_s28 }
0x1d73   :  { %4281 = vrot.lane.b32.xlu0 %v4232_v35, %s6424_s28 }
0x1dd8   :  { %v4280_v29 = vpop.permute.xlu1 %4279 }
0x1dd9   :  { %v4278_v21 = vpop.permute.xlu0 %4277  ;;  %v4298_v34 = vsel %vm1991_vm5, %v4294_v45, %v4280_v29 }
0x1dda   :  { %v4297_v23 = vsel %vm1991_vm5, %v4293_v12, %v4278_v21 }
0x1ddb   :  { %5687 = vmatprep.mubr.msk.f32.mxu1 %vm141_vm1, %v4297_v23  ;;  %v5077_v23 = vld [vmem:[%s7423_s3 + $0x88] sm:$0xff] }
0x1ddc   :  { %v4252_v36 = vpop.permute.xlu1 %4251  ;;  %5688 = vmatmul.mubr.msk.f32.vlgmr.msra.gmra.mrb[36].mxu1 %vm141_vm1, %v4298_v34  ;;  %v5078_v34 = vld [vmem:[%s7423_s3 + $0xa0] sm:$0xff] }
0x1ddd   :  { %v4250_v3 = vpop.permute.xlu0 %4249  ;;  %v4292_v47 = vsel %vm327_vm2, %v7083_v62, %v4252_v36  ;;  %v5072_v62 = vld [vmem:[%s7423_s3 + $0xe0] ss:$0 sm:$0xff]  ;;  %v6003_v36 = vpack.c.bf16 %v5078_v34, %v5077_v23  ;;  %v5098_v34 = vld [vmem:[%s7425_s4 + $0xe8] sm:$0xff] }
0x1dde   :  { %v4291_v56 = vsel %vm327_vm2, %v7085_v63, %v4250_v3  ;;  %v7246_v63 = vld [vmem:[%s7424_s2 + $0x8] sm:$0x3f]  ;;  %v5079_v3 = vld [vmem:[%s7423_s3 + $0xb8] sm:$0xff] }
0x1ddf   :  { %v4406_v40 = vrot.slane %v7246_v63, %v6539_v2  ;;  %6004 = vmatprep.subr.bf16.mxu0 %v6003_v36 }
0x1de0   :  { %v4268_v30 = vpop.permute.xlu1 %4267  ;;  %6006 = vmatpush3.bf16.msra.mxu0 %v6003_v36  ;;  %v5099_v36 = vld [vmem:[%s7425_s4 + $0xf0] sm:$0xff] }
0x1de1   :  { %v4266_v44 = vpop.permute.xlu0 %4265  ;;  %v4296_v50 = vsel %vm504_vm4, %v4292_v47, %v4268_v30  ;;  %v5080_v30 = vld [vmem:[%s7423_s3 + $0xd0] sm:$0xff] }
0x1de2   :  { %v4295_v48 = vsel %vm504_vm4, %v4291_v56, %v4266_v44  ;;  %v6007_v44 = vpack.c.bf16 %v5080_v30, %v5079_v3  ;;  %v6035_v3 = vpack.c.bf16 %v5099_v36, %v5098_v34  ;;  %v5100_v30 = vld [vmem:[%s7425_s4 + $0xf8] sm:$0xff] }
0x1de4   :  { %v4284_v46 = vpop.permute.xlu1 %4283  ;;  %6008 = vmatprep.subr.bf16.mxu0 %v6007_v44 }
0x1de5   :  { %v4282_v33 = vpop.permute.xlu0 %4281  ;;  %v4300_v37 = vsel %vm1991_vm5, %v4296_v50, %v4284_v46  ;;  %6010 = vmatpush3.bf16.msra.mxu0 %v6007_v44  ;;  %v5101_v44 = vld [vmem:[%s7425_s4 + $0x100] sm:$0xff] }
0x1de6   :  { %v4299_v52 = vsel %vm1991_vm5, %v4295_v48, %v4282_v33 }
0x1de7   :  { %5690 = vmatprep.mubr.msk.f32.mxu1 %vm141_vm1, %v4299_v52 }
0x1de8   :  { %5691 = vmatmul.mubr.msk.f32.gmra.mrb[38].mxu1 %vm141_vm1, %v4300_v37 }
0x1eaf   :  { %v5689_v31 = vpop.f32.mrb[36].mxu1 }
0x1eb0   :  { %v4390_v24 = vadd.f32 %v5689_v31, %v5072_v62  ;;  %v4384_v58 = vpop.f32.mrb[37].mxu1 }
0x1eb1   :  { %v4385_v53 = vadd.f32 %v5072_v62, %v4384_v58 }
0x1eb2   :  { %v4412_v39 = vmul.f32 %v4406_v40, %v4390_v24 }
0x1eb3   :  { %v4411_v57 = vmul.f32 %v4406_v40, %v4385_v53 }
0x1eb4   :  { %v7254_v54 = vadd.f32 %v4412_v39, %v6947_v41  ;;  %v4410_v41 = vrot.slane %v7266_v17, %v6539_v2 }
0x1eb5   :  { %v7257_v18 = vadd.f32 %v4411_v57, %v6950_v38  ;;  %v4486_v57 = vrot.slane %v7246_v63, %v6810_v51 }
0x1eb6   :  { %v4422_v27 = vsel %vm141_vm1, %v7254_v54, 0.0 }
0x1eb7   :  { %4423 = vadd.xlane.f32.xlu1 %v4422_v27  ;;  %v4419_v61 = vsel %vm141_vm1, %v7257_v18, 0.0 }
0x1eb8   :  { %4420 = vadd.xlane.f32.xlu0 %v4419_v61 }
0x1ebb   :  { %v5692_v60 = vpop.f32.mrb[38].mxu1 }
0x1ebc   :  { %v4400_v8 = vadd.f32 %v5692_v60, %v5072_v62  ;;  %v4394_v38 = vpop.f32.mrb[39].mxu1 }
0x1ebd   :  { %v4395_v10 = vadd.f32 %v5072_v62, %v4394_v38  ;;  %v4474_v62 = vrot.slane %v7246_v63, %v6545_v5 }
0x1ebe   :  { %v4414_v7 = vmul.f32 %v4410_v41, %v4400_v8 }
0x1ebf   :  { %v4413_v11 = vmul.f32 %v4410_v41, %v4395_v10  ;;  %v4478_v10 = vrot.slane %v7266_v17, %v6545_v5  ;;  %v5087_v5 = vld [vmem:[%s7425_s4 + $0x90] sm:$0xff] }
0x1ec0   :  { %v7274_v13 = vadd.f32 %v4414_v7, %v6959_v55 }
0x1ec1   :  { %v7271_v1 = vadd.f32 %v4413_v11, %v6962_v59 }
0x1ec2   :  { %v4428_v14 = vsel %vm141_vm1, %v7274_v13, 0.0 }
0x1ec3   :  { %v4425_v0 = vsel %vm141_vm1, %v7271_v1, 0.0 }
0x1ec4   :  { %4426 = vadd.xlane.f32.xlu0 %v4425_v0  ;;  %v4490_v0 = vrot.slane %v7266_v17, %v6810_v51  ;;  %v5088_v51 = vld [vmem:[%s7425_s4 + $0x98] sm:$0xff] }
0x1ec8   :  { %4429 = vadd.xlane.f32.xlu0 %v4428_v14 }
0x1f44   :  { %v4424_v2 = vpop.xlane.xlu1 %4423 }
0x1f45   :  { %v4432_v22 = vmul.f32 0.03125, %v4424_v2  ;;  %v4421_v19 = vpop.xlane.xlu0 %4420 }
0x1f46   :  { %v4431_v20 = vmul.f32 0.03125, %v4421_v19 }
0x1f47   :  { %v4436_v25 = vsub.f32 %v7254_v54, %v4432_v22 }
0x1f48   :  { %v4435_v59 = vsub.f32 %v7257_v18, %v4431_v20 }
0x1f49   :  { %v4440_v26 = vmul.f32 %v4436_v25, %v4436_v25 }
0x1f4a   :  { %v4439_v32 = vmul.f32 %v4435_v59, %v4435_v59 }
0x1f4b   :  { %v4446_v55 = vsel %vm141_vm1, %v4440_v26, 0.0 }
0x1f4c   :  { %4447 = vadd.xlane.f32.xlu1 %v4446_v55  ;;  %v4443_v35 = vsel %vm141_vm1, %v4439_v32, 0.0  ;;  %v5089_v32 = vld [vmem:[%s7425_s4 + $0xa0] sm:$0xff] }
0x1f4d   :  { %4444 = vadd.xlane.f32.xlu0 %v4443_v35  ;;  %v6015_v55 = vpack.c.bf16 %v5089_v32, %v5088_v51  ;;  %v5090_v35 = vld [vmem:[%s7425_s4 + $0xa8] sm:$0xff] }
0x1f51   :  { %v4427_v16 = vpop.xlane.xlu0 %4426 }
0x1f52   :  { %v4433_v28 = vmul.f32 0.03125, %v4427_v16  ;;  %v5091_v16 = vld [vmem:[%s7425_s4 + $0xb0] sm:$0xff] }
0x1f54   :  { %v4437_v9 = vsub.f32 %v7271_v1, %v4433_v28  ;;  %v6019_v28 = vpack.c.bf16 %v5091_v16, %v5090_v35 }
0x1f55   :  { %v4430_v15 = vpop.xlane.xlu0 %4429 }
0x1f56   :  { %v4434_v4 = vmul.f32 0.03125, %v4430_v15  ;;  %v4441_v29 = vmul.f32 %v4437_v9, %v4437_v9  ;;  %v5093_v15 = vld [vmem:[%s7425_s4 + $0xc0] sm:$0xff] }
0x1f58   :  { %v4438_v42 = vsub.f32 %v7274_v13, %v4434_v4  ;;  %v4449_v12 = vsel %vm141_vm1, %v4441_v29, 0.0  ;;  %v5094_v29 = vld [vmem:[%s7425_s4 + $0xc8] sm:$0xff] }
0x1f59   :  { %4450 = vadd.xlane.f32.xlu0 %v4449_v12 }
0x1f5a   :  { %v4442_v21 = vmul.f32 %v4438_v42, %v4438_v42 }
0x1f5c   :  { %v4452_v45 = vsel %vm141_vm1, %v4442_v21, 0.0  ;;  %v5096_v21 = vld [vmem:[%s7425_s4 + $0xd8] sm:$0xff] }
0x1f5d   :  { %4453 = vadd.xlane.f32.xlu1 %v4452_v45  ;;  %v5097_v45 = vld [vmem:[%s7425_s4 + $0xe0] sm:$0xff] }
0x1f5e   :  { %v6031_v23 = vpack.c.bf16 %v5097_v45, %v5096_v21  ;;  %v4743_v21 = vrot.slane %v7246_v63, %v6870_v49 }
0x1fd9   :  { %v4448_v56 = vpop.xlane.xlu1 %4447 }
0x1fda   :  { %v4456_v46 = vmul.f32 0.03125, %v4448_v56  ;;  %v4445_v47 = vpop.xlane.xlu0 %4444  ;;  %v6039_v56 = vpack.c.bf16 %v5101_v44, %v5100_v30 }
0x1fdb   :  { %v4455_v48 = vmul.f32 0.03125, %v4445_v47 }
0x1fdc   :  { %v4460_v33 = vadd.f32 1e-06, %v4456_v46  ;;  %v5081_v46 = vld [vmem:[%s7423_s3 + $0xe8] ss:$0 sm:$0xff] }
0x1fdd   :  { %v4459_v50 = vadd.f32 1e-06, %v4455_v48 }
0x1fde   :  { %6385 = vrsqrt.f32 %v4460_v33 }
0x1fdf   :  { %6387 = vrsqrt.f32 %v4459_v50 }
0x1fe6   :  { %v4451_v52 = vpop.xlane.xlu0 %4450 }
0x1fe7   :  { %v4457_v37 = vmul.f32 0.03125, %v4451_v52 }
0x1fe8   :  { %v6386_v40 = vpop.eup %6385 }
0x1fe9   :  { %v6388_v31 = vpop.eup %6387  ;;  %v4468_v24 = vmul.f32 %v6386_v40, %v4436_v25  ;;  %v4461_v58 = vadd.f32 1e-06, %v4457_v37 }
0x1fea   :  { %v4454_v53 = vpop.xlane.xlu1 %4453  ;;  %v4467_v39 = vmul.f32 %v6388_v31, %v4435_v59  ;;  %v5086_v59 = vld [vmem:[%s7425_s4 + $0x88] sm:$0xff] }
0x1feb   :  { %6389 = vrsqrt.f32 %v4461_v58  ;;  %v4458_v27 = vmul.f32 0.03125, %v4454_v53  ;;  %v4480_v61 = vmul.f32 %v4474_v62, %v4468_v24  ;;  %v6011_v26 = vpack.c.bf16 %v5087_v5, %v5086_v59 }
0x1fec   :  { %v4479_v60 = vmul.f32 %v4474_v62, %v4467_v39 }
0x1fed   :  { %v4462_v41 = vadd.f32 1e-06, %v4458_v27  ;;  %v4492_v38 = vadd.f32 %v4486_v57, %v4480_v61  ;;  %6012 = vmatprep.subr.bf16.mxu1 %v6011_v26 }
0x1fee   :  { %v4491_v8 = vadd.f32 %v4486_v57, %v4479_v60  ;;  %6014 = vmatpush3.bf16.msra.mxu1 %v6011_v26 }
0x1fef   :  { %6391 = vrsqrt.f32 %v4462_v41  ;;  %6016 = vmatprep.subr.bf16.mxu1 %v6015_v55 }
0x1ff0   :  { %5701 = vmatprep.mubr.msk.f32.mxu0 %vm141_vm1, %v4491_v8 }
0x1ff1   :  { %5702 = vmatmul.mubr.msk.f32.vlgmr.msra.gmra.mrb[52].mxu0 %vm141_vm1, %v4492_v38 }
0x1ff2   :  { %6018 = vmatpush3.bf16.msra.mxu1 %v6015_v55 }
0x1ff3   :  { %6020 = vmatprep.subr.bf16.mxu1 %v6019_v28 }
0x1ff5   :  { %v6390_v7 = vpop.eup %6389 }
0x1ff6   :  { %v4469_v11 = vmul.f32 %v6390_v7, %v4437_v9  ;;  %6022 = vmatpush3.bf16.msra.mxu1 %v6019_v28  ;;  %v5092_v9 = vld [vmem:[%s7425_s4 + $0xb8] sm:$0xff] }
0x1ff7   :  { %v6023_v4 = vpack.c.bf16 %v5093_v15, %v5092_v9 }
0x1ff8   :  { %v4481_v14 = vmul.f32 %v4478_v10, %v4469_v11 }
0x1ff9   :  { %v6392_v2 = vpop.eup %6391  ;;  %6024 = vmatprep.subr.bf16.mxu1 %v6023_v4 }
0x1ffa   :  { %v4493_v22 = vadd.f32 %v4490_v0, %v4481_v14  ;;  %v4470_v19 = vmul.f32 %v6392_v2, %v4438_v42  ;;  %6026 = vmatpush3.bf16.msra.mxu1 %v6023_v4  ;;  %v5095_v42 = vld [vmem:[%s7425_s4 + $0xd0] sm:$0xff] }
0x1ffb   :  { %v6027_v12 = vpack.c.bf16 %v5095_v42, %v5094_v29 }
0x1ffc   :  { %5704 = vmatprep.mubr.msk.f32.mxu0 %vm141_vm1, %v4493_v22  ;;  %v4482_v20 = vmul.f32 %v4478_v10, %v4470_v19 }
0x1ffd   :  { %6028 = vmatprep.subr.bf16.mxu1 %v6027_v12 }
0x1ffe   :  { %v4494_v25 = vadd.f32 %v4490_v0, %v4482_v20  ;;  %6030 = vmatpush3.bf16.msra.mxu1 %v6027_v12  ;;  %v5103_v12 = vld [vmem:[%s7425_s4 + $0x108] ss:$0 sm:$0xff] }
0x1fff   :  { %6032 = vmatprep.subr.bf16.mxu1 %v6031_v23 }
0x2000   :  { %5705 = vmatmul.mubr.msk.f32.gmra.mrb[54].mxu0 %vm141_vm1, %v4494_v25 }
0x2002   :  { %6034 = vmatpush3.bf16.msra.mxu1 %v6031_v23 }
0x2003   :  { %6036 = vmatprep.subr.bf16.mxu1 %v6035_v3 }
0x2006   :  { %6038 = vmatpush3.bf16.msra.mxu1 %v6035_v3 }
0x2007   :  { %6040 = vmatprep.subr.bf16.mxu1 %v6039_v56 }
0x200a   :  { %6042 = vmatpush3.bf16.msra.mxu1 %v6039_v56 }
0x20c4   :  { %v5703_v47 = vpop.f32.mrb[52].mxu0 }
0x20c5   :  { %v4584_v48 = vadd.f32 %v5703_v47, %v5081_v46  ;;  %v4578_v33 = vpop.f32.mrb[53].mxu0 }
0x20c6   :  { %v4579_v50 = vadd.f32 %v5081_v46, %v4578_v33 }
0x20c7   :  { %v4598_v52 = vmul.f32 %v4584_v48, %v4584_v48 }
0x20c8   :  { %v4597_v37 = vmul.f32 %v4579_v50, %v4579_v50 }
0x20c9   :  { %v4602_v62 = vmul.f32 %v4598_v52, %v4584_v48 }
0x20ca   :  { %v4601_v40 = vmul.f32 %v4597_v37, %v4579_v50 }
0x20cb   :  { %v4606_v31 = vmul.f32 0.044715, %v4602_v62 }
0x20cc   :  { %v4605_v24 = vmul.f32 0.044715, %v4601_v40 }
0x20cd   :  { %v4610_v58 = vadd.f32 %v4606_v31, %v4584_v48 }
0x20ce   :  { %v4609_v53 = vadd.f32 %v4605_v24, %v4579_v50 }
0x20cf   :  { %v4614_v39 = vmul.f32 0.7978846, %v4610_v58 }
0x20d0   :  { %v4613_v57 = vmul.f32 0.7978846, %v4609_v53 }
0x20d1   :  { %6393 = vtanh.f32 %v4614_v39 }
0x20d2   :  { %6395 = vtanh.f32 %v4613_v57 }
0x20d3   :  { %v5706_v27 = vpop.f32.mrb[54].mxu0 }
0x20d4   :  { %v4594_v61 = vadd.f32 %v5706_v27, %v5081_v46  ;;  %v4588_v60 = vpop.f32.mrb[55].mxu0 }
0x20d5   :  { %v4589_v41 = vadd.f32 %v5081_v46, %v4588_v60 }
0x20d6   :  { %v4600_v8 = vmul.f32 %v4594_v61, %v4594_v61 }
0x20d7   :  { %v4599_v38 = vmul.f32 %v4589_v41, %v4589_v41 }
0x20d8   :  { %v4604_v10 = vmul.f32 %v4600_v8, %v4594_v61 }
0x20d9   :  { %v4603_v7 = vmul.f32 %v4599_v38, %v4589_v41 }
0x20da   :  { %v4608_v11 = vmul.f32 0.044715, %v4604_v10 }
0x20db   :  { %v6394_v0 = vpop.eup %6393  ;;  %v4607_v14 = vmul.f32 0.044715, %v4603_v7 }
0x20dc   :  { %v6396_v2 = vpop.eup %6395  ;;  %v4622_v22 = vadd.f32 1.0, %v6394_v0  ;;  %v4612_v19 = vadd.f32 %v4608_v11, %v4594_v61 }
0x20dd   :  { %v4611_v20 = vadd.f32 %v4607_v14, %v4589_v41  ;;  %v4621_v25 = vadd.f32 1.0, %v6396_v2 }
0x20de   :  { %v4626_v59 = vmul.f32 0.5, %v4622_v22  ;;  %v4616_v5 = vmul.f32 0.7978846, %v4612_v19  ;;  %v4832_v19 = vld [vmem:[%s7426_s5] sm:$0xff] }
0x20df   :  { %v4615_v26 = vmul.f32 0.7978846, %v4611_v20  ;;  %v4625_v51 = vmul.f32 0.5, %v4621_v25  ;;  %v4833_v20 = vld [vmem:[%s7426_s5 + $0x8] sm:$0xff] }
0x20e0   :  { %6397 = vtanh.f32 %v4616_v5  ;;  %v4630_v55 = vmul.f32 %v4626_v59, %v4584_v48  ;;  %v4747_v48 = vrot.slane %v7266_v17, %v6870_v49  ;;  %v6043_v25 = vpack.c.bf16 %v4833_v20, %v4832_v19  ;;  %v4834_v59 = vld [vmem:[%s7426_s5 + $0x10] sm:$0xff]  ;;  %v4835_v5 = vld [vmem:[%s7426_s5 + $0x18] sm:$0xff] }
0x20e1   :  { %v4629_v32 = vmul.f32 %v4625_v51, %v4579_v50  ;;  %6399 = vtanh.f32 %v4615_v26  ;;  %v6047_v26 = vpack.c.bf16 %v4835_v5, %v4834_v59 }
0x20e2   :  { %6044 = vmatprep.subr.bf16.mxu0 %v6043_v25 }
0x20e3   :  { %5739 = vmatprep.mubr.f32.mxu1 %v4629_v32  ;;  %6046 = vmatpush3.bf16.msra.mxu0 %v6043_v25 }
0x20e4   :  { %5740 = vmatmul.mubr.f32.vlgmr.msra.gmra.mrb[40].mxu1 %v4630_v55  ;;  %6048 = vmatprep.subr.bf16.mxu0 %v6047_v26 }
0x20e7   :  { %6050 = vmatpush3.bf16.msra.mxu0 %v6047_v26 }
0x20ea   :  { %v6398_v35 = vpop.eup %6397 }
0x20eb   :  { %v6400_v16 = vpop.eup %6399  ;;  %v4624_v28 = vadd.f32 1.0, %v6398_v35 }
0x20ec   :  { %v4623_v9 = vadd.f32 1.0, %v6400_v16 }
0x20ed   :  { %v4628_v15 = vmul.f32 0.5, %v4624_v28 }
0x20ee   :  { %v4627_v4 = vmul.f32 0.5, %v4623_v9  ;;  %v4811_v9 = vrot.slane %v7246_v63, %v6873_v6 }
0x20ef   :  { %v4632_v42 = vmul.f32 %v4628_v15, %v4594_v61 }
0x20f0   :  { %v4631_v29 = vmul.f32 %v4627_v4, %v4589_v41 }
0x20f2   :  { %5742 = vmatprep.mubr.f32.mxu1 %v4631_v29 }
0x20f3   :  { %5743 = vmatmul.mubr.f32.gmra.mrb[42].mxu1 %v4632_v42 }
0x21b7   :  { %v5741_v45 = vpop.f32.mrb[40].mxu1 }
0x21b8   :  { %v4727_v23 = vadd.f32 %v5741_v45, %v5103_v12  ;;  %v4721_v34 = vpop.f32.mrb[41].mxu1 }
0x21b9   :  { %v4722_v36 = vadd.f32 %v5103_v12, %v4721_v34  ;;  %v4823_v34 = vrot.slane %v7246_v63, %v6939_v43  ;;  %v4827_v63 = vrot.slane %v7266_v17, %v6939_v43 }
0x21ba   :  { %v4749_v3 = vmul.f32 %v4743_v21, %v4727_v23 }
0x21bb   :  { %v4748_v30 = vmul.f32 %v4743_v21, %v4722_v36 }
0x21bc   :  { %v4753_v44 = vadd.f32 %v4749_v3, %v7254_v54 }
0x21bd   :  { %v4752_v56 = vadd.f32 %v4748_v30, %v7257_v18 }
0x21be   :  { %v4759_v46 = vsel %vm141_vm1, %v4753_v44, 0.0 }
0x21bf   :  { %4760 = vadd.xlane.f32.xlu1 %v4759_v46  ;;  %v4756_v47 = vsel %vm141_vm1, %v4752_v56, 0.0 }
0x21c0   :  { %4757 = vadd.xlane.f32.xlu0 %v4756_v47  ;;  %v4815_v47 = vrot.slane %v7266_v17, %v6873_v6 }
0x21c6   :  { %v5744_v33 = vpop.f32.mrb[42].mxu1 }
0x21c7   :  { %v4737_v50 = vadd.f32 %v5744_v33, %v5103_v12  ;;  %v4731_v52 = vpop.f32.mrb[43].mxu1 }
0x21c8   :  { %v4732_v37 = vadd.f32 %v5103_v12, %v4731_v52 }
0x21c9   :  { %v4751_v62 = vmul.f32 %v4747_v48, %v4737_v50 }
0x21ca   :  { %v4750_v40 = vmul.f32 %v4747_v48, %v4732_v37 }
0x21cb   :  { %v4755_v31 = vadd.f32 %v4751_v62, %v7274_v13 }
0x21cc   :  { %v4754_v54 = vadd.f32 %v4750_v40, %v7271_v1 }
0x21cd   :  { %v4765_v18 = vsel %vm141_vm1, %v4755_v31, 0.0 }
0x21ce   :  { %4766 = vadd.xlane.f32.xlu1 %v4765_v18  ;;  %v4762_v24 = vsel %vm141_vm1, %v4754_v54, 0.0 }
0x21cf   :  { %4763 = vadd.xlane.f32.xlu0 %v4762_v24 }
0x224c   :  { %v4761_v58 = vpop.xlane.xlu1 %4760 }
0x224d   :  { %v4769_v53 = vmul.f32 0.03125, %v4761_v58  ;;  %v4758_v39 = vpop.xlane.xlu0 %4757 }
0x224e   :  { %v4768_v49 = vmul.f32 0.03125, %v4758_v39 }
0x224f   :  { %v4773_v57 = vsub.f32 %v4753_v44, %v4769_v53 }
0x2250   :  { %v4772_v27 = vsub.f32 %v4752_v56, %v4768_v49 }
0x2251   :  { %v4777_v61 = vmul.f32 %v4773_v57, %v4773_v57 }
0x2252   :  { %v4776_v60 = vmul.f32 %v4772_v27, %v4772_v27 }
0x2253   :  { %v4783_v41 = vsel %vm141_vm1, %v4777_v61, 0.0 }
0x2254   :  { %4784 = vadd.xlane.f32.xlu1 %v4783_v41  ;;  %v4780_v13 = vsel %vm141_vm1, %v4776_v60, 0.0 }
0x2255   :  { %4781 = vadd.xlane.f32.xlu0 %v4780_v13 }
0x225b   :  { %v4767_v1 = vpop.xlane.xlu1 %4766 }
0x225c   :  { %v4771_v8 = vmul.f32 0.03125, %v4767_v1  ;;  %v4764_v38 = vpop.xlane.xlu0 %4763 }
0x225d   :  { %v4770_v10 = vmul.f32 0.03125, %v4764_v38 }
0x225e   :  { %v4775_v7 = vsub.f32 %v4755_v31, %v4771_v8 }
0x225f   :  { %v4774_v11 = vsub.f32 %v4754_v54, %v4770_v10  ;;  %v5104_v54 = vld [vmem:[%s7426_s5 + $0x20] ss:$0 sm:$0xff] }
0x2260   :  { %v4779_v0 = vmul.f32 %v4775_v7, %v4775_v7 }
0x2261   :  { %v4778_v14 = vmul.f32 %v4774_v11, %v4774_v11 }
0x2262   :  { %v4789_v2 = vsel %vm141_vm1, %v4779_v0, 0.0 }
0x2263   :  { %4790 = vadd.xlane.f32.xlu1 %v4789_v2  ;;  %v4786_v22 = vsel %vm141_vm1, %v4778_v14, 0.0 }
0x2264   :  { %4787 = vadd.xlane.f32.xlu0 %v4786_v22 }
0x22e1   :  { %v4785_v51 = vpop.xlane.xlu1 %4784 }
0x22e2   :  { %v4793_v32 = vmul.f32 0.03125, %v4785_v51  ;;  %v4782_v55 = vpop.xlane.xlu0 %4781 }
0x22e3   :  { %v4792_v35 = vmul.f32 0.03125, %v4782_v55 }
0x22e4   :  { %v4797_v16 = vadd.f32 1e-06, %v4793_v32 }
0x22e5   :  { %v4796_v28 = vadd.f32 1e-06, %v4792_v35 }
0x22e6   :  { %6401 = vrsqrt.f32 %v4797_v16 }
0x22e7   :  { %6403 = vrsqrt.f32 %v4796_v28 }
0x22f0   :  { %v6402_v15 = vpop.eup %6401  ;;  %v4791_v4 = vpop.xlane.xlu1 %4790 }
0x22f1   :  { %v6404_v29 = vpop.eup %6403  ;;  %v4805_v42 = vmul.f32 %v6402_v15, %v4773_v57  ;;  %v4795_v12 = vmul.f32 0.03125, %v4791_v4  ;;  %v4788_v21 = vpop.xlane.xlu0 %4787 }
0x22f2   :  { %v4794_v45 = vmul.f32 0.03125, %v4788_v21  ;;  %v4804_v23 = vmul.f32 %v6404_v29, %v4772_v27 }
0x22f3   :  { %v4799_v36 = vadd.f32 1e-06, %v4795_v12  ;;  %v4817_v3 = vmul.f32 %v4811_v9, %v4805_v42 }
0x22f4   :  { %v4798_v30 = vadd.f32 1e-06, %v4794_v45  ;;  %v4816_v44 = vmul.f32 %v4811_v9, %v4804_v23 }
0x22f5   :  { %6405 = vrsqrt.f32 %v4799_v36  ;;  %v4829_v46 = vadd.f32 %v4823_v34, %v4817_v3 }
0x22f6   :  { %6407 = vrsqrt.f32 %v4798_v30  ;;  %v4828_v56 = vadd.f32 %v4823_v34, %v4816_v44 }
0x22f8   :  { %5753 = vmatprep.mubr.msk.f32.mxu0 %vm141_vm1, %v4828_v56 }
0x22f9   :  { %5754 = vmatmul.mubr.msk.f32.vlgmr.msra.gmra.mrb[56].mxu0 %vm141_vm1, %v4829_v46 }
0x22ff   :  { %v6406_v48 = vpop.eup %6405 }
0x2300   :  { %v6408_v33 = vpop.eup %6407  ;;  %v4807_v50 = vmul.f32 %v6406_v48, %v4775_v7 }
0x2301   :  { %v4806_v52 = vmul.f32 %v6408_v33, %v4774_v11 }
0x2302   :  { %v4819_v37 = vmul.f32 %v4815_v47, %v4807_v50 }
0x2303   :  { %v4818_v62 = vmul.f32 %v4815_v47, %v4806_v52 }
0x2304   :  { %v4831_v31 = vadd.f32 %v4827_v63, %v4819_v37 }
0x2305   :  { %v4830_v40 = vadd.f32 %v4827_v63, %v4818_v62 }
0x2307   :  { %5756 = vmatprep.mubr.msk.f32.mxu0 %vm141_vm1, %v4830_v40 }
0x2308   :  { %5757 = vmatmul.mubr.msk.f32.gmra.mrb[58].mxu0 %vm141_vm1, %v4831_v31 }
0x23cc   :  { %v5755_v6 = vpop.f32.mrb[56].mxu0 }
0x23cd   :  { %v4925_v18 = vadd.f32 %v5755_v6, %v5104_v54  ;;  %v4919_v24 = vpop.f32.mrb[57].mxu0 }
0x23ce   :  { %v4920_v58 = vadd.f32 %v5104_v54, %v4919_v24 }
0x23cf   :  { %4939 = vst [vmem:[%s7427_s6 + $0x8] sm:$0xff] %v4925_v18 }
0x23d0   :  { %4938 = vst [vmem:[%s7427_s6] sm:$0xff] %v4920_v58 }
0x23db   :  { %v5758_v43 = vpop.f32.mrb[58].mxu0 }
0x23dc   :  { %v4935_v17 = vadd.f32 %v5758_v43, %v5104_v54  ;;  %v4929_v53 = vpop.f32.mrb[59].mxu0 }
0x23dd   :  { %v4930_v39 = vadd.f32 %v5104_v54, %v4929_v53 }
0x23de   :  { %4941 = vst [vmem:[%s7427_s6 + $0x18] sm:$0xff] %v4935_v17 }
0x23df   :  { %4940 = vst [vmem:[%s7427_s6 + $0x10] sm:$0xff] %v4930_v39 }

</bundles_post_ra>
